<compile_context>
chip_gen: v6e
topology: v6e:2x2x1
jax: 0.10.0
libtpu: 0.0.40
codegen_flags: <defaults>
</compile_context>

<pallas_src>
import functools

import jax
import jax.numpy as jnp
from jax.experimental import pallas as pl
from jax.experimental.pallas import tpu as pltpu


# bf16 matmul operands bound parity with the pure-f32 reference; outputs are O(1) after
# LayerNorm, so 5e-2 separates "bf16 rounding" from "wrong math".
_TOL = 5e-2


def _layernorm(x, gamma, beta, eps=1e-5):
    # PyTorch LayerNorm: biased variance over last dim, eps inside rsqrt.  Kept in f32.
    mu = jnp.mean(x, axis=-1, keepdims=True)
    var = jnp.mean((x - mu) ** 2, axis=-1, keepdims=True)
    return (x - mu) * jax.lax.rsqrt(var + eps) * gamma + beta


def _pick_batch_tile(B, S, target_rows=512, row_align=1):
    """Batch elements per grid step.  Feed >= target_rows rows (Bt*S) of GEMM per step
    (fills the 256-deep MXU on v6e/v7x and amortizes ~0.35us/step overhead); do NOT force
    a multi-step grid for small batches.  row_align keeps 2-D blocks (Bt, K) legal when
    Bt is the second-to-last block dim (must be %8 or the full batch)."""
    cap = max(1, min(B, target_rows // max(S, 1)))
    for bt in range(cap, 0, -1):
        if B % bt == 0 and (bt == B or bt % row_align == 0):
            return bt
    return B


def _resident_spec(shape, single_buffer):
    """BlockSpec for a weight/bias with a constant index map (VMEM-resident across the
    batch-tile grid).  With single_buffer, request a 1-deep pipeline: the block never
    changes, so double-buffering it only wastes VMEM (matters on v7x's 64 MiB)."""
    idx = lambda b, _n=len(shape): (0,) * _n
    if single_buffer:
        return pl.BlockSpec(shape, idx, pipeline_mode=pl.Buffered(1))
    return pl.BlockSpec(shape, idx)


# ---------------------------------------------------------------------------
# Fused TransformerEncoder kernel: embedding + all layers in one pallas_call
# ---------------------------------------------------------------------------
def encoder_fused_kernel(
    x_ref,                      # (Bt, K) f32   raw features
    wemb_ref, bemb_ref,         # (K, E) bf16, (1, E) f32     embedding (pre-transposed)
    wv_ref, bv_ref,             # (L, E, E) bf16, (L, 1, E) f32   V slice of in_proj
    wo_ref, bo_ref,             # (L, E, E) bf16, (L, 1, E) f32   out_proj
    g1_ref, be1_ref,            # (L, 1, E) f32                   layernorm1
    w1_ref, b1_ref,             # (L, E, F) bf16, (L, 1, F) f32   ffn linear1
    w2_ref, b2_ref,             # (L, F, E) bf16, (L, 1, E) f32   ffn linear2
    g2_ref, be2_ref,            # (L, 1, E) f32                   layernorm2
    o_ref,                      # (Bt, E) f32
    *, num_layers,
):
    # Embedding Linear (encoder dropout after it is identity in eval).
    h = jnp.dot(x_ref[...].astype(jnp.bfloat16), wemb_ref[...],
                preferred_element_type=jnp.float32) + bemb_ref[...]        # (Bt, E) f32

    # S == 1 after x.unsqueeze(0): softmax over a single key is identically 1, so the
    # attention context equals the V projection; Q/K projections are dead and skipped.
    for l in range(num_layers):
        v = jnp.dot(h.astype(jnp.bfloat16), wv_ref[l],
                    preferred_element_type=jnp.float32) + bv_ref[l]
        attn = jnp.dot(v.astype(jnp.bfloat16), wo_ref[l],
                       preferred_element_type=jnp.float32) + bo_ref[l]
        out1 = _layernorm(h + attn, g1_ref[l], be1_ref[l])                 # dropout1 = id
        h1 = jnp.maximum(jnp.dot(out1.astype(jnp.bfloat16), w1_ref[l],
                                 preferred_element_type=jnp.float32) + b1_ref[l], 0.0)
        ffn = jnp.dot(h1.astype(jnp.bfloat16), w2_ref[l],
                      preferred_element_type=jnp.float32) + b2_ref[l]
        h = _layernorm(out1 + ffn, g2_ref[l], be2_ref[l])                  # dropout2 = id
    # TODO(synk): at production dims (large E/F) tile the FFN over F with an extra
    # "arbitrary" grid axis + VMEM f32 accumulator, re-deriving Bt for v7x's 64 MiB VMEM.
    o_ref[...] = h.astype(o_ref.dtype)


def _encoder_pallas(x, kenc, batch_tile=None, single_buffer_weights=True):
    N, K = x.shape
    E = kenc["emb_w"].shape[1]
    F = kenc["w1"].shape[2]
    L = kenc["wv"].shape[0]
    Bt = batch_tile or _pick_batch_tile(N, 1, target_rows=512, row_align=8)
    assert N % Bt == 0

    rep = functools.partial(_resident_spec, single_buffer=single_buffer_weights)

    flops = int(2 * N * K * E + L * (4 * N * E * E + 4 * N * E * F))
    w_bytes = int(K * E * 2 + E * 4
                  + L * 2 * (2 * E * E + 2 * E * F)      # bf16 wv, wo, w1, w2
                  + L * 4 * (7 * E + F))                 # f32 biases + LN params
    bytes_accessed = int(N * K * 4 + N * E * 4 + w_bytes)
    act_bytes = int(Bt * (K + 10 * E + 2 * F) * 4)
    vmem_limit = int(min(64 << 20, max(32 << 20, 2 * w_bytes + 2 * act_bytes + (4 << 20))))

    return pl.pallas_call(
        functools.partial(encoder_fused_kernel, num_layers=L),
        out_shape=jax.ShapeDtypeStruct((N, E), jnp.float32),
        grid_spec=pltpu.PrefetchScalarGridSpec(
            num_scalar_prefetch=0,
            grid=(N // Bt,),
            in_specs=[
                pl.BlockSpec((Bt, K), lambda b: (b, 0)),       # x batch tile
                rep((K, E)), rep((1, E)),                      # embedding
                rep((L, E, E)), rep((L, 1, E)),                # V projection
                rep((L, E, E)), rep((L, 1, E)),                # out_proj
                rep((L, 1, E)), rep((L, 1, E)),                # ln1
                rep((L, E, F)), rep((L, 1, F)),                # ffn w1/b1
                rep((L, F, E)), rep((L, 1, E)),                # ffn w2/b2
                rep((L, 1, E)), rep((L, 1, E)),                # ln2
            ],
            out_specs=pl.BlockSpec((Bt, E), lambda b: (b, 0)),
        ),
        compiler_params=pltpu.CompilerParams(
            dimension_semantics=("parallel",),
            vmem_limit_bytes=vmem_limit),
        cost_estimate=pl.CostEstimate(flops=flops, transcendentals=0,
                                      bytes_accessed=bytes_accessed),
    )(
        x,
        kenc["emb_w"], kenc["emb_b"],
        kenc["wv"], kenc["bv"],
        kenc["wo"], kenc["bo"],
        kenc["g1"], kenc["be1"],
        kenc["w1"], kenc["b1"],
        kenc["w2"], kenc["b2"],
        kenc["g2"], kenc["be2"],
    )


def transformer_encoder(x, kenc, batch_tile=None):
    """x: (N, input_dim) f32 -> (N, embed_dim) f32.  Mirrors TransformerEncoder.forward
    (eval semantics) in a single fused pallas_call.  Falls back to default-buffered
    weight specs if the running JAX rejects pipeline_mode=pl.Buffered(1)."""
    last_err = None
    for single_buf in (True, False):
        try:
            return _encoder_pallas(x, kenc, batch_tile, single_buffer_weights=single_buf)
        except Exception as e:        # feature fallback (constructed & compiled eagerly)
            last_err = e
    raise last_err


# ---------------------------------------------------------------------------
# General TransformerBlock kernel (S > 1 attention path; standalone block use)
# ---------------------------------------------------------------------------
def transformer_block_kernel(
    x_ref,                     # (Bt, S, E) f32
    wqkv_ref, bqkv_ref,        # (E, 3E) bf16, (1, 3E) f32   (pre-transposed, fused QKV,
                               #                              1/sqrt(D) folded into Q cols)
    wo_ref, bo_ref,            # (E, E)  bf16, (1, E)  f32
    g1_ref, be1_ref,           # (1, E) f32  layernorm1
    w1_ref, b1_ref,            # (E, F)  bf16, (1, F)  f32
    w2_ref, b2_ref,            # (F, E)  bf16, (1, E)  f32
    g2_ref, be2_ref,           # (1, E) f32  layernorm2
    o_ref,                     # (Bt, S, E) f32
    *, num_heads, batched_heads,
):
    Bt, S, E = x_ref.shape
    H = num_heads
    D = E // H

    x = x_ref[...].reshape(Bt * S, E)                      # (R, E) f32, R = Bt*S

    # Fused Q/K/V projection: one MXU pass, bf16 operands, f32 accumulation.
    # 1/sqrt(D) already folded into the Q weight/bias columns host-side.
    qkv = jnp.dot(x.astype(jnp.bfloat16), wqkv_ref[...],
                  preferred_element_type=jnp.float32) + bqkv_ref[...]
    q = qkv[:, :E]
    k = qkv[:, E:2 * E]
    v = qkv[:, 2 * E:]

    if S == 1:
        ctx = v                                            # softmax over one key == 1
    elif batched_heads:
        # Reshape-batched contractions over (batch, head) - no head-major copies.
        q4 = q.reshape(Bt, S, H, D)
        k4 = k.reshape(Bt, S, H, D)
        v4 = v.reshape(Bt, S, H, D)
        s = jnp.einsum("bqhd,bkhd->bhqk",
                       q4.astype(jnp.bfloat16), k4.astype(jnp.bfloat16),
                       preferred_element_type=jnp.float32)              # (Bt, H, S, S)
        s = s - jnp.max(s, axis=-1, keepdims=True)
        p = jnp.exp(s)
        p = p * pl.reciprocal(jnp.sum(p, axis=-1, keepdims=True), approx=True)
        ctx = jnp.einsum("bhqk,bkhd->bqhd",
                         p.astype(jnp.bfloat16), v4.astype(jnp.bfloat16),
                         preferred_element_type=jnp.float32).reshape(Bt * S, E)
    else:
        # Known-good fallback marshalling: head-major (H*Bt, S, D) via axis-0 concat.
        q3 = q.reshape(Bt, S, E)
        k3 = k.reshape(Bt, S, E)
        v3 = v.reshape(Bt, S, E)
        qh = jnp.concatenate([q3[:, :, h * D:(h + 1) * D] for h in range(H)], axis=0)
        kh = jnp.concatenate([k3[:, :, h * D:(h + 1) * D] for h in range(H)], axis=0)
        vh = jnp.concatenate([v3[:, :, h * D:(h + 1) * D] for h in range(H)], axis=0)
        s = jnp.einsum("bqd,bkd->bqk",
                       qh.astype(jnp.bfloat16), kh.astype(jnp.bfloat16),
                       preferred_element_type=jnp.float32)              # (H*Bt, S, S)
        s = s - jnp.max(s, axis=-1, keepdims=True)
        p = jnp.exp(s)
        p = p * pl.reciprocal(jnp.sum(p, axis=-1, keepdims=True), approx=True)
        ctxh = jnp.einsum("bqk,bkd->bqd",
                          p.astype(jnp.bfloat16), vh.astype(jnp.bfloat16),
                          preferred_element_type=jnp.float32)
        ctx = jnp.concatenate([ctxh[h * Bt:(h + 1) * Bt] for h in range(H)],
                              axis=-1).reshape(Bt * S, E)
    # TODO(synk): for large S replace the dense (S,S) scores with a KV-blocked online
    # softmax (flash-style).

    attn = jnp.dot(ctx.astype(jnp.bfloat16), wo_ref[...],
                   preferred_element_type=jnp.float32) + bo_ref[...]

    out1 = _layernorm(x + attn, g1_ref[...], be1_ref[...])               # dropout1 = id
    h1 = jnp.maximum(jnp.dot(out1.astype(jnp.bfloat16), w1_ref[...],
                             preferred_element_type=jnp.float32) + b1_ref[...], 0.0)
    ffn = jnp.dot(h1.astype(jnp.bfloat16), w2_ref[...],
                  preferred_element_type=jnp.float32) + b2_ref[...]
    out2 = _layernorm(out1 + ffn, g2_ref[...], be2_ref[...])             # dropout2 = id
    o_ref[...] = out2.reshape(Bt, S, E).astype(o_ref.dtype)


def _block_pallas(x_bse, kp, num_heads, batch_tile, batched_heads, single_buffer_weights):
    B, S, E = x_bse.shape
    F = kp["w1"].shape[1]
    H = num_heads
    assert E % H == 0
    Bt = batch_tile or _pick_batch_tile(B, S, target_rows=512)
    assert B % Bt == 0

    R = B * S
    flops = int(2 * R * E * 3 * E + 4 * R * S * E + 2 * R * E * E + 4 * R * E * F)
    transcendentals = int(H * B * S * S)
    w_bytes = int(2 * (3 * E * E + E * E + 2 * E * F) + 4 * (3 * E + 6 * E + F))
    bytes_accessed = int(2 * R * E * 4 + w_bytes)
    act_bytes = int(Bt * S * (12 * E + 2 * F) * 4)
    vmem_limit = int(min(64 << 20, max(32 << 20, 2 * w_bytes + 2 * act_bytes + (4 << 20))))

    rep = functools.partial(_resident_spec, single_buffer=single_buffer_weights)

    return pl.pallas_call(
        functools.partial(transformer_block_kernel, num_heads=H,
                          batched_heads=batched_heads),
        out_shape=jax.ShapeDtypeStruct((B, S, E), jnp.float32),
        grid_spec=pltpu.PrefetchScalarGridSpec(
            num_scalar_prefetch=0,
            grid=(B // Bt,),
            in_specs=[
                pl.BlockSpec((Bt, S, E), lambda b: (b, 0, 0)),     # x
                rep((E, 3 * E)), rep((1, 3 * E)),                  # fused qkv w/b
                rep((E, E)), rep((1, E)),                          # out-proj w/b
                rep((1, E)), rep((1, E)),                          # ln1 gamma/beta
                rep((E, F)), rep((1, F)),                          # ffn w1/b1
                rep((F, E)), rep((1, E)),                          # ffn w2/b2
                rep((1, E)), rep((1, E)),                          # ln2 gamma/beta
            ],
            out_specs=pl.BlockSpec((Bt, S, E), lambda b: (b, 0, 0)),
        ),
        compiler_params=pltpu.CompilerParams(
            dimension_semantics=("parallel",),
            vmem_limit_bytes=vmem_limit),
        cost_estimate=pl.CostEstimate(flops=flops, transcendentals=transcendentals,
                                      bytes_accessed=bytes_accessed),
    )(
        x_bse,
        kp["wqkv"], kp["bqkv"],
        kp["wo"], kp["bo"],
        kp["g1"], kp["be1"],
        kp["w1"], kp["b1"],
        kp["w2"], kp["b2"],
        kp["g2"], kp["be2"],
    )


def transformer_block_bse(x_bse, kp, num_heads, batch_tile=None):
    """Batch-first TransformerBlock: (B, S, E) f32 -> (B, S, E) f32.  Tries the
    reshape-batched-head einsum + single-buffered-weight configuration first and falls
    back to the known-good concat marshalling / default buffering if lowering rejects."""
    last_err = None
    for batched_heads, single_buf in ((True, True), (True, False),
                                      (False, True), (False, False)):
        try:
            return _block_pallas(x_bse, kp, num_heads, batch_tile,
                                 batched_heads=batched_heads,
                                 single_buffer_weights=single_buf)
        except Exception as e:
            last_err = e
    raise last_err


# ---------------------------------------------------------------------------
# Parameters: PyTorch-style containers + kernel-side preparation
# ---------------------------------------------------------------------------
def _nrm(k, shape, s=0.05):
    return jax.random.normal(k, shape, dtype=jnp.float32) * s


def init_block_params(key, E, H, F):
    ks = jax.random.split(key, 12)
    return dict(
        in_proj_weight=_nrm(ks[0], (3 * E, E)),            # nn.MultiheadAttention
        in_proj_bias=_nrm(ks[1], (3 * E,)),
        out_proj_weight=_nrm(ks[2], (E, E)),
        out_proj_bias=_nrm(ks[3], (E,)),
        ln1_weight=1.0 + _nrm(ks[4], (E,)),                 # layernorm1
        ln1_bias=_nrm(ks[5], (E,)),
        linear1_weight=_nrm(ks[6], (F, E)),                 # ffn[0]
        linear1_bias=_nrm(ks[7], (F,)),
        linear2_weight=_nrm(ks[8], (E, F)),                 # ffn[3]
        linear2_bias=_nrm(ks[9], (E,)),
        ln2_weight=1.0 + _nrm(ks[10], (E,)),                # layernorm2
        ln2_bias=_nrm(ks[11], (E,)),
    )


def init_encoder_params(key, input_dim, E, H, F, num_layers):
    ks = jax.random.split(key, num_layers + 2)
    return dict(
        embedding_weight=_nrm(ks[0], (E, input_dim)),
        embedding_bias=_nrm(ks[1], (E,)),
        layers=[init_block_params(ks[2 + i], E, H, F) for i in range(num_layers)],
    )


def prepare_block_kernel_params(tp, num_heads):
    """Host-side weight prep for the general block kernel: transpose once, fuse QKV,
    fold 1/sqrt(D) into the Q weight/bias columns, cast weights to bf16."""
    f32, bf16 = jnp.float32, jnp.bfloat16
    W, b = tp["in_proj_weight"], tp["in_proj_bias"]
    E = W.shape[1]
    D = E // num_heads
    scale = jnp.float32(1.0 / (D ** 0.5))
    wqkv = jnp.concatenate([W[:E] * scale, W[E:]], axis=0).T          # (E, 3E)
    bqkv = jnp.concatenate([b[:E] * scale, b[E:]]).reshape(1, -1)
    return dict(
        wqkv=jnp.asarray(wqkv, bf16),
        bqkv=bqkv.astype(f32),
        wo=jnp.asarray(tp["out_proj_weight"].T, bf16),                # (E, E)
        bo=tp["out_proj_bias"].reshape(1, -1).astype(f32),
        g1=tp["ln1_weight"].reshape(1, -1).astype(f32),
        be1=tp["ln1_bias"].reshape(1, -1).astype(f32),
        w1=jnp.asarray(tp["linear1_weight"].T, bf16),                 # (E, F)
        b1=tp["linear1_bias"].reshape(1, -1).astype(f32),
        w2=jnp.asarray(tp["linear2_weight"].T, bf16),                 # (F, E)
        b2=tp["linear2_bias"].reshape(1, -1).astype(f32),
        g2=tp["ln2_weight"].reshape(1, -1).astype(f32),
        be2=tp["ln2_bias"].reshape(1, -1).astype(f32),
    )


def prepare_encoder_kernel_params(tenc):
    """Host-side prep for the fused encoder: stack per-layer weights along a leading
    layer axis, keep only the V slice of in_proj (S == 1 path), bf16 weights."""
    f32, bf16 = jnp.float32, jnp.bfloat16
    E = tenc["embedding_weight"].shape[0]
    layers = tenc["layers"]

    def stack(fn):
        return jnp.stack([fn(tp) for tp in layers], axis=0)

    return dict(
        emb_w=jnp.asarray(tenc["embedding_weight"].T, bf16),                  # (K, E)
        emb_b=tenc["embedding_bias"].reshape(1, -1).astype(f32),              # (1, E)
        wv=stack(lambda tp: jnp.asarray(tp["in_proj_weight"][2 * E:].T, bf16)),
        bv=stack(lambda tp: tp["in_proj_bias"][2 * E:].reshape(1, -1).astype(f32)),
        wo=stack(lambda tp: jnp.asarray(tp["out_proj_weight"].T, bf16)),
        bo=stack(lambda tp: tp["out_proj_bias"].reshape(1, -1).astype(f32)),
        g1=stack(lambda tp: tp["ln1_weight"].reshape(1, -1).astype(f32)),
        be1=stack(lambda tp: tp["ln1_bias"].reshape(1, -1).astype(f32)),
        w1=stack(lambda tp: jnp.asarray(tp["linear1_weight"].T, bf16)),       # (L, E, F)
        b1=stack(lambda tp: tp["linear1_bias"].reshape(1, -1).astype(f32)),
        w2=stack(lambda tp: jnp.asarray(tp["linear2_weight"].T, bf16)),       # (L, F, E)
        b2=stack(lambda tp: tp["linear2_bias"].reshape(1, -1).astype(f32)),
        g2=stack(lambda tp: tp["ln2_weight"].reshape(1, -1).astype(f32)),
        be2=stack(lambda tp: tp["ln2_bias"].reshape(1, -1).astype(f32)),
    )


# ---------------------------------------------------------------------------
# Pure-JAX f32 references (PyTorch semantics) for correctness checks
# ---------------------------------------------------------------------------
def transformer_block_ref(x_bse, tp, num_heads):
    B, S, E = x_bse.shape
    H, D = num_heads, E // num_heads
    x = x_bse
    qkv = x @ tp["in_proj_weight"].T + tp["in_proj_bias"]
    q, k, v = qkv[..., :E], qkv[..., E:2 * E], qkv[..., 2 * E:]

    def split(t):  # (B, S, E) -> (B, H, S, D)
        return t.reshape(B, S, H, D).transpose(0, 2, 1, 3)

    qh, kh, vh = split(q), split(k), split(v)
    s = jnp.einsum("bhqd,bhkd->bhqk", qh, kh) / jnp.sqrt(jnp.float32(D))
    p = jax.nn.softmax(s, axis=-1)
    ctx = jnp.einsum("bhqk,bhkd->bhqd", p, vh).transpose(0, 2, 1, 3).reshape(B, S, E)
    attn = ctx @ tp["out_proj_weight"].T + tp["out_proj_bias"]

    out1 = _layernorm(x + attn, tp["ln1_weight"], tp["ln1_bias"])
    h1 = jnp.maximum(out1 @ tp["linear1_weight"].T + tp["linear1_bias"], 0.0)
    ffn = h1 @ tp["linear2_weight"].T + tp["linear2_bias"]
    return _layernorm(out1 + ffn, tp["ln2_weight"], tp["ln2_bias"])


def transformer_encoder_ref(x, tenc, num_heads):
    h = x @ tenc["embedding_weight"].T + tenc["embedding_bias"]
    h = h[:, None, :]                       # batch-first (N, 1, E) == torch (1, N, E)
    for tp in tenc["layers"]:
        h = transformer_block_ref(h, tp, num_heads)
    return h[:, 0, :]


def _assert_close(out, ref, name):
    if not jnp.allclose(out, ref, rtol=_TOL, atol=_TOL):
        diff = float(jnp.max(jnp.abs(out - ref)))
        raise AssertionError(f"{name}: Pallas kernel does not match reference "
                             f"(max abs diff {diff:.3e})")


if __name__ == "__main__":
    # Lane-dense model dims (multiples of 128).
    embed_dim, num_heads, ff_dim = 128, 4, 256
    input_dim, num_layers = 16, 2

    key = jax.random.PRNGKey(0)
    k_blk, k_enc, k_x1, k_x2 = jax.random.split(key, 4)

    # ---- check 1: standalone TransformerBlock (general S > 1 attention path) ----
    B, S = 4, 8
    tp = init_block_params(k_blk, embed_dim, num_heads, ff_dim)
    kp = prepare_block_kernel_params(tp, num_heads)
    x_bse = jax.random.normal(k_x1, (B, S, embed_dim), dtype=jnp.float32)
    blk_out = jax.block_until_ready(transformer_block_bse(x_bse, kp, num_heads))
    _assert_close(blk_out, transformer_block_ref(x_bse, tp, num_heads), "TransformerBlock")

    # ---- check 2: full TransformerEncoder forward (single fused pallas_call) ----
    N = 64
    tenc = init_encoder_params(k_enc, input_dim, embed_dim, num_heads, ff_dim, num_layers)
    kenc = prepare_encoder_kernel_params(tenc)
    x = jax.random.normal(k_x2, (N, input_dim), dtype=jnp.float32)
    enc_out = jax.block_until_ready(transformer_encoder(x, kenc))
    _assert_close(enc_out, transformer_encoder_ref(x, tenc, num_heads), "TransformerEncoder")

    print("KERNEL_OK")
</pallas_src>

<mosaic_0001>
module attributes {stable_mosaic.version = 11 : i64} {
  func.func @transformer_block_kernel(%arg0: i32, %arg1: memref<4x8x128xf32, #tpu.memory_space<vmem>>, %arg2: memref<128x384xbf16, #tpu.memory_space<vmem>>, %arg3: memref<1x384xf32, #tpu.memory_space<vmem>>, %arg4: memref<128x128xbf16, #tpu.memory_space<vmem>>, %arg5: memref<1x128xf32, #tpu.memory_space<vmem>>, %arg6: memref<1x128xf32, #tpu.memory_space<vmem>>, %arg7: memref<1x128xf32, #tpu.memory_space<vmem>>, %arg8: memref<128x256xbf16, #tpu.memory_space<vmem>>, %arg9: memref<1x256xf32, #tpu.memory_space<vmem>>, %arg10: memref<256x128xbf16, #tpu.memory_space<vmem>>, %arg11: memref<1x128xf32, #tpu.memory_space<vmem>>, %arg12: memref<1x128xf32, #tpu.memory_space<vmem>>, %arg13: memref<1x128xf32, #tpu.memory_space<vmem>>, %arg14: memref<4x8x128xf32, #tpu.memory_space<vmem>>) attributes {dimension_semantics = [#tpu.dimension_semantics<parallel>], iteration_bounds = array<i64: 1>, scalar_prefetch = 0 : i64, scratch_operands = 0 : i64, tpu.core_type = #tpu.core_type<tc>, window_params = [{transform_indices = @transform_0, window_bounds = array<i64: 4, 8, 128>}, {pipeline_mode = #tpu.pipeline_mode<synchronous>, transform_indices = @transform_1, window_bounds = array<i64: 128, 384>}, {pipeline_mode = #tpu.pipeline_mode<synchronous>, transform_indices = @transform_2, window_bounds = array<i64: 1, 384>}, {pipeline_mode = #tpu.pipeline_mode<synchronous>, transform_indices = @transform_3, window_bounds = array<i64: 128, 128>}, {pipeline_mode = #tpu.pipeline_mode<synchronous>, transform_indices = @transform_4, window_bounds = array<i64: 1, 128>}, {pipeline_mode = #tpu.pipeline_mode<synchronous>, transform_indices = @transform_5, window_bounds = array<i64: 1, 128>}, {pipeline_mode = #tpu.pipeline_mode<synchronous>, transform_indices = @transform_6, window_bounds = array<i64: 1, 128>}, {pipeline_mode = #tpu.pipeline_mode<synchronous>, transform_indices = @transform_7, window_bounds = array<i64: 128, 256>}, {pipeline_mode = #tpu.pipeline_mode<synchronous>, transform_indices = @transform_8, window_bounds = array<i64: 1, 256>}, {pipeline_mode = #tpu.pipeline_mode<synchronous>, transform_indices = @transform_9, window_bounds = array<i64: 256, 128>}, {pipeline_mode = #tpu.pipeline_mode<synchronous>, transform_indices = @transform_10, window_bounds = array<i64: 1, 128>}, {pipeline_mode = #tpu.pipeline_mode<synchronous>, transform_indices = @transform_11, window_bounds = array<i64: 1, 128>}, {pipeline_mode = #tpu.pipeline_mode<synchronous>, transform_indices = @transform_12, window_bounds = array<i64: 1, 128>}, {transform_indices = @transform_13, window_bounds = array<i64: 4, 8, 128>}]} {
    %c0 = arith.constant 0 : index
    %c0_0 = arith.constant 0 : index
    %c0_1 = arith.constant 0 : index
    %0 = vector.load %arg1[%c0, %c0_0, %c0_1] : memref<4x8x128xf32, #tpu.memory_space<vmem>>, vector<4x8x128xf32>
    %1 = vector.shape_cast %0 : vector<4x8x128xf32> to vector<32x128xf32>
    %2 = arith.truncf %1 : vector<32x128xf32> to vector<32x128xbf16>
    %c0_2 = arith.constant 0 : index
    %c0_3 = arith.constant 0 : index
    %3 = vector.load %arg2[%c0_2, %c0_3] : memref<128x384xbf16, #tpu.memory_space<vmem>>, vector<128x384xbf16>
    %cst = arith.constant dense<0.000000e+00> : vector<32x384xf32>
    %4 = tpu.matmul %2, %3, %cst {dimension_numbers = #tpu.dot_dimension_numbers<[1], [0], [0], [1], [0, 0, 1, 1], [], []>} : vector<32x128xbf16>, vector<128x384xbf16>, vector<32x384xf32> -> vector<32x384xf32>
    %c0_4 = arith.constant 0 : index
    %c0_5 = arith.constant 0 : index
    %5 = vector.load %arg3[%c0_4, %c0_5] : memref<1x384xf32, #tpu.memory_space<vmem>>, vector<1x384xf32>
    %6 = vector.broadcast %5 : vector<1x384xf32> to vector<32x384xf32>
    %7 = arith.addf %4, %6 : vector<32x384xf32>
    %8 = vector.extract_strided_slice %7 {offsets = [0, 0], sizes = [32, 128], strides = [1, 1]} : vector<32x384xf32> to vector<32x128xf32>
    %9 = vector.extract_strided_slice %7 {offsets = [0, 128], sizes = [32, 128], strides = [1, 1]} : vector<32x384xf32> to vector<32x128xf32>
    %10 = vector.extract_strided_slice %7 {offsets = [0, 256], sizes = [32, 128], strides = [1, 1]} : vector<32x384xf32> to vector<32x128xf32>
    %11 = vector.shape_cast %8 : vector<32x128xf32> to vector<4x8x128xf32>
    %12 = vector.shape_cast %9 : vector<32x128xf32> to vector<4x8x128xf32>
    %13 = vector.shape_cast %10 : vector<32x128xf32> to vector<4x8x128xf32>
    %14 = vector.extract_strided_slice %11 {offsets = [0, 0, 0], sizes = [4, 8, 32], strides = [1, 1, 1]} : vector<4x8x128xf32> to vector<4x8x32xf32>
    %15 = vector.extract_strided_slice %11 {offsets = [0, 0, 32], sizes = [4, 8, 32], strides = [1, 1, 1]} : vector<4x8x128xf32> to vector<4x8x32xf32>
    %16 = vector.extract_strided_slice %11 {offsets = [0, 0, 64], sizes = [4, 8, 32], strides = [1, 1, 1]} : vector<4x8x128xf32> to vector<4x8x32xf32>
    %17 = vector.extract_strided_slice %11 {offsets = [0, 0, 96], sizes = [4, 8, 32], strides = [1, 1, 1]} : vector<4x8x128xf32> to vector<4x8x32xf32>
    %18 = tpu.concatenate %14, %15, %16, %17 in 0 : vector<4x8x32xf32>, vector<4x8x32xf32>, vector<4x8x32xf32>, vector<4x8x32xf32> -> vector<16x8x32xf32>
    %19 = vector.extract_strided_slice %12 {offsets = [0, 0, 0], sizes = [4, 8, 32], strides = [1, 1, 1]} : vector<4x8x128xf32> to vector<4x8x32xf32>
    %20 = vector.extract_strided_slice %12 {offsets = [0, 0, 32], sizes = [4, 8, 32], strides = [1, 1, 1]} : vector<4x8x128xf32> to vector<4x8x32xf32>
    %21 = vector.extract_strided_slice %12 {offsets = [0, 0, 64], sizes = [4, 8, 32], strides = [1, 1, 1]} : vector<4x8x128xf32> to vector<4x8x32xf32>
    %22 = vector.extract_strided_slice %12 {offsets = [0, 0, 96], sizes = [4, 8, 32], strides = [1, 1, 1]} : vector<4x8x128xf32> to vector<4x8x32xf32>
    %23 = tpu.concatenate %19, %20, %21, %22 in 0 : vector<4x8x32xf32>, vector<4x8x32xf32>, vector<4x8x32xf32>, vector<4x8x32xf32> -> vector<16x8x32xf32>
    %24 = vector.extract_strided_slice %13 {offsets = [0, 0, 0], sizes = [4, 8, 32], strides = [1, 1, 1]} : vector<4x8x128xf32> to vector<4x8x32xf32>
    %25 = vector.extract_strided_slice %13 {offsets = [0, 0, 32], sizes = [4, 8, 32], strides = [1, 1, 1]} : vector<4x8x128xf32> to vector<4x8x32xf32>
    %26 = vector.extract_strided_slice %13 {offsets = [0, 0, 64], sizes = [4, 8, 32], strides = [1, 1, 1]} : vector<4x8x128xf32> to vector<4x8x32xf32>
    %27 = vector.extract_strided_slice %13 {offsets = [0, 0, 96], sizes = [4, 8, 32], strides = [1, 1, 1]} : vector<4x8x128xf32> to vector<4x8x32xf32>
    %28 = tpu.concatenate %24, %25, %26, %27 in 0 : vector<4x8x32xf32>, vector<4x8x32xf32>, vector<4x8x32xf32>, vector<4x8x32xf32> -> vector<16x8x32xf32>
    %29 = arith.truncf %18 : vector<16x8x32xf32> to vector<16x8x32xbf16>
    %30 = arith.truncf %23 : vector<16x8x32xf32> to vector<16x8x32xbf16>
    "tpu.trace_start"() <{level = 10 : i32, message = "bqd,bkd->bqk"}> : () -> ()
    %cst_6 = arith.constant dense<0.000000e+00> : vector<16x8x8xf32>
    %31 = tpu.matmul %29, %30, %cst_6 {dimension_numbers = #tpu.dot_dimension_numbers<[2], [2], [1], [1], [0, 0, 0, 1, 1, 1], [0], [0]>} : vector<16x8x32xbf16>, vector<16x8x32xbf16>, vector<16x8x8xf32> -> vector<16x8x8xf32>
    "tpu.trace_stop"() : () -> ()
    %cst_7 = arith.constant dense<0xFF800000> : vector<16x8xf32>
    %32 = vector.multi_reduction <maximumf>, %31, %cst_7 [2] : vector<16x8x8xf32> to vector<16x8xf32>
    %33 = vector.shape_cast %32 : vector<16x8xf32> to vector<16x8x1xf32>
    %34 = vector.broadcast %33 : vector<16x8x1xf32> to vector<16x8x8xf32>
    %35 = arith.subf %31, %34 : vector<16x8x8xf32>
    %36 = math.exp %35 : vector<16x8x8xf32>
    %cst_8 = arith.constant dense<0.000000e+00> : vector<16x8xf32>
    %37 = vector.multi_reduction <add>, %36, %cst_8 [2] : vector<16x8x8xf32> to vector<16x8xf32>
    %38 = vector.shape_cast %37 : vector<16x8xf32> to vector<16x8x1xf32>
    %39 = tpu.reciprocal %38 {approx = true} : vector<16x8x1xf32> -> vector<16x8x1xf32>
    %40 = vector.broadcast %39 : vector<16x8x1xf32> to vector<16x8x8xf32>
    %41 = arith.mulf %36, %40 : vector<16x8x8xf32>
    %42 = arith.truncf %41 : vector<16x8x8xf32> to vector<16x8x8xbf16>
    %43 = arith.truncf %28 : vector<16x8x32xf32> to vector<16x8x32xbf16>
    "tpu.trace_start"() <{level = 10 : i32, message = "bqk,bkd->bqd"}> : () -> ()
    %cst_9 = arith.constant dense<0.000000e+00> : vector<16x8x32xf32>
    %44 = tpu.matmul %42, %43, %cst_9 {dimension_numbers = #tpu.dot_dimension_numbers<[2], [1], [1], [2], [0, 0, 0, 1, 1, 2], [0], [0]>} : vector<16x8x8xbf16>, vector<16x8x32xbf16>, vector<16x8x32xf32> -> vector<16x8x32xf32>
    "tpu.trace_stop"() : () -> ()
    %45 = vector.extract_strided_slice %44 {offsets = [0, 0, 0], sizes = [4, 8, 32], strides = [1, 1, 1]} : vector<16x8x32xf32> to vector<4x8x32xf32>
    %46 = vector.extract_strided_slice %44 {offsets = [4, 0, 0], sizes = [4, 8, 32], strides = [1, 1, 1]} : vector<16x8x32xf32> to vector<4x8x32xf32>
    %47 = vector.extract_strided_slice %44 {offsets = [8, 0, 0], sizes = [4, 8, 32], strides = [1, 1, 1]} : vector<16x8x32xf32> to vector<4x8x32xf32>
    %48 = vector.extract_strided_slice %44 {offsets = [12, 0, 0], sizes = [4, 8, 32], strides = [1, 1, 1]} : vector<16x8x32xf32> to vector<4x8x32xf32>
    %49 = tpu.concatenate %45, %46, %47, %48 in 2 : vector<4x8x32xf32>, vector<4x8x32xf32>, vector<4x8x32xf32>, vector<4x8x32xf32> -> vector<4x8x128xf32>
    %50 = vector.shape_cast %49 : vector<4x8x128xf32> to vector<32x128xf32>
    %51 = arith.truncf %50 : vector<32x128xf32> to vector<32x128xbf16>
    %c0_10 = arith.constant 0 : index
    %c0_11 = arith.constant 0 : index
    %52 = vector.load %arg4[%c0_10, %c0_11] : memref<128x128xbf16, #tpu.memory_space<vmem>>, vector<128x128xbf16>
    %cst_12 = arith.constant dense<0.000000e+00> : vector<32x128xf32>
    %53 = tpu.matmul %51, %52, %cst_12 {dimension_numbers = #tpu.dot_dimension_numbers<[1], [0], [0], [1], [0, 0, 1, 1], [], []>} : vector<32x128xbf16>, vector<128x128xbf16>, vector<32x128xf32> -> vector<32x128xf32>
    %c0_13 = arith.constant 0 : index
    %c0_14 = arith.constant 0 : index
    %54 = vector.load %arg5[%c0_13, %c0_14] : memref<1x128xf32, #tpu.memory_space<vmem>>, vector<1x128xf32>
    %55 = vector.broadcast %54 : vector<1x128xf32> to vector<32x128xf32>
    %56 = arith.addf %53, %55 : vector<32x128xf32>
    %57 = arith.addf %1, %56 : vector<32x128xf32>
    %c0_15 = arith.constant 0 : index
    %c0_16 = arith.constant 0 : index
    %58 = vector.load %arg6[%c0_15, %c0_16] : memref<1x128xf32, #tpu.memory_space<vmem>>, vector<1x128xf32>
    %c0_17 = arith.constant 0 : index
    %c0_18 = arith.constant 0 : index
    %59 = vector.load %arg7[%c0_17, %c0_18] : memref<1x128xf32, #tpu.memory_space<vmem>>, vector<1x128xf32>
    %cst_19 = arith.constant dense<0.000000e+00> : vector<32xf32>
    %60 = vector.multi_reduction <add>, %57, %cst_19 [1] : vector<32x128xf32> to vector<32xf32>
    %61 = vector.shape_cast %60 : vector<32xf32> to vector<32x1xf32>
    %cst_20 = arith.constant 1.280000e+02 : f32
    %62 = vector.broadcast %cst_20 : f32 to vector<32x1xf32>
    %63 = arith.divf %61, %62 : vector<32x1xf32>
    %64 = vector.broadcast %63 : vector<32x1xf32> to vector<32x128xf32>
    %65 = arith.subf %57, %64 : vector<32x128xf32>
    %66 = arith.mulf %65, %65 : vector<32x128xf32>
    %cst_21 = arith.constant dense<0.000000e+00> : vector<32xf32>
    %67 = vector.multi_reduction <add>, %66, %cst_21 [1] : vector<32x128xf32> to vector<32xf32>
    %68 = vector.shape_cast %67 : vector<32xf32> to vector<32x1xf32>
    %cst_22 = arith.constant 1.280000e+02 : f32
    %69 = vector.broadcast %cst_22 : f32 to vector<32x1xf32>
    %70 = arith.divf %68, %69 : vector<32x1xf32>
    %71 = vector.broadcast %63 : vector<32x1xf32> to vector<32x128xf32>
    %72 = arith.subf %57, %71 : vector<32x128xf32>
    %cst_23 = arith.constant 9.99999974E-6 : f32
    %73 = vector.broadcast %cst_23 : f32 to vector<32x1xf32>
    %74 = arith.addf %70, %73 : vector<32x1xf32>
    %75 = math.rsqrt %74 : vector<32x1xf32>
    %76 = vector.broadcast %75 : vector<32x1xf32> to vector<32x128xf32>
    %77 = arith.mulf %72, %76 : vector<32x128xf32>
    %78 = vector.broadcast %58 : vector<1x128xf32> to vector<32x128xf32>
    %79 = arith.mulf %77, %78 : vector<32x128xf32>
    %80 = vector.broadcast %59 : vector<1x128xf32> to vector<32x128xf32>
    %81 = arith.addf %79, %80 : vector<32x128xf32>
    %82 = arith.truncf %81 : vector<32x128xf32> to vector<32x128xbf16>
    %c0_24 = arith.constant 0 : index
    %c0_25 = arith.constant 0 : index
    %83 = vector.load %arg8[%c0_24, %c0_25] : memref<128x256xbf16, #tpu.memory_space<vmem>>, vector<128x256xbf16>
    %cst_26 = arith.constant dense<0.000000e+00> : vector<32x256xf32>
    %84 = tpu.matmul %82, %83, %cst_26 {dimension_numbers = #tpu.dot_dimension_numbers<[1], [0], [0], [1], [0, 0, 1, 1], [], []>} : vector<32x128xbf16>, vector<128x256xbf16>, vector<32x256xf32> -> vector<32x256xf32>
    %c0_27 = arith.constant 0 : index
    %c0_28 = arith.constant 0 : index
    %85 = vector.load %arg9[%c0_27, %c0_28] : memref<1x256xf32, #tpu.memory_space<vmem>>, vector<1x256xf32>
    %86 = vector.broadcast %85 : vector<1x256xf32> to vector<32x256xf32>
    %87 = arith.addf %84, %86 : vector<32x256xf32>
    %cst_29 = arith.constant 0.000000e+00 : f32
    %88 = vector.broadcast %cst_29 : f32 to vector<32x256xf32>
    %89 = arith.maximumf %87, %88 : vector<32x256xf32>
    %90 = arith.truncf %89 : vector<32x256xf32> to vector<32x256xbf16>
    %c0_30 = arith.constant 0 : index
    %c0_31 = arith.constant 0 : index
    %91 = vector.load %arg10[%c0_30, %c0_31] : memref<256x128xbf16, #tpu.memory_space<vmem>>, vector<256x128xbf16>
    %cst_32 = arith.constant dense<0.000000e+00> : vector<32x128xf32>
    %92 = tpu.matmul %90, %91, %cst_32 {dimension_numbers = #tpu.dot_dimension_numbers<[1], [0], [0], [1], [0, 0, 1, 1], [], []>} : vector<32x256xbf16>, vector<256x128xbf16>, vector<32x128xf32> -> vector<32x128xf32>
    %c0_33 = arith.constant 0 : index
    %c0_34 = arith.constant 0 : index
    %93 = vector.load %arg11[%c0_33, %c0_34] : memref<1x128xf32, #tpu.memory_space<vmem>>, vector<1x128xf32>
    %94 = vector.broadcast %93 : vector<1x128xf32> to vector<32x128xf32>
    %95 = arith.addf %92, %94 : vector<32x128xf32>
    %96 = arith.addf %81, %95 : vector<32x128xf32>
    %c0_35 = arith.constant 0 : index
    %c0_36 = arith.constant 0 : index
    %97 = vector.load %arg12[%c0_35, %c0_36] : memref<1x128xf32, #tpu.memory_space<vmem>>, vector<1x128xf32>
    %c0_37 = arith.constant 0 : index
    %c0_38 = arith.constant 0 : index
    %98 = vector.load %arg13[%c0_37, %c0_38] : memref<1x128xf32, #tpu.memory_space<vmem>>, vector<1x128xf32>
    %cst_39 = arith.constant dense<0.000000e+00> : vector<32xf32>
    %99 = vector.multi_reduction <add>, %96, %cst_39 [1] : vector<32x128xf32> to vector<32xf32>
    %100 = vector.shape_cast %99 : vector<32xf32> to vector<32x1xf32>
    %cst_40 = arith.constant 1.280000e+02 : f32
    %101 = vector.broadcast %cst_40 : f32 to vector<32x1xf32>
    %102 = arith.divf %100, %101 : vector<32x1xf32>
    %103 = vector.broadcast %102 : vector<32x1xf32> to vector<32x128xf32>
    %104 = arith.subf %96, %103 : vector<32x128xf32>
    %105 = arith.mulf %104, %104 : vector<32x128xf32>
    %cst_41 = arith.constant dense<0.000000e+00> : vector<32xf32>
    %106 = vector.multi_reduction <add>, %105, %cst_41 [1] : vector<32x128xf32> to vector<32xf32>
    %107 = vector.shape_cast %106 : vector<32xf32> to vector<32x1xf32>
    %cst_42 = arith.constant 1.280000e+02 : f32
    %108 = vector.broadcast %cst_42 : f32 to vector<32x1xf32>
    %109 = arith.divf %107, %108 : vector<32x1xf32>
    %110 = vector.broadcast %102 : vector<32x1xf32> to vector<32x128xf32>
    %111 = arith.subf %96, %110 : vector<32x128xf32>
    %cst_43 = arith.constant 9.99999974E-6 : f32
    %112 = vector.broadcast %cst_43 : f32 to vector<32x1xf32>
    %113 = arith.addf %109, %112 : vector<32x1xf32>
    %114 = math.rsqrt %113 : vector<32x1xf32>
    %115 = vector.broadcast %114 : vector<32x1xf32> to vector<32x128xf32>
    %116 = arith.mulf %111, %115 : vector<32x128xf32>
    %117 = vector.broadcast %97 : vector<1x128xf32> to vector<32x128xf32>
    %118 = arith.mulf %116, %117 : vector<32x128xf32>
    %119 = vector.broadcast %98 : vector<1x128xf32> to vector<32x128xf32>
    %120 = arith.addf %118, %119 : vector<32x128xf32>
    %121 = vector.shape_cast %120 : vector<32x128xf32> to vector<4x8x128xf32>
    %c0_44 = arith.constant 0 : index
    %c0_45 = arith.constant 0 : index
    %c0_46 = arith.constant 0 : index
    %122 = vector.load %arg14[%c0_44, %c0_45, %c0_46] : memref<4x8x128xf32, #tpu.memory_space<vmem>>, vector<4x8x128xf32>
    tpu.vector_store %arg14[%c0_44, %c0_45, %c0_46], %121 {strides = array<i32>} : memref<4x8x128xf32, #tpu.memory_space<vmem>>, vector<4x8x128xf32>,
    return
  }
  func.func @transform_0(%arg0: i32) -> (i32, i32, i32) {
    %c0_i32 = arith.constant 0 : i32
    %c0_i32_0 = arith.constant 0 : i32
    %c0_i32_1 = arith.constant 0 : i32
    return %arg0, %c0_i32, %c0_i32_0 : i32, i32, i32
  }
  func.func @transform_1(%arg0: i32) -> (i32, i32) {
    %c0_i32 = arith.constant 0 : i32
    %c0_i32_0 = arith.constant 0 : i32
    %c0_i32_1 = arith.constant 0 : i32
    return %c0_i32, %c0_i32_0 : i32, i32
  }
  func.func @transform_2(%arg0: i32) -> (i32, i32) {
    %c0_i32 = arith.constant 0 : i32
    %c0_i32_0 = arith.constant 0 : i32
    %c0_i32_1 = arith.constant 0 : i32
    return %c0_i32, %c0_i32_0 : i32, i32
  }
  func.func @transform_3(%arg0: i32) -> (i32, i32) {
    %c0_i32 = arith.constant 0 : i32
    %c0_i32_0 = arith.constant 0 : i32
    %c0_i32_1 = arith.constant 0 : i32
    return %c0_i32, %c0_i32_0 : i32, i32
  }
  func.func @transform_4(%arg0: i32) -> (i32, i32) {
    %c0_i32 = arith.constant 0 : i32
    %c0_i32_0 = arith.constant 0 : i32
    %c0_i32_1 = arith.constant 0 : i32
    return %c0_i32, %c0_i32_0 : i32, i32
  }
  func.func @transform_5(%arg0: i32) -> (i32, i32) {
    %c0_i32 = arith.constant 0 : i32
    %c0_i32_0 = arith.constant 0 : i32
    %c0_i32_1 = arith.constant 0 : i32
    return %c0_i32, %c0_i32_0 : i32, i32
  }
  func.func @transform_6(%arg0: i32) -> (i32, i32) {
    %c0_i32 = arith.constant 0 : i32
    %c0_i32_0 = arith.constant 0 : i32
    %c0_i32_1 = arith.constant 0 : i32
    return %c0_i32, %c0_i32_0 : i32, i32
  }
  func.func @transform_7(%arg0: i32) -> (i32, i32) {
    %c0_i32 = arith.constant 0 : i32
    %c0_i32_0 = arith.constant 0 : i32
    %c0_i32_1 = arith.constant 0 : i32
    return %c0_i32, %c0_i32_0 : i32, i32
  }
  func.func @transform_8(%arg0: i32) -> (i32, i32) {
    %c0_i32 = arith.constant 0 : i32
    %c0_i32_0 = arith.constant 0 : i32
    %c0_i32_1 = arith.constant 0 : i32
    return %c0_i32, %c0_i32_0 : i32, i32
  }
  func.func @transform_9(%arg0: i32) -> (i32, i32) {
    %c0_i32 = arith.constant 0 : i32
    %c0_i32_0 = arith.constant 0 : i32
    %c0_i32_1 = arith.constant 0 : i32
    return %c0_i32, %c0_i32_0 : i32, i32
  }
  func.func @transform_10(%arg0: i32) -> (i32, i32) {
    %c0_i32 = arith.constant 0 : i32
    %c0_i32_0 = arith.constant 0 : i32
    %c0_i32_1 = arith.constant 0 : i32
    return %c0_i32, %c0_i32_0 : i32, i32
  }
  func.func @transform_11(%arg0: i32) -> (i32, i32) {
    %c0_i32 = arith.constant 0 : i32
    %c0_i32_0 = arith.constant 0 : i32
    %c0_i32_1 = arith.constant 0 : i32
    return %c0_i32, %c0_i32_0 : i32, i32
  }
  func.func @transform_12(%arg0: i32) -> (i32, i32) {
    %c0_i32 = arith.constant 0 : i32
    %c0_i32_0 = arith.constant 0 : i32
    %c0_i32_1 = arith.constant 0 : i32
    return %c0_i32, %c0_i32_0 : i32, i32
  }
  func.func @transform_13(%arg0: i32) -> (i32, i32, i32) {
    %c0_i32 = arith.constant 0 : i32
    %c0_i32_0 = arith.constant 0 : i32
    %c0_i32_1 = arith.constant 0 : i32
    return %arg0, %c0_i32, %c0_i32_0 : i32, i32, i32
  }
}

module attributes {stable_mosaic.version = 11 : i64} {
  func.func @transformer_block_kernel(%arg0: i32, %arg1: memref<4x8x128xf32, #tpu.memory_space<vmem>>, %arg2: memref<128x384xbf16, #tpu.memory_space<vmem>>, %arg3: memref<1x384xf32, #tpu.memory_space<vmem>>, %arg4: memref<128x128xbf16, #tpu.memory_space<vmem>>, %arg5: memref<1x128xf32, #tpu.memory_space<vmem>>, %arg6: memref<1x128xf32, #tpu.memory_space<vmem>>, %arg7: memref<1x128xf32, #tpu.memory_space<vmem>>, %arg8: memref<128x256xbf16, #tpu.memory_space<vmem>>, %arg9: memref<1x256xf32, #tpu.memory_space<vmem>>, %arg10: memref<256x128xbf16, #tpu.memory_space<vmem>>, %arg11: memref<1x128xf32, #tpu.memory_space<vmem>>, %arg12: memref<1x128xf32, #tpu.memory_space<vmem>>, %arg13: memref<1x128xf32, #tpu.memory_space<vmem>>, %arg14: memref<4x8x128xf32, #tpu.memory_space<vmem>>) attributes {dimension_semantics = [#tpu.dimension_semantics<parallel>], iteration_bounds = array<i64: 1>, scalar_prefetch = 0 : i64, scratch_operands = 0 : i64, tpu.core_type = #tpu.core_type<tc>, window_params = [{transform_indices = @transform_0, window_bounds = array<i64: 4, 8, 128>}, {pipeline_mode = #tpu.pipeline_mode<synchronous>, transform_indices = @transform_1, window_bounds = array<i64: 128, 384>}, {pipeline_mode = #tpu.pipeline_mode<synchronous>, transform_indices = @transform_2, window_bounds = array<i64: 1, 384>}, {pipeline_mode = #tpu.pipeline_mode<synchronous>, transform_indices = @transform_3, window_bounds = array<i64: 128, 128>}, {pipeline_mode = #tpu.pipeline_mode<synchronous>, transform_indices = @transform_4, window_bounds = array<i64: 1, 128>}, {pipeline_mode = #tpu.pipeline_mode<synchronous>, transform_indices = @transform_5, window_bounds = array<i64: 1, 128>}, {pipeline_mode = #tpu.pipeline_mode<synchronous>, transform_indices = @transform_6, window_bounds = array<i64: 1, 128>}, {pipeline_mode = #tpu.pipeline_mode<synchronous>, transform_indices = @transform_7, window_bounds = array<i64: 128, 256>}, {pipeline_mode = #tpu.pipeline_mode<synchronous>, transform_indices = @transform_8, window_bounds = array<i64: 1, 256>}, {pipeline_mode = #tpu.pipeline_mode<synchronous>, transform_indices = @transform_9, window_bounds = array<i64: 256, 128>}, {pipeline_mode = #tpu.pipeline_mode<synchronous>, transform_indices = @transform_10, window_bounds = array<i64: 1, 128>}, {pipeline_mode = #tpu.pipeline_mode<synchronous>, transform_indices = @transform_11, window_bounds = array<i64: 1, 128>}, {pipeline_mode = #tpu.pipeline_mode<synchronous>, transform_indices = @transform_12, window_bounds = array<i64: 1, 128>}, {transform_indices = @transform_13, window_bounds = array<i64: 4, 8, 128>}]} {
    %c0 = arith.constant 0 : index
    %c0_0 = arith.constant 0 : index
    %c0_1 = arith.constant 0 : index
    %0 = vector.load %arg1[%c0, %c0_0, %c0_1] : memref<4x8x128xf32, #tpu.memory_space<vmem>>, vector<4x8x128xf32>
    %1 = vector.shape_cast %0 : vector<4x8x128xf32> to vector<32x128xf32>
    %2 = arith.truncf %1 : vector<32x128xf32> to vector<32x128xbf16>
    %c0_2 = arith.constant 0 : index
    %c0_3 = arith.constant 0 : index
    %3 = vector.load %arg2[%c0_2, %c0_3] : memref<128x384xbf16, #tpu.memory_space<vmem>>, vector<128x384xbf16>
    %cst = arith.constant dense<0.000000e+00> : vector<32x384xf32>
    %4 = tpu.matmul %2, %3, %cst {dimension_numbers = #tpu.dot_dimension_numbers<[1], [0], [0], [1], [0, 0, 1, 1], [], []>} : vector<32x128xbf16>, vector<128x384xbf16>, vector<32x384xf32> -> vector<32x384xf32>
    %c0_4 = arith.constant 0 : index
    %c0_5 = arith.constant 0 : index
    %5 = vector.load %arg3[%c0_4, %c0_5] : memref<1x384xf32, #tpu.memory_space<vmem>>, vector<1x384xf32>
    %6 = vector.broadcast %5 : vector<1x384xf32> to vector<32x384xf32>
    %7 = arith.addf %4, %6 : vector<32x384xf32>
    %8 = vector.extract_strided_slice %7 {offsets = [0, 0], sizes = [32, 128], strides = [1, 1]} : vector<32x384xf32> to vector<32x128xf32>
    %9 = vector.extract_strided_slice %7 {offsets = [0, 128], sizes = [32, 128], strides = [1, 1]} : vector<32x384xf32> to vector<32x128xf32>
    %10 = vector.extract_strided_slice %7 {offsets = [0, 256], sizes = [32, 128], strides = [1, 1]} : vector<32x384xf32> to vector<32x128xf32>
    %11 = vector.shape_cast %8 : vector<32x128xf32> to vector<4x8x128xf32>
    %12 = vector.shape_cast %9 : vector<32x128xf32> to vector<4x8x128xf32>
    %13 = vector.shape_cast %10 : vector<32x128xf32> to vector<4x8x128xf32>
    %14 = vector.extract_strided_slice %11 {offsets = [0, 0, 0], sizes = [4, 8, 32], strides = [1, 1, 1]} : vector<4x8x128xf32> to vector<4x8x32xf32>
    %15 = vector.extract_strided_slice %11 {offsets = [0, 0, 32], sizes = [4, 8, 32], strides = [1, 1, 1]} : vector<4x8x128xf32> to vector<4x8x32xf32>
    %16 = vector.extract_strided_slice %11 {offsets = [0, 0, 64], sizes = [4, 8, 32], strides = [1, 1, 1]} : vector<4x8x128xf32> to vector<4x8x32xf32>
    %17 = vector.extract_strided_slice %11 {offsets = [0, 0, 96], sizes = [4, 8, 32], strides = [1, 1, 1]} : vector<4x8x128xf32> to vector<4x8x32xf32>
    %18 = tpu.concatenate %14, %15, %16, %17 in 0 : vector<4x8x32xf32>, vector<4x8x32xf32>, vector<4x8x32xf32>, vector<4x8x32xf32> -> vector<16x8x32xf32>
    %19 = vector.extract_strided_slice %12 {offsets = [0, 0, 0], sizes = [4, 8, 32], strides = [1, 1, 1]} : vector<4x8x128xf32> to vector<4x8x32xf32>
    %20 = vector.extract_strided_slice %12 {offsets = [0, 0, 32], sizes = [4, 8, 32], strides = [1, 1, 1]} : vector<4x8x128xf32> to vector<4x8x32xf32>
    %21 = vector.extract_strided_slice %12 {offsets = [0, 0, 64], sizes = [4, 8, 32], strides = [1, 1, 1]} : vector<4x8x128xf32> to vector<4x8x32xf32>
    %22 = vector.extract_strided_slice %12 {offsets = [0, 0, 96], sizes = [4, 8, 32], strides = [1, 1, 1]} : vector<4x8x128xf32> to vector<4x8x32xf32>
    %23 = tpu.concatenate %19, %20, %21, %22 in 0 : vector<4x8x32xf32>, vector<4x8x32xf32>, vector<4x8x32xf32>, vector<4x8x32xf32> -> vector<16x8x32xf32>
    %24 = vector.extract_strided_slice %13 {offsets = [0, 0, 0], sizes = [4, 8, 32], strides = [1, 1, 1]} : vector<4x8x128xf32> to vector<4x8x32xf32>
    %25 = vector.extract_strided_slice %13 {offsets = [0, 0, 32], sizes = [4, 8, 32], strides = [1, 1, 1]} : vector<4x8x128xf32> to vector<4x8x32xf32>
    %26 = vector.extract_strided_slice %13 {offsets = [0, 0, 64], sizes = [4, 8, 32], strides = [1, 1, 1]} : vector<4x8x128xf32> to vector<4x8x32xf32>
    %27 = vector.extract_strided_slice %13 {offsets = [0, 0, 96], sizes = [4, 8, 32], strides = [1, 1, 1]} : vector<4x8x128xf32> to vector<4x8x32xf32>
    %28 = tpu.concatenate %24, %25, %26, %27 in 0 : vector<4x8x32xf32>, vector<4x8x32xf32>, vector<4x8x32xf32>, vector<4x8x32xf32> -> vector<16x8x32xf32>
    %29 = arith.truncf %18 : vector<16x8x32xf32> to vector<16x8x32xbf16>
    %30 = arith.truncf %23 : vector<16x8x32xf32> to vector<16x8x32xbf16>
    "tpu.trace_start"() <{level = 10 : i32, message = "bqd,bkd->bqk"}> : () -> ()
    %cst_6 = arith.constant dense<0.000000e+00> : vector<16x8x8xf32>
    %31 = tpu.matmul %29, %30, %cst_6 {dimension_numbers = #tpu.dot_dimension_numbers<[2], [2], [1], [1], [0, 0, 0, 1, 1, 1], [0], [0]>} : vector<16x8x32xbf16>, vector<16x8x32xbf16>, vector<16x8x8xf32> -> vector<16x8x8xf32>
    "tpu.trace_stop"() : () -> ()
    %cst_7 = arith.constant dense<0xFF800000> : vector<16x8xf32>
    %32 = vector.multi_reduction <maximumf>, %31, %cst_7 [2] : vector<16x8x8xf32> to vector<16x8xf32>
    %33 = vector.shape_cast %32 : vector<16x8xf32> to vector<16x8x1xf32>
    %34 = vector.broadcast %33 : vector<16x8x1xf32> to vector<16x8x8xf32>
    %35 = arith.subf %31, %34 : vector<16x8x8xf32>
    %36 = math.exp %35 : vector<16x8x8xf32>
    %cst_8 = arith.constant dense<0.000000e+00> : vector<16x8xf32>
    %37 = vector.multi_reduction <add>, %36, %cst_8 [2] : vector<16x8x8xf32> to vector<16x8xf32>
    %38 = vector.shape_cast %37 : vector<16x8xf32> to vector<16x8x1xf32>
    %39 = tpu.reciprocal %38 {approx = true} : vector<16x8x1xf32> -> vector<16x8x1xf32>
    %40 = vector.broadcast %39 : vector<16x8x1xf32> to vector<16x8x8xf32>
    %41 = arith.mulf %36, %40 : vector<16x8x8xf32>
    %42 = arith.truncf %41 : vector<16x8x8xf32> to vector<16x8x8xbf16>
    %43 = arith.truncf %28 : vector<16x8x32xf32> to vector<16x8x32xbf16>
    "tpu.trace_start"() <{level = 10 : i32, message = "bqk,bkd->bqd"}> : () -> ()
    %cst_9 = arith.constant dense<0.000000e+00> : vector<16x8x32xf32>
    %44 = tpu.matmul %42, %43, %cst_9 {dimension_numbers = #tpu.dot_dimension_numbers<[2], [1], [1], [2], [0, 0, 0, 1, 1, 2], [0], [0]>} : vector<16x8x8xbf16>, vector<16x8x32xbf16>, vector<16x8x32xf32> -> vector<16x8x32xf32>
    "tpu.trace_stop"() : () -> ()
    %45 = vector.extract_strided_slice %44 {offsets = [0, 0, 0], sizes = [4, 8, 32], strides = [1, 1, 1]} : vector<16x8x32xf32> to vector<4x8x32xf32>
    %46 = vector.extract_strided_slice %44 {offsets = [4, 0, 0], sizes = [4, 8, 32], strides = [1, 1, 1]} : vector<16x8x32xf32> to vector<4x8x32xf32>
    %47 = vector.extract_strided_slice %44 {offsets = [8, 0, 0], sizes = [4, 8, 32], strides = [1, 1, 1]} : vector<16x8x32xf32> to vector<4x8x32xf32>
    %48 = vector.extract_strided_slice %44 {offsets = [12, 0, 0], sizes = [4, 8, 32], strides = [1, 1, 1]} : vector<16x8x32xf32> to vector<4x8x32xf32>
    %49 = tpu.concatenate %45, %46, %47, %48 in 2 : vector<4x8x32xf32>, vector<4x8x32xf32>, vector<4x8x32xf32>, vector<4x8x32xf32> -> vector<4x8x128xf32>
    %50 = vector.shape_cast %49 : vector<4x8x128xf32> to vector<32x128xf32>
    %51 = arith.truncf %50 : vector<32x128xf32> to vector<32x128xbf16>
    %c0_10 = arith.constant 0 : index
    %c0_11 = arith.constant 0 : index
    %52 = vector.load %arg4[%c0_10, %c0_11] : memref<128x128xbf16, #tpu.memory_space<vmem>>, vector<128x128xbf16>
    %cst_12 = arith.constant dense<0.000000e+00> : vector<32x128xf32>
    %53 = tpu.matmul %51, %52, %cst_12 {dimension_numbers = #tpu.dot_dimension_numbers<[1], [0], [0], [1], [0, 0, 1, 1], [], []>} : vector<32x128xbf16>, vector<128x128xbf16>, vector<32x128xf32> -> vector<32x128xf32>
    %c0_13 = arith.constant 0 : index
    %c0_14 = arith.constant 0 : index
    %54 = vector.load %arg5[%c0_13, %c0_14] : memref<1x128xf32, #tpu.memory_space<vmem>>, vector<1x128xf32>
    %55 = vector.broadcast %54 : vector<1x128xf32> to vector<32x128xf32>
    %56 = arith.addf %53, %55 : vector<32x128xf32>
    %57 = arith.addf %1, %56 : vector<32x128xf32>
    %c0_15 = arith.constant 0 : index
    %c0_16 = arith.constant 0 : index
    %58 = vector.load %arg6[%c0_15, %c0_16] : memref<1x128xf32, #tpu.memory_space<vmem>>, vector<1x128xf32>
    %c0_17 = arith.constant 0 : index
    %c0_18 = arith.constant 0 : index
    %59 = vector.load %arg7[%c0_17, %c0_18] : memref<1x128xf32, #tpu.memory_space<vmem>>, vector<1x128xf32>
    %cst_19 = arith.constant dense<0.000000e+00> : vector<32xf32>
    %60 = vector.multi_reduction <add>, %57, %cst_19 [1] : vector<32x128xf32> to vector<32xf32>
    %61 = vector.shape_cast %60 : vector<32xf32> to vector<32x1xf32>
    %cst_20 = arith.constant 1.280000e+02 : f32
    %62 = vector.broadcast %cst_20 : f32 to vector<32x1xf32>
    %63 = arith.divf %61, %62 : vector<32x1xf32>
    %64 = vector.broadcast %63 : vector<32x1xf32> to vector<32x128xf32>
    %65 = arith.subf %57, %64 : vector<32x128xf32>
    %66 = arith.mulf %65, %65 : vector<32x128xf32>
    %cst_21 = arith.constant dense<0.000000e+00> : vector<32xf32>
    %67 = vector.multi_reduction <add>, %66, %cst_21 [1] : vector<32x128xf32> to vector<32xf32>
    %68 = vector.shape_cast %67 : vector<32xf32> to vector<32x1xf32>
    %cst_22 = arith.constant 1.280000e+02 : f32
    %69 = vector.broadcast %cst_22 : f32 to vector<32x1xf32>
    %70 = arith.divf %68, %69 : vector<32x1xf32>
    %71 = vector.broadcast %63 : vector<32x1xf32> to vector<32x128xf32>
    %72 = arith.subf %57, %71 : vector<32x128xf32>
    %cst_23 = arith.constant 9.99999974E-6 : f32
    %73 = vector.broadcast %cst_23 : f32 to vector<32x1xf32>
    %74 = arith.addf %70, %73 : vector<32x1xf32>
    %75 = math.rsqrt %74 : vector<32x1xf32>
    %76 = vector.broadcast %75 : vector<32x1xf32> to vector<32x128xf32>
    %77 = arith.mulf %72, %76 : vector<32x128xf32>
    %78 = vector.broadcast %58 : vector<1x128xf32> to vector<32x128xf32>
    %79 = arith.mulf %77, %78 : vector<32x128xf32>
    %80 = vector.broadcast %59 : vector<1x128xf32> to vector<32x128xf32>
    %81 = arith.addf %79, %80 : vector<32x128xf32>
    %82 = arith.truncf %81 : vector<32x128xf32> to vector<32x128xbf16>
    %c0_24 = arith.constant 0 : index
    %c0_25 = arith.constant 0 : index
    %83 = vector.load %arg8[%c0_24, %c0_25] : memref<128x256xbf16, #tpu.memory_space<vmem>>, vector<128x256xbf16>
    %cst_26 = arith.constant dense<0.000000e+00> : vector<32x256xf32>
    %84 = tpu.matmul %82, %83, %cst_26 {dimension_numbers = #tpu.dot_dimension_numbers<[1], [0], [0], [1], [0, 0, 1, 1], [], []>} : vector<32x128xbf16>, vector<128x256xbf16>, vector<32x256xf32> -> vector<32x256xf32>
    %c0_27 = arith.constant 0 : index
    %c0_28 = arith.constant 0 : index
    %85 = vector.load %arg9[%c0_27, %c0_28] : memref<1x256xf32, #tpu.memory_space<vmem>>, vector<1x256xf32>
    %86 = vector.broadcast %85 : vector<1x256xf32> to vector<32x256xf32>
    %87 = arith.addf %84, %86 : vector<32x256xf32>
    %cst_29 = arith.constant 0.000000e+00 : f32
    %88 = vector.broadcast %cst_29 : f32 to vector<32x256xf32>
    %89 = arith.maximumf %87, %88 : vector<32x256xf32>
    %90 = arith.truncf %89 : vector<32x256xf32> to vector<32x256xbf16>
    %c0_30 = arith.constant 0 : index
    %c0_31 = arith.constant 0 : index
    %91 = vector.load %arg10[%c0_30, %c0_31] : memref<256x128xbf16, #tpu.memory_space<vmem>>, vector<256x128xbf16>
    %cst_32 = arith.constant dense<0.000000e+00> : vector<32x128xf32>
    %92 = tpu.matmul %90, %91, %cst_32 {dimension_numbers = #tpu.dot_dimension_numbers<[1], [0], [0], [1], [0, 0, 1, 1], [], []>} : vector<32x256xbf16>, vector<256x128xbf16>, vector<32x128xf32> -> vector<32x128xf32>
    %c0_33 = arith.constant 0 : index
    %c0_34 = arith.constant 0 : index
    %93 = vector.load %arg11[%c0_33, %c0_34] : memref<1x128xf32, #tpu.memory_space<vmem>>, vector<1x128xf32>
    %94 = vector.broadcast %93 : vector<1x128xf32> to vector<32x128xf32>
    %95 = arith.addf %92, %94 : vector<32x128xf32>
    %96 = arith.addf %81, %95 : vector<32x128xf32>
    %c0_35 = arith.constant 0 : index
    %c0_36 = arith.constant 0 : index
    %97 = vector.load %arg12[%c0_35, %c0_36] : memref<1x128xf32, #tpu.memory_space<vmem>>, vector<1x128xf32>
    %c0_37 = arith.constant 0 : index
    %c0_38 = arith.constant 0 : index
    %98 = vector.load %arg13[%c0_37, %c0_38] : memref<1x128xf32, #tpu.memory_space<vmem>>, vector<1x128xf32>
    %cst_39 = arith.constant dense<0.000000e+00> : vector<32xf32>
    %99 = vector.multi_reduction <add>, %96, %cst_39 [1] : vector<32x128xf32> to vector<32xf32>
    %100 = vector.shape_cast %99 : vector<32xf32> to vector<32x1xf32>
    %cst_40 = arith.constant 1.280000e+02 : f32
    %101 = vector.broadcast %cst_40 : f32 to vector<32x1xf32>
    %102 = arith.divf %100, %101 : vector<32x1xf32>
    %103 = vector.broadcast %102 : vector<32x1xf32> to vector<32x128xf32>
    %104 = arith.subf %96, %103 : vector<32x128xf32>
    %105 = arith.mulf %104, %104 : vector<32x128xf32>
    %cst_41 = arith.constant dense<0.000000e+00> : vector<32xf32>
    %106 = vector.multi_reduction <add>, %105, %cst_41 [1] : vector<32x128xf32> to vector<32xf32>
    %107 = vector.shape_cast %106 : vector<32xf32> to vector<32x1xf32>
    %cst_42 = arith.constant 1.280000e+02 : f32
    %108 = vector.broadcast %cst_42 : f32 to vector<32x1xf32>
    %109 = arith.divf %107, %108 : vector<32x1xf32>
    %110 = vector.broadcast %102 : vector<32x1xf32> to vector<32x128xf32>
    %111 = arith.subf %96, %110 : vector<32x128xf32>
    %cst_43 = arith.constant 9.99999974E-6 : f32
    %112 = vector.broadcast %cst_43 : f32 to vector<32x1xf32>
    %113 = arith.addf %109, %112 : vector<32x1xf32>
    %114 = math.rsqrt %113 : vector<32x1xf32>
    %115 = vector.broadcast %114 : vector<32x1xf32> to vector<32x128xf32>
    %116 = arith.mulf %111, %115 : vector<32x128xf32>
    %117 = vector.broadcast %97 : vector<1x128xf32> to vector<32x128xf32>
    %118 = arith.mulf %116, %117 : vector<32x128xf32>
    %119 = vector.broadcast %98 : vector<1x128xf32> to vector<32x128xf32>
    %120 = arith.addf %118, %119 : vector<32x128xf32>
    %121 = vector.shape_cast %120 : vector<32x128xf32> to vector<4x8x128xf32>
    %c0_44 = arith.constant 0 : index
    %c0_45 = arith.constant 0 : index
    %c0_46 = arith.constant 0 : index
    %122 = vector.load %arg14[%c0_44, %c0_45, %c0_46] : memref<4x8x128xf32, #tpu.memory_space<vmem>>, vector<4x8x128xf32>
    tpu.vector_store %arg14[%c0_44, %c0_45, %c0_46], %121 {strides = array<i32>} : memref<4x8x128xf32, #tpu.memory_space<vmem>>, vector<4x8x128xf32>,
    return
  }
  func.func @transform_0(%arg0: i32) -> (i32, i32, i32) {
    %c0_i32 = arith.constant 0 : i32
    %c0_i32_0 = arith.constant 0 : i32
    %c0_i32_1 = arith.constant 0 : i32
    return %arg0, %c0_i32, %c0_i32_0 : i32, i32, i32
  }
  func.func @transform_1(%arg0: i32) -> (i32, i32) {
    %c0_i32 = arith.constant 0 : i32
    %c0_i32_0 = arith.constant 0 : i32
    %c0_i32_1 = arith.constant 0 : i32
    return %c0_i32, %c0_i32_0 : i32, i32
  }
  func.func @transform_2(%arg0: i32) -> (i32, i32) {
    %c0_i32 = arith.constant 0 : i32
    %c0_i32_0 = arith.constant 0 : i32
    %c0_i32_1 = arith.constant 0 : i32
    return %c0_i32, %c0_i32_0 : i32, i32
  }
  func.func @transform_3(%arg0: i32) -> (i32, i32) {
    %c0_i32 = arith.constant 0 : i32
    %c0_i32_0 = arith.constant 0 : i32
    %c0_i32_1 = arith.constant 0 : i32
    return %c0_i32, %c0_i32_0 : i32, i32
  }
  func.func @transform_4(%arg0: i32) -> (i32, i32) {
    %c0_i32 = arith.constant 0 : i32
    %c0_i32_0 = arith.constant 0 : i32
    %c0_i32_1 = arith.constant 0 : i32
    return %c0_i32, %c0_i32_0 : i32, i32
  }
  func.func @transform_5(%arg0: i32) -> (i32, i32) {
    %c0_i32 = arith.constant 0 : i32
    %c0_i32_0 = arith.constant 0 : i32
    %c0_i32_1 = arith.constant 0 : i32
    return %c0_i32, %c0_i32_0 : i32, i32
  }
  func.func @transform_6(%arg0: i32) -> (i32, i32) {
    %c0_i32 = arith.constant 0 : i32
    %c0_i32_0 = arith.constant 0 : i32
    %c0_i32_1 = arith.constant 0 : i32
    return %c0_i32, %c0_i32_0 : i32, i32
  }
  func.func @transform_7(%arg0: i32) -> (i32, i32) {
    %c0_i32 = arith.constant 0 : i32
    %c0_i32_0 = arith.constant 0 : i32
    %c0_i32_1 = arith.constant 0 : i32
    return %c0_i32, %c0_i32_0 : i32, i32
  }
  func.func @transform_8(%arg0: i32) -> (i32, i32) {
    %c0_i32 = arith.constant 0 : i32
    %c0_i32_0 = arith.constant 0 : i32
    %c0_i32_1 = arith.constant 0 : i32
    return %c0_i32, %c0_i32_0 : i32, i32
  }
  func.func @transform_9(%arg0: i32) -> (i32, i32) {
    %c0_i32 = arith.constant 0 : i32
    %c0_i32_0 = arith.constant 0 : i32
    %c0_i32_1 = arith.constant 0 : i32
    return %c0_i32, %c0_i32_0 : i32, i32
  }
  func.func @transform_10(%arg0: i32) -> (i32, i32) {
    %c0_i32 = arith.constant 0 : i32
    %c0_i32_0 = arith.constant 0 : i32
    %c0_i32_1 = arith.constant 0 : i32
    return %c0_i32, %c0_i32_0 : i32, i32
  }
  func.func @transform_11(%arg0: i32) -> (i32, i32) {
    %c0_i32 = arith.constant 0 : i32
    %c0_i32_0 = arith.constant 0 : i32
    %c0_i32_1 = arith.constant 0 : i32
    return %c0_i32, %c0_i32_0 : i32, i32
  }
  func.func @transform_12(%arg0: i32) -> (i32, i32) {
    %c0_i32 = arith.constant 0 : i32
    %c0_i32_0 = arith.constant 0 : i32
    %c0_i32_1 = arith.constant 0 : i32
    return %c0_i32, %c0_i32_0 : i32, i32
  }
  func.func @transform_13(%arg0: i32) -> (i32, i32, i32) {
    %c0_i32 = arith.constant 0 : i32
    %c0_i32_0 = arith.constant 0 : i32
    %c0_i32_1 = arith.constant 0 : i32
    return %arg0, %c0_i32, %c0_i32_0 : i32, i32, i32
  }
}

</mosaic_0001>

<bundles_post_ra>
// kernel: tpu_custom_call.1
= control target key start
LH: loop header
LB: loop body
LE: loop exit
PB: predicated region body
PF: predicated region fallthrough
CT: control target
= control target key end

     0   :  { %18 = vsyncpa [#allocation3], 0  ;;  %s4423_s0 = inlined_call_operand.hbm [shape: f32[4,8,128], index: 0, kind: input, shape index: {}]   ;;  %s4424_s1 = inlined_call_operand.hbm [shape: bf16[128,384], index: 1, kind: input, shape index: {}]   ;;  %s4425_s2 = inlined_call_operand.vmem [shape: f32[1,384], index: 2, kind: input, shape index: {}]   ;;  %s4426_s3 = inlined_call_operand.hbm [shape: bf16[128,128], index: 3, kind: input, shape index: {}]   ;;  %s4427_s4 = inlined_call_operand.vmem [shape: f32[1,128], index: 4, kind: input, shape index: {}]   ;;  %s4428_s5 = inlined_call_operand.vmem [shape: f32[1,128], index: 5, kind: input, shape index: {}]   ;;  %s4429_s6 = inlined_call_operand.vmem [shape: f32[1,128], index: 6, kind: input, shape index: {}]   ;;  %s4430_s7 = inlined_call_operand.hbm [shape: bf16[128,256], index: 7, kind: input, shape index: {}]   ;;  %s4431_s8 = inlined_call_operand.vmem [shape: f32[1,256], index: 8, kind: input, shape index: {}]   ;;  %s4432_s9 = inlined_call_operand.hbm [shape: bf16[256,128], index: 9, kind: input, shape index: {}]   ;;  %s4433_s10 = inlined_call_operand.vmem [shape: f32[1,128], index: 10, kind: input, shape index: {}]   ;;  %s4434_s11 = inlined_call_operand.vmem [shape: f32[1,128], index: 11, kind: input, shape index: {}]   ;;  %s4435_s12 = inlined_call_operand.vmem [shape: f32[1,128], index: 12, kind: input, shape index: {}]   ;;  %s4436_s13 = inlined_call_operand.hbm [shape: f32[4,8,128], index: 13, kind: output, shape index: {}]  }
   0x1   :  { %19 = vsyncpa [#allocation6], 0 }
   0x2   :  { %20 = vsyncpa [#allocation9], 0 }
   0x3   :  { %21 = vsyncpa [#allocation4], 0  ;;  %s3816_s25 = smov [#allocation5]  }
   0x4   :  { %s39_s26 = sshll.u32 %s3816_s25, 4  ;;  %s40_s26 = int_to_ptr.vmem [resolvable:$true] %s39_s26 }
   0x5   :  { %s3696_s27 = scalar_lea.vmem %s40_s26, 3072  ;;  %p3701_p1 = scmp.lt.s32.totalorder %s40_s26, %s40_s26 }
   0x6   :  { %p3697_p0 = scmp.ne.s32.totalorder %s40_s26, %s3696_s27  ;;  %p3702_p2 = scmp.lt.s32.totalorder %s3696_s27, %s3696_s27 }
   0x8   :  { %p3703_p3 = por %p3702_p2, %p3701_p1 }
   0xa   :  { %p3704_p4 = pnand %p3703_p3, %p3697_p0 }
   0xc   :  { %3707 = shalt.err (!%p3704_p4)
}
   0xd   :  { %s3817_s28 = smov 192   ;;  %s3818_s29 = smov 12  }
   0xe   :  { %45 = dma.hbm_to_vmem [thread:$0]  %s4424_s1, 3072, %s40_s26, [#allocation6], %s3817_s28, %s3817_s28, %s3818_s29  }
   0xf   :  { %s3819_s15 = smov [#allocation8]   ;;  %s3820_s17 = smov [#allocation2]  }
  0x10   :  { %s71_s16 = sshll.u32 %s3819_s15, 4  ;;  %s27_s18 = sshll.u32 %s3820_s17, 4  ;;  %s72_s16 = int_to_ptr.vmem [resolvable:$true] %s71_s16  ;;  %s28_s18 = int_to_ptr.vmem [resolvable:$true] %s27_s18 }
  0x11   :  { %s3716_s19 = scalar_lea.vmem %s72_s16, 2048  ;;  %p3721_p6 = scmp.lt.s32.totalorder %s72_s16, %s72_s16 }
  0x12   :  { %p3717_p5 = scmp.ne.s32.totalorder %s72_s16, %s3716_s19  ;;  %p3722_p7 = scmp.lt.s32.totalorder %s3716_s19, %s3716_s19 }
  0x14   :  { %p3723_p8 = por %p3722_p7, %p3721_p6 }
  0x16   :  { %p3724_p9 = pnand %p3723_p8, %p3717_p5 }
  0x18   :  { %3727 = shalt.err (!%p3724_p9)
}
  0x19   :  { %s3821_s20 = smov 128   ;;  %s3822_s21 = smov 8  }
  0x1a   :  { %77 = dma.hbm_to_vmem [thread:$0]  %s4430_s7, 2048, %s72_s16, [#allocation9], %s3821_s20, %s3821_s20, %s3822_s21  }
  0x1b   :  { %s3736_s1 = scalar_lea.vmem %s28_s18, 512  ;;  %p3741_p11 = scmp.lt.s32.totalorder %s28_s18, %s28_s18 }
  0x1c   :  { %p3737_p10 = scmp.ne.s32.totalorder %s28_s18, %s3736_s1  ;;  %p3742_p12 = scmp.lt.s32.totalorder %s3736_s1, %s3736_s1 }
  0x1e   :  { %p3743_p13 = por %p3742_p12, %p3741_p11 }
  0x20   :  { %p3744_p0 = pnand %p3743_p13, %p3737_p10 }
  0x22   :  { %3747 = shalt.err (!%p3744_p0)
}
  0x23   :  { %33 = dma.hbm_to_vmem [thread:$0]  %s4423_s0, 512, %s28_s18, [#allocation3], %s3821_s20, %s3821_s20, %s3822_s21  }
  0x24   :  { %s3823_s26 = smov [#allocation7]  }
  0x25   :  { %s53_s27 = sshll.u32 %s3823_s26, 4  ;;  %s54_s27 = int_to_ptr.vmem [resolvable:$true] %s53_s27 }
  0x26   :  { %s3756_s28 = scalar_lea.vmem %s54_s27, 1024  ;;  %p3761_p2 = scmp.lt.s32.totalorder %s54_s27, %s54_s27 }
  0x27   :  { %p3757_p1 = scmp.ne.s32.totalorder %s54_s27, %s3756_s28  ;;  %p3762_p3 = scmp.lt.s32.totalorder %s3756_s28, %s3756_s28 }
  0x29   :  { %p3763_p4 = por %p3762_p3, %p3761_p2 }
  0x2b   :  { %p3764_p5 = pnand %p3763_p4, %p3757_p1 }
  0x2d   :  { %3767 = shalt.err (!%p3764_p5)
}
  0x2e   :  { %s3824_s7 = smov 64   ;;  %s3825_s29 = smov 4  }
  0x2f   :  { %59 = dma.hbm_to_vmem [thread:$0]  %s4426_s3, 1024, %s54_s27, [#allocation6], %s3824_s7, %s3824_s7, %s3825_s29  }
  0x30   :  { %s3826_s15 = smov [#allocation10]  }
  0x31   :  { %s85_s0 = sshll.u32 %s3826_s15, 4  ;;  %s86_s0 = int_to_ptr.vmem [resolvable:$true] %s85_s0 }
  0x32   :  { %s3776_s16 = scalar_lea.vmem %s86_s0, 2048  ;;  %p3781_p7 = scmp.lt.s32.totalorder %s86_s0, %s86_s0 }
  0x33   :  { %p3777_p6 = scmp.ne.s32.totalorder %s86_s0, %s3776_s16  ;;  %p3782_p8 = scmp.lt.s32.totalorder %s3776_s16, %s3776_s16 }
  0x35   :  { %p3783_p9 = por %p3782_p8, %p3781_p7 }
  0x37   :  { %p3784_p10 = pnand %p3783_p9, %p3777_p6 }
  0x39   :  { %3787 = shalt.err (!%p3784_p10)
}
  0x3a   :  { %91 = dma.hbm_to_vmem [thread:$0]  %s4432_s9, 2048, %s86_s0, [#allocation9], %s3824_s7, %s3824_s7, %s3825_s29  }
  0x3b   :  { %3808 = dma.done.wait [#allocation3], 512  }
  0x3c   :  { %3809 = vsyncadd [#allocation3], 4294966784 }
  0x3d   :  { %3810 = dma.done.wait [#allocation6], 4096  }
  0x3e   :  { %3811 = vsyncadd [#allocation6], 4294963200 }
  0x3f   :  { %3812 = dma.done.wait [#allocation9], 4096  }
  0x40   :  { %3813 = vsyncadd [#allocation9], 4294963200  ;;  %v3827_v0 = vmov 0   ;;  %v3524_v1 = vld [vmem:[#allocation5 + $0xac] ss:$12 sps:$4 sm:$0xff]   ;;  %v114_v8 = vld [vmem:[#allocation2] sm:$0xff]  ;;  %v154_v32 = vlaneseq }
  0x41   :  { %329 = vmatprep.mubr.bf16.mxu0 %v3827_v0  ;;  %v3526_v2 = vld [vmem:[#allocation5 + $0xa8] ss:$12 sps:$4 sm:$0xff]   ;;  %297 = vmatprep.subr.bf16.mxu0 %v3524_v1  ;;  %v3529_v4 = vld [vmem:[#allocation5 + $0x90] ss:$12 sps:$4 sm:$0xff]   ;;  %v3532_v6 = vld [vmem:[#allocation5 + $0x78] ss:$12 sps:$4 sm:$0xff]  }
  0x42   :  { %v3527_v3 = vld [vmem:[#allocation5 + $0x94] ss:$12 sps:$4 sm:$0xff]   ;;  %298 = vmatpush1.bf16.msra.mxu0 %v3526_v2  ;;  %v3530_v5 = vld [vmem:[#allocation5 + $0x7c] ss:$12 sps:$4 sm:$0xff]   ;;  %v3533_v7 = vld [vmem:[#allocation5 + $0x64] ss:$12 sps:$4 sm:$0xff]  }
  0x43   :  { %299 = vmatprep.subr.bf16.mxu0 %v3527_v3  ;;  %v3535_v9 = vld [vmem:[#allocation5 + $0x60] ss:$12 sps:$4 sm:$0xff]   ;;  %v3548_v13 = vld [vmem:[#allocation5 + $0xb0] ss:$12 sps:$4 sm:$0xff]   ;;  %v3549_v14 = vld [vmem:[#allocation5 + $0x98] ss:$12 sps:$4 sm:$0xff]  }
  0x44   :  { %v3536_v10 = vld [vmem:[#allocation5 + $0x4c] ss:$12 sps:$4 sm:$0xff]   ;;  %v3538_v15 = vld [vmem:[#allocation5 + $0x48] ss:$12 sps:$4 sm:$0xff]   ;;  %3155 = vmatprep.subr.bf16.mxu1 %v3548_v13  ;;  %v3541_v18 = vld [vmem:[#allocation5 + $0x30] ss:$12 sps:$4 sm:$0xff]  }
  0x45   :  { %v115_v11 = vld [vmem:[#allocation2 + $0x8] sm:$0xff]  ;;  %v3539_v16 = vld [vmem:[#allocation5 + $0x34] ss:$12 sps:$4 sm:$0xff]   ;;  %3156 = vmatpush3.bf16.msra.mxu1 %v3548_v13  ;;  %v3544_v21 = vld [vmem:[#allocation5 + $0x18] ss:$12 sps:$4 sm:$0xff]   ;;  %v3828_v30 = vmov 0.0  }
  0x46   :  { %300 = vmatpush1.bf16.msra.mxu0 %v3529_v4  ;;  %v118_v12 = vpack.c.bf16 %v115_v11, %v114_v8  ;;  %3157 = vmatprep.subr.bf16.mxu1 %v3549_v14  ;;  %v3550_v17 = vld [vmem:[#allocation5 + $0x80] ss:$12 sps:$4 sm:$0xff]   ;;  %v3542_v19 = vld [vmem:[#allocation5 + $0x1c] ss:$12 sps:$4 sm:$0xff]   ;;  %v3545_v22 = vld [vmem:[#allocation5 + $0x4] ss:$12 sps:$4 sm:$0xff]  }
  0x47   :  { %301 = vmatprep.subr.bf16.mxu0 %v3530_v5  ;;  %v3551_v20 = vld [vmem:[#allocation5 + $0x68] ss:$12 sps:$4 sm:$0xff]   ;;  %v3552_v23 = vld [vmem:[#allocation5 + $0x50] ss:$12 sps:$4 sm:$0xff]   ;;  %v3547_v24 = vld [vmem:[#allocation5] ss:$12 sps:$4 sm:$0xff]  }
  0x48   :  { %3171 = vmatprep.mubr.bf16.mxu1 %v118_v12  ;;  %v116_v25 = vld [vmem:[#allocation2 + $0x10] sm:$0xff]  ;;  %v117_v26 = vld [vmem:[#allocation2 + $0x18] sm:$0xff]  ;;  %v3554_v29 = vld [vmem:[#allocation5 + $0x20] ss:$12 sps:$4 sm:$0xff]   ;;  %vm3829_vm0 = vmmov 0   ;;  %v3936_v33 = vshrl.u32 %v154_v32, 7 }
  0x49   :  { %3158 = vmatpush3.bf16.msra.mxu1 %v3549_v14  ;;  %v119_v27 = vpack.c.bf16 %v117_v26, %v116_v25  ;;  %v3553_v28 = vld [vmem:[#allocation5 + $0x38] ss:$12 sps:$4 sm:$0xff]   ;;  %v3555_v31 = vld [vmem:[#allocation5 + $0x8] ss:$12 sps:$4 sm:$0xff]   ;;  %v3942_v35 = vld [vmem:[%s4425_s2] sm:$0x7] }
  0x4a   :  { %302 = vmatpush1.bf16.msra.mxu0 %v3532_v6  ;;  %3159 = vmatprep.subr.bf16.mxu1 %v3550_v17  ;;  %v160_v34 = vsub.s32 1, %v3936_v33  ;;  %v156_v38 = vsub.s32 0, %v3936_v33  ;;  %vm551_vm1 = vcmask 261120   ;;  %s3830_s2 = smov 96   ;;  %s3831_s19 = smov 32   ;;  %v164_v8 = vsub.s32 2, %v3936_v33 }
  0x4b   :  { %303 = vmatprep.subr.bf16.mxu0 %v3533_v7  ;;  %vm1500_vm2 = vcmask 1043456   ;;  %vm1288_vm3 = vcmask 64512   ;;  %vm2286_vm4 = vcmask 523264   ;;  %vm2291_vm5 = vcmask 785408  }
  0x4c   :  { %v161_v36 = vrot.slane %v3942_v35, %v160_v34  ;;  %v157_v42 = vrot.slane %v3942_v35, %v156_v38 }
  0x4d   :  { %3160 = vmatpush3.bf16.msra.mxu1 %v3550_v17 }
  0x4e   :  { %304 = vmatpush1.bf16.msra.mxu0 %v3535_v9  ;;  %3161 = vmatprep.subr.bf16.mxu1 %v3551_v20  ;;  %v3985_v9 = vrot.slane %v3942_v35, %v164_v8 }
  0x4f   :  { %305 = vmatprep.subr.bf16.mxu0 %v3536_v10 }
  0x51   :  { %3162 = vmatpush3.bf16.msra.mxu1 %v3551_v20 }
  0x52   :  { %306 = vmatpush1.bf16.msra.mxu0 %v3538_v15  ;;  %3163 = vmatprep.subr.bf16.mxu1 %v3552_v23 }
  0x53   :  { %307 = vmatprep.subr.bf16.mxu0 %v3539_v16 }
  0x55   :  { %3164 = vmatpush3.bf16.msra.mxu1 %v3552_v23 }
  0x56   :  { %308 = vmatpush1.bf16.msra.mxu0 %v3541_v18  ;;  %3165 = vmatprep.subr.bf16.mxu1 %v3553_v28 }
  0x57   :  { %309 = vmatprep.subr.bf16.mxu0 %v3542_v19 }
  0x59   :  { %3166 = vmatpush3.bf16.msra.mxu1 %v3553_v28 }
  0x5a   :  { %310 = vmatpush1.bf16.msra.mxu0 %v3544_v21  ;;  %3167 = vmatprep.subr.bf16.mxu1 %v3554_v29 }
  0x5b   :  { %311 = vmatprep.subr.bf16.mxu0 %v3545_v22 }
  0x5d   :  { %3168 = vmatpush3.bf16.msra.mxu1 %v3554_v29 }
  0x5e   :  { %312 = vmatpush1.bf16.msra.mxu0 %v3547_v24  ;;  %3169 = vmatprep.subr.bf16.mxu1 %v3555_v31 }
  0x5f   :  { %3175 = vmatprep.subr.bf16.mxu0 %v3828_v30 }
  0x61   :  { %330 = vmatmul.mubr.bf16.vlgmr.msra.gmra.mxu0 %v118_v12  ;;  %3170 = vmatpush3.bf16.msra.mxu1 %v3555_v31 }
  0x62   :  { %339 = vmatprep.mubr.bf16.mxu0 %v3827_v0  ;;  %3187 = vmatprep.subr.bf16.mxu1 %v3828_v30 }
  0x64   :  { %3172 = vmatmul.mubr.bf16.vlgmr.msra.gmra.mxu1 %v119_v27 }
  0x65   :  { %3189 = vmatprep.mubr.msk.bf16.mxu1 %vm3829_vm0, %v3828_v30 }
  0x69   :  { %340 = vmatmul.mubr.bf16.gmra.mxu0 %v119_v27 }
  0x6a   :  { %3177 = vmatprep.mubr.msk.bf16.mxu0 %vm3829_vm0, %v3828_v30 }
 0x121   :  { %v331_v37 = vpop.f32.mrf.mxu0 }
 0x122   :  { %v332_v48 = vadd.f32 %v331_v37, %v157_v42 }
 0x123   :  { %v333_v39 = vpop.f32.mrf.mxu0 }
 0x124   :  { %v334_v40 = vadd.f32 %v333_v39, %v161_v36  ;;  %v519_v55 = vpack.c.bf16 %v332_v48, %v332_v48  ;;  %v3173_v10 = vpop.f32.mrf.mxu1 }
 0x125   :  { %v335_v41 = vpop.f32.mrf.mxu0  ;;  %v3988_v11 = vadd.f32 %v3173_v10, %v3985_v9 }
 0x126   :  { %v535_v43 = vpack.c.bf16 %v334_v40, %v334_v40  ;;  %v336_v49 = vadd.f32 %v335_v41, %v157_v42  ;;  %v3990_v12 = vpop.f32.mrf.mxu1 }
 0x127   :  { %v337_v44 = vpop.f32.mrf.mxu0 }
 0x128   :  { %v338_v45 = vadd.f32 %v337_v44, %v161_v36  ;;  %v556_v46 = vsel %vm551_vm1, %v535_v43, 0  ;;  %v3409_v56 = vpack.i.bf16 %v336_v49, %v332_v48  ;;  %v520_v5 = vpack.c.bf16 %v336_v49, %v336_v49  ;;  %v3174_v13 = vpop.f32.mrf.mxu1 }
 0x129   :  { %v341_v47 = vpop.f32.mrf.mxu0  ;;  %3176 = vmatpush3.bf16.xpose.msra.mxu0 %v556_v46  ;;  %v3993_v14 = vadd.f32 %v3174_v13, %v3985_v9 }
 0x12a   :  { %v3404_v50 = vpack.i.bf16 %v338_v45, %v334_v40  ;;  %3181 = vmatprep.subr.bf16.mxu0 %v3828_v30  ;;  %v536_v53 = vpack.c.bf16 %v338_v45, %v338_v45  ;;  %v342_v62 = vadd.f32 %v341_v47, %v157_v42 }
 0x12b   :  { %v343_v51 = vpop.f32.mrf.mxu0 }
 0x12c   :  { %v344_v52 = vadd.f32 %v343_v51, %v161_v36  ;;  %3405 = vrot.lane.b32.xlu0 %v3404_v50, %s3830_s2  ;;  %v602_v60 = vsel %vm551_vm1, %v536_v53, 0  ;;  %v521_v3 = vpack.c.bf16 %v342_v62, %v342_v62 }
 0x12d   :  { %v345_v54 = vpop.f32.mrf.mxu0 }
 0x12e   :  { %v537_v57 = vpack.c.bf16 %v344_v52, %v344_v52  ;;  %v346_v63 = vadd.f32 %v345_v54, %v157_v42 }
 0x12f   :  { %v347_v58 = vpop.f32.mrf.mxu0 }
 0x130   :  { %v348_v59 = vadd.f32 %v347_v58, %v161_v36  ;;  %3410 = vrot.lane.b32.xlu0 %v3409_v56, %s3830_s2  ;;  %3178 = vmatmul.mubr.msk.bf16.vlgmr.msra.gmra.mxu0 %vm551_vm1, %v519_v55  ;;  %v648_v61 = vsel %vm551_vm1, %v537_v57, 0  ;;  %v3419_v4 = vpack.i.bf16 %v346_v63, %v342_v62  ;;  %v522_v7 = vpack.c.bf16 %v346_v63, %v346_v63 }
 0x131   :  { %3182 = vmatpush3.bf16.xpose.msra.mxu0 %v602_v60  ;;  %3188 = vmatpush3.bf16.xpose.msra.mxu1 %v648_v61 }
 0x132   :  { %v3414_v1 = vpack.i.bf16 %v348_v59, %v344_v52  ;;  %3183 = vmatprep.mubr.msk.bf16.mxu0 %vm3829_vm0, %v3828_v30  ;;  %3193 = vmatprep.subr.bf16.mxu0 %v3828_v30  ;;  %v538_v2 = vpack.c.bf16 %v348_v59, %v348_v59 }
 0x133   :  { %3199 = vmatprep.subr.bf16.mxu1 %v3828_v30 }
 0x134   :  { %3415 = vrot.lane.b32.xlu1 %v3414_v1, %s3830_s2  ;;  %3425 = vrot.lane.b32.xlu0 %v3404_v50, %s3824_s7  ;;  %v694_v6 = vsel %vm551_vm1, %v538_v2, 0 }
 0x138   :  { %3420 = vrot.lane.b32.xlu1 %v3419_v4, %s3830_s2  ;;  %3190 = vmatmul.mubr.msk.bf16.vlgmr.msra.gmra.mxu1 %vm551_vm1, %v521_v3 }
 0x139   :  { %3435 = vrot.lane.b32.xlu0 %v3414_v1, %s3824_s7  ;;  %3184 = vmatmul.mubr.msk.bf16.vlgmr.msra.gmra.mxu0 %vm551_vm1, %v520_v5 }
 0x13a   :  { %3194 = vmatpush3.bf16.xpose.msra.mxu0 %v694_v6  ;;  %3195 = vmatprep.mubr.msk.bf16.mxu0 %vm3829_vm0, %v3828_v30 }
 0x13b   :  { %3205 = vmatprep.subr.bf16.mxu0 %v3828_v30  ;;  %3201 = vmatprep.mubr.msk.bf16.mxu1 %vm3829_vm0, %v3828_v30 }
 0x13c   :  { %3430 = vrot.lane.b32.xlu1 %v3409_v56, %s3824_s7 }
 0x13d   :  { %3445 = vrot.lane.b32.xlu0 %v3404_v50, %s3831_s19 }
 0x140   :  { %3440 = vrot.lane.b32.xlu1 %v3419_v4, %s3824_s7 }
 0x141   :  { %3455 = vrot.lane.b32.xlu0 %v3414_v1, %s3831_s19  ;;  %3196 = vmatmul.mubr.msk.bf16.vlgmr.msra.gmra.mxu0 %vm551_vm1, %v522_v7 }
 0x142   :  { %3207 = vmatprep.mubr.msk.bf16.mxu0 %vm3829_vm0, %v3828_v30 }
 0x144   :  { %3450 = vrot.lane.b32.xlu1 %v3409_v56, %s3831_s19 }
 0x148   :  { %3460 = vrot.lane.b32.xlu1 %v3419_v4, %s3831_s19 }
 0x19e   :  { %v3406_v15 = vpop.permute.xlu0 %3405 }
 0x19f   :  { %v3408_v16 = vunpack.i.h.bf16 %v3406_v15  ;;  %v3407_v17 = vunpack.i.l.bf16 %v3406_v15 }
 0x1a1   :  { %v540_v18 = vpack.c.bf16 %v3408_v16, %v3408_v16  ;;  %v539_v19 = vpack.c.bf16 %v3407_v17, %v3407_v17 }
 0x1a2   :  { %v3411_v20 = vpop.permute.xlu0 %3410 }
 0x1a3   :  { %v740_v21 = vsel %vm551_vm1, %v539_v19, 0  ;;  %v786_v22 = vsel %vm551_vm1, %v540_v18, 0  ;;  %v3413_v23 = vunpack.i.h.bf16 %v3411_v20  ;;  %v3412_v24 = vunpack.i.l.bf16 %v3411_v20 }
 0x1a4   :  { %3200 = vmatpush3.bf16.xpose.msra.mxu1 %v740_v21  ;;  %3206 = vmatpush3.bf16.xpose.msra.mxu0 %v786_v22 }
 0x1a5   :  { %3211 = vmatprep.subr.bf16.mxu1 %v3828_v30  ;;  %3217 = vmatprep.subr.bf16.mxu0 %v3828_v30  ;;  %v524_v29 = vpack.c.bf16 %v3413_v23, %v3413_v23  ;;  %v523_v31 = vpack.c.bf16 %v3412_v24, %v3412_v24  ;;  %v387_v23 = vpop.f32.mrf.mxu1 }
 0x1a6   :  { %v3416_v25 = vpop.permute.xlu1 %3415  ;;  %v3426_v28 = vpop.permute.xlu0 %3425 }
 0x1a7   :  { %v3418_v26 = vunpack.i.h.bf16 %v3416_v25  ;;  %v3417_v27 = vunpack.i.l.bf16 %v3416_v25  ;;  %v3428_v37 = vunpack.i.h.bf16 %v3426_v28  ;;  %v3427_v39 = vunpack.i.l.bf16 %v3426_v28 }
 0x1a9   :  { %v542_v32 = vpack.c.bf16 %v3418_v26, %v3418_v26  ;;  %v541_v35 = vpack.c.bf16 %v3417_v27, %v3417_v27  ;;  %v544_v44 = vpack.c.bf16 %v3428_v37, %v3428_v37  ;;  %v543_v45 = vpack.c.bf16 %v3427_v39, %v3427_v39 }
 0x1aa   :  { %v3421_v36 = vpop.permute.xlu1 %3420  ;;  %v4041_v26 = vadd.f32 %v3990_v12, %v3985_v9  ;;  %v4044_v27 = vadd.f32 %v387_v23, %v3985_v9 }
 0x1ab   :  { %3202 = vmatmul.mubr.msk.bf16.vlgmr.msra.gmra.mxu1 %vm551_vm1, %v523_v31  ;;  %3208 = vmatmul.mubr.msk.bf16.vlgmr.msra.gmra.mxu0 %vm551_vm1, %v524_v29  ;;  %v832_v40 = vsel %vm551_vm1, %v541_v35, 0  ;;  %v878_v41 = vsel %vm551_vm1, %v542_v32, 0  ;;  %v3423_v42 = vunpack.i.h.bf16 %v3421_v36  ;;  %v3422_v43 = vunpack.i.l.bf16 %v3421_v36  ;;  %v3436_v46 = vpop.permute.xlu0 %3435 }
 0x1ac   :  { %3212 = vmatpush3.bf16.xpose.msra.mxu1 %v832_v40  ;;  %3218 = vmatpush3.bf16.xpose.msra.mxu0 %v878_v41  ;;  %v3438_v50 = vunpack.i.h.bf16 %v3436_v46  ;;  %v3437_v51 = vunpack.i.l.bf16 %v3436_v46  ;;  %v924_v52 = vsel %vm551_vm1, %v543_v45, 0  ;;  %v970_v53 = vsel %vm551_vm1, %v544_v44, 0 }
 0x1ad   :  { %3213 = vmatprep.mubr.msk.bf16.mxu1 %vm3829_vm0, %v3828_v30  ;;  %3219 = vmatprep.mubr.msk.bf16.mxu0 %vm3829_vm0, %v3828_v30  ;;  %v526_v47 = vpack.c.bf16 %v3423_v42, %v3423_v42  ;;  %v525_v48 = vpack.c.bf16 %v3422_v43, %v3422_v43  ;;  %v1481_v9 = vpack.c.bf16 %v4041_v26, %v4041_v26 }
 0x1ae   :  { %3223 = vmatprep.subr.bf16.mxu1 %v3828_v30  ;;  %3229 = vmatprep.subr.bf16.mxu0 %v3828_v30  ;;  %v3431_v49 = vpop.permute.xlu1 %3430  ;;  %v546_v56 = vpack.c.bf16 %v3438_v50, %v3438_v50  ;;  %v545_v57 = vpack.c.bf16 %v3437_v51, %v3437_v51  ;;  %v1482_v12 = vpack.c.bf16 %v4044_v27, %v4044_v27 }
 0x1af   :  { %v3433_v54 = vunpack.i.h.bf16 %v3431_v49  ;;  %v3432_v55 = vunpack.i.l.bf16 %v3431_v49  ;;  %v3446_v58 = vpop.permute.xlu0 %3445  ;;  %v1502_v39 = vsel %vm1500_vm2, %v1481_v9, 0  ;;  %v4072_v41 = vpack.i.bf16 %v3993_v14, %v3988_v11 }
 0x1b0   :  { %v3448_v62 = vunpack.i.h.bf16 %v3446_v58  ;;  %v3447_v63 = vunpack.i.l.bf16 %v3446_v58  ;;  %v1016_v1 = vsel %vm551_vm1, %v545_v57, 0  ;;  %v1062_v2 = vsel %vm551_vm1, %v546_v56, 0 }
 0x1b1   :  { %v528_v59 = vpack.c.bf16 %v3433_v54, %v3433_v54  ;;  %v527_v60 = vpack.c.bf16 %v3432_v55, %v3432_v55  ;;  %v1548_v40 = vsel %vm1500_vm2, %v1482_v12, 0 }
 0x1b2   :  { %v3441_v61 = vpop.permute.xlu1 %3440  ;;  %v548_v5 = vpack.c.bf16 %v3448_v62, %v3448_v62  ;;  %v547_v6 = vpack.c.bf16 %v3447_v63, %v3447_v63 }
 0x1b3   :  { %3214 = vmatmul.mubr.msk.bf16.vlgmr.msra.gmra.mxu1 %vm551_vm1, %v525_v48  ;;  %3220 = vmatmul.mubr.msk.bf16.vlgmr.msra.gmra.mxu0 %vm551_vm1, %v526_v47  ;;  %v3443_v3 = vunpack.i.h.bf16 %v3441_v61  ;;  %v3442_v4 = vunpack.i.l.bf16 %v3441_v61  ;;  %v3456_v7 = vpop.permute.xlu0 %3455 }
 0x1b4   :  { %3224 = vmatpush3.bf16.xpose.msra.mxu1 %v924_v52  ;;  %3230 = vmatpush3.bf16.xpose.msra.mxu0 %v970_v53  ;;  %v3458_v15 = vunpack.i.h.bf16 %v3456_v7  ;;  %v3457_v16 = vunpack.i.l.bf16 %v3456_v7  ;;  %v1108_v17 = vsel %vm551_vm1, %v547_v6, 0  ;;  %v1154_v18 = vsel %vm551_vm1, %v548_v5, 0 }
 0x1b5   :  { %3225 = vmatprep.mubr.msk.bf16.mxu1 %vm3829_vm0, %v3828_v30  ;;  %3231 = vmatprep.mubr.msk.bf16.mxu0 %vm3829_vm0, %v3828_v30  ;;  %v530_v8 = vpack.c.bf16 %v3443_v3, %v3443_v3  ;;  %v529_v10 = vpack.c.bf16 %v3442_v4, %v3442_v4 }
 0x1b6   :  { %3235 = vmatprep.subr.bf16.mxu1 %v3828_v30  ;;  %3241 = vmatprep.subr.bf16.mxu0 %v3828_v30  ;;  %v3451_v13 = vpop.permute.xlu1 %3450  ;;  %v550_v21 = vpack.c.bf16 %v3458_v15, %v3458_v15  ;;  %v549_v22 = vpack.c.bf16 %v3457_v16, %v3457_v16 }
 0x1b7   :  { %v3453_v19 = vunpack.i.h.bf16 %v3451_v13  ;;  %v3452_v20 = vunpack.i.l.bf16 %v3451_v13 }
 0x1b8   :  { %v1200_v29 = vsel %vm551_vm1, %v549_v22, 0  ;;  %v1246_v31 = vsel %vm551_vm1, %v550_v21, 0 }
 0x1b9   :  { %v532_v24 = vpack.c.bf16 %v3453_v19, %v3453_v19  ;;  %v531_v25 = vpack.c.bf16 %v3452_v20, %v3452_v20 }
 0x1ba   :  { %v3461_v28 = vpop.permute.xlu1 %3460 }
 0x1bb   :  { %3226 = vmatmul.mubr.msk.bf16.vlgmr.msra.gmra.mxu1 %vm551_vm1, %v527_v60  ;;  %3232 = vmatmul.mubr.msk.bf16.vlgmr.msra.gmra.mxu0 %vm551_vm1, %v528_v59  ;;  %v3463_v32 = vunpack.i.h.bf16 %v3461_v28  ;;  %v3462_v35 = vunpack.i.l.bf16 %v3461_v28 }
 0x1bc   :  { %3236 = vmatpush3.bf16.xpose.msra.mxu1 %v1016_v1  ;;  %3242 = vmatpush3.bf16.xpose.msra.mxu0 %v1062_v2 }
 0x1bd   :  { %3237 = vmatprep.mubr.msk.bf16.mxu1 %vm3829_vm0, %v3828_v30  ;;  %3243 = vmatprep.mubr.msk.bf16.mxu0 %vm3829_vm0, %v3828_v30  ;;  %v534_v36 = vpack.c.bf16 %v3463_v32, %v3463_v32  ;;  %v533_v37 = vpack.c.bf16 %v3462_v35, %v3462_v35 }
 0x1be   :  { %3247 = vmatprep.subr.bf16.mxu1 %v3828_v30  ;;  %3253 = vmatprep.subr.bf16.mxu0 %v3828_v30 }
 0x1c3   :  { %3238 = vmatmul.mubr.msk.bf16.vlgmr.msra.gmra.mxu1 %vm551_vm1, %v529_v10  ;;  %3244 = vmatmul.mubr.msk.bf16.vlgmr.msra.gmra.mxu0 %vm551_vm1, %v530_v8 }
 0x1c4   :  { %3248 = vmatpush3.bf16.xpose.msra.mxu1 %v1108_v17  ;;  %3254 = vmatpush3.bf16.xpose.msra.mxu0 %v1154_v18 }
 0x1c5   :  { %3249 = vmatprep.mubr.msk.bf16.mxu1 %vm3829_vm0, %v3828_v30  ;;  %3255 = vmatprep.mubr.msk.bf16.mxu0 %vm3829_vm0, %v3828_v30 }
 0x1c6   :  { %3259 = vmatprep.subr.bf16.mxu1 %v3828_v30  ;;  %3265 = vmatprep.subr.bf16.mxu0 %v3828_v30 }
 0x1cb   :  { %3250 = vmatmul.mubr.msk.bf16.vlgmr.msra.gmra.mxu1 %vm551_vm1, %v531_v25  ;;  %3256 = vmatmul.mubr.msk.bf16.vlgmr.msra.gmra.mxu0 %vm551_vm1, %v532_v24 }
 0x1cc   :  { %3260 = vmatpush3.bf16.xpose.msra.mxu1 %v1200_v29  ;;  %3266 = vmatpush3.bf16.xpose.msra.mxu0 %v1246_v31 }
 0x1cd   :  { %3261 = vmatprep.mubr.msk.bf16.mxu1 %vm3829_vm0, %v3828_v30  ;;  %3267 = vmatprep.mubr.msk.bf16.mxu0 %vm3829_vm0, %v3828_v30 }
 0x1ce   :  { %3271 = vmatprep.subr.bf16.mxu1 %v3828_v30  ;;  %3277 = vmatprep.subr.bf16.mxu0 %v3828_v30 }
 0x1d3   :  { %3262 = vmatmul.mubr.msk.bf16.vlgmr.msra.gmra.mxu1 %vm551_vm1, %v533_v37  ;;  %3268 = vmatmul.mubr.msk.bf16.vlgmr.msra.gmra.mxu0 %vm551_vm1, %v534_v36 }
 0x1d4   :  { %3272 = vmatpush3.bf16.msra.mxu1 %v1502_v39  ;;  %3278 = vmatpush3.bf16.msra.mxu0 %v1548_v40  ;;  %v4115_v40 = vpack.i.bf16 %v4044_v27, %v4041_v26 }
 0x1d5   :  { %3279 = vmatprep.mubr.msk.bf16.mxu0 %vm3829_vm0, %v3828_v30  ;;  %3289 = vmatprep.subr.bf16.mxu0 %v3828_v30 }
 0x1d6   :  { %3273 = vmatprep.mubr.msk.bf16.mxu1 %vm3829_vm0, %v3828_v30  ;;  %3283 = vmatprep.subr.bf16.mxu1 %v3828_v30 }
 0x1f0   :  { %v4074_v42 = vpop.f32.mrf.mxu0 }
 0x1f1   :  { %v1289_v43 = vsel %vm1288_vm3, %v4074_v42, -inf }
 0x1f2   :  { %1290 = vmax.xlane.f32.xlu0 %v1289_v43  ;;  %v3179_v44 = vpop.f32.mrf.mxu0 }
 0x1f4   :  { %v595_v45 = vpop.f32.mrf.mxu0 }
 0x1f6   :  { %v3180_v46 = vpop.f32.mrf.mxu0 }
 0x1f8   :  { %v4078_v47 = vpop.f32.mrf.mxu1 }
 0x1f9   :  { %v638_v48 = vpop.f32.mrf.mxu0  ;;  %v1295_v49 = vsel %vm1288_vm3, %v4078_v47, -inf }
 0x1fa   :  { %v3191_v50 = vpop.f32.mrf.mxu1  ;;  %1296 = vmax.xlane.f32.xlu0 %v1295_v49  ;;  %v1292_v51 = vsel %vm1288_vm3, %v638_v48, -inf }
 0x1fb   :  { %1293 = vmax.xlane.f32.xlu1 %v1292_v51  ;;  %v3185_v52 = vpop.f32.mrf.mxu0 }
 0x1fc   :  { %v687_v53 = vpop.f32.mrf.mxu1 }
 0x1fd   :  { %v641_v54 = vpop.f32.mrf.mxu0 }
 0x1fe   :  { %v3192_v55 = vpop.f32.mrf.mxu1 }
 0x1ff   :  { %v3186_v56 = vpop.f32.mrf.mxu0 }
 0x201   :  { %v4083_v57 = vpop.f32.mrf.mxu0 }
 0x202   :  { %v1298_v58 = vsel %vm1288_vm3, %v4083_v57, -inf }
 0x203   :  { %1299 = vmax.xlane.f32.xlu0 %v1298_v58  ;;  %v3197_v59 = vpop.f32.mrf.mxu0 }
 0x205   :  { %v733_v60 = vpop.f32.mrf.mxu0 }
 0x207   :  { %v3198_v61 = vpop.f32.mrf.mxu0 }
 0x26b   :  { %v4087_v62 = vpop.f32.mrf.mxu1  ;;  %v4089_v63 = vpop.f32.mrf.mxu0 }
 0x26c   :  { %v1301_v1 = vsel %vm1288_vm3, %v4087_v62, -inf  ;;  %v1304_v2 = vsel %vm1288_vm3, %v4089_v63, -inf }
 0x26d   :  { %v3203_v3 = vpop.f32.mrf.mxu1  ;;  %1302 = vmax.xlane.f32.xlu1 %v1301_v1  ;;  %1305 = vmax.xlane.f32.xlu0 %v1304_v2  ;;  %v3209_v4 = vpop.f32.mrf.mxu0 }
 0x26f   :  { %v779_v5 = vpop.f32.mrf.mxu1  ;;  %v825_v6 = vpop.f32.mrf.mxu0 }
 0x271   :  { %v3204_v7 = vpop.f32.mrf.mxu1  ;;  %v3210_v8 = vpop.f32.mrf.mxu0 }
 0x273   :  { %v4095_v10 = vpop.f32.mrf.mxu1  ;;  %v4097_v13 = vpop.f32.mrf.mxu0 }
 0x274   :  { %v1307_v15 = vsel %vm1288_vm3, %v4095_v10, -inf  ;;  %v1310_v16 = vsel %vm1288_vm3, %v4097_v13, -inf }
 0x275   :  { %v3215_v17 = vpop.f32.mrf.mxu1  ;;  %1308 = vmax.xlane.f32.xlu1 %v1307_v15  ;;  %1311 = vmax.xlane.f32.xlu0 %v1310_v16  ;;  %v3221_v18 = vpop.f32.mrf.mxu0 }
 0x277   :  { %v871_v19 = vpop.f32.mrf.mxu1  ;;  %v917_v20 = vpop.f32.mrf.mxu0 }
 0x279   :  { %v3216_v21 = vpop.f32.mrf.mxu1  ;;  %v3222_v22 = vpop.f32.mrf.mxu0 }
 0x27b   :  { %v4103_v23 = vpop.f32.mrf.mxu1  ;;  %v4105_v24 = vpop.f32.mrf.mxu0 }
 0x27c   :  { %v1316_v28 = vsel %vm1288_vm3, %v4105_v24, -inf  ;;  %v1291_v12 = vpop.xlane.xlu0 %1290 }
 0x27d   :  { %v3227_v25 = vpop.f32.mrf.mxu1  ;;  %1317 = vmax.xlane.f32.xlu0 %v1316_v28  ;;  %v3233_v29 = vpop.f32.mrf.mxu0  ;;  %v1337_v22 = vsub.f32 %v4074_v42, %v1291_v12 }
 0x27f   :  { %v963_v31 = vpop.f32.mrf.mxu1  ;;  %v1009_v32 = vpop.f32.mrf.mxu0  ;;  %v1353_v25 = vmul.f32 1.442695, %v1337_v22  ;;  %v1484_v22 = vpack.c.bf16 %v3993_v14, %v3993_v14 }
 0x280   :  { %v1313_v31 = vsel %vm1288_vm3, %v4103_v23, -inf }
 0x281   :  { %v3228_v35 = vpop.f32.mrf.mxu1  ;;  %v3234_v9 = vpop.f32.mrf.mxu0 }
 0x283   :  { %v4109_v36 = vpop.f32.mrf.mxu1  ;;  %v4111_v39 = vpop.f32.mrf.mxu0 }
 0x284   :  { %v1294_v37 = vpop.xlane.xlu1 %1293  ;;  %v1322_v45 = vsel %vm1288_vm3, %v4111_v39, -inf  ;;  %v1297_v51 = vpop.xlane.xlu0 %1296  ;;  %v1319_v32 = vsel %vm1288_vm3, %v4109_v36, -inf }
 0x285   :  { %v1338_v43 = vsub.f32 %v638_v48, %v1294_v37  ;;  %v3239_v44 = vpop.f32.mrf.mxu1  ;;  %1323 = vmax.xlane.f32.xlu0 %v1322_v45  ;;  %v3245_v46 = vpop.f32.mrf.mxu0  ;;  %v1339_v28 = vsub.f32 %v4078_v47, %v1297_v51 }
 0x286   :  { %3465 = vrot.lane.b32.xlu1 %v4115_v40, %s3830_s2 }
 0x287   :  { %v1355_v49 = vmul.f32 1.442695, %v1338_v43  ;;  %v1055_v50 = vpop.f32.mrf.mxu1  ;;  %v1101_v52 = vpop.f32.mrf.mxu0  ;;  %v1357_v29 = vmul.f32 1.442695, %v1339_v28 }
 0x289   :  { %3604 = vpow2.f32 %v1355_v49  ;;  %v3240_v53 = vpop.f32.mrf.mxu1  ;;  %v3246_v54 = vpop.f32.mrf.mxu0 }
 0x28b   :  { %v4121_v55 = vpop.f32.mrf.mxu1  ;;  %v4123_v27 = vpop.f32.mrf.mxu0 }
 0x28c   :  { %v1300_v26 = vpop.xlane.xlu0 %1299  ;;  %v1328_v58 = vsel %vm1288_vm3, %v4123_v27, -inf  ;;  %v1325_v35 = vsel %vm1288_vm3, %v4121_v55, -inf }
 0x28d   :  { %v1340_v48 = vsub.f32 %v4083_v57, %v1300_v26  ;;  %v3251_v56 = vpop.f32.mrf.mxu1  ;;  %1329 = vmax.xlane.f32.xlu0 %v1328_v58  ;;  %v3257_v59 = vpop.f32.mrf.mxu0 }
 0x28f   :  { %v1359_v60 = vmul.f32 1.442695, %v1340_v48  ;;  %v1147_v61 = vpop.f32.mrf.mxu1  ;;  %v1193_v1 = vpop.f32.mrf.mxu0 }
 0x291   :  { %3606 = vpow2.f32 %v1359_v60  ;;  %v3252_v2 = vpop.f32.mrf.mxu1  ;;  %v3258_v3 = vpop.f32.mrf.mxu0 }
 0x292   :  { %3608 = vpow2.f32 %v1353_v25 }
 0x293   :  { %v4128_v4 = vpop.f32.mrf.mxu1  ;;  %v4130_v5 = vpop.f32.mrf.mxu0  ;;  %3610 = vpow2.f32 %v1357_v29 }
 0x294   :  { %v1334_v57 = vsel %vm1288_vm3, %v4130_v5, -inf  ;;  %v1331_v42 = vsel %vm1288_vm3, %v4128_v4, -inf }
 0x295   :  { %v3263_v6 = vpop.f32.mrf.mxu1  ;;  %1335 = vmax.xlane.f32.xlu0 %v1334_v57  ;;  %v3269_v8 = vpop.f32.mrf.mxu0 }
 0x296   :  { %v4134_v7 = vpop.eup %3604 }
 0x297   :  { %v1239_v15 = vpop.f32.mrf.mxu1  ;;  %v1285_v16 = vpop.f32.mrf.mxu0  ;;  %v1388_v18 = vsel %vm1288_vm3, %v4134_v7, 0.0 }
 0x299   :  { %v3264_v17 = vpop.f32.mrf.mxu1  ;;  %1389 = vadd.xlane.f32.xlu0 %v1388_v18  ;;  %v3270_v19 = vpop.f32.mrf.mxu0 }
 0x29e   :  { %v4138_v20 = vpop.eup %3606 }
 0x29f   :  { %v1394_v21 = vsel %vm1288_vm3, %v4138_v20, 0.0  ;;  %v4152_v9 = vpop.eup %3608 }
 0x2a0   :  { %1395 = vadd.xlane.f32.xlu0 %v1394_v21  ;;  %v1385_v47 = vsel %vm1288_vm3, %v4152_v9, 0.0  ;;  %v4158_v12 = vpop.eup %3610 }
 0x2a1   :  { %v1391_v37 = vsel %vm1288_vm3, %v4158_v12, 0.0 }
 0x2aa   :  { %1314 = vmax.xlane.f32.xlu1 %v1313_v31 }
 0x2ae   :  { %1320 = vmax.xlane.f32.xlu1 %v1319_v32 }
 0x2b2   :  { %1326 = vmax.xlane.f32.xlu1 %v1325_v35 }
 0x2b6   :  { %3470 = vrot.lane.b32.xlu0 %v4072_v41, %s3830_s2  ;;  %1332 = vmax.xlane.f32.xlu1 %v1331_v42  ;;  %v1640_v42 = vsel %vm1500_vm2, %v1484_v22, 0 }
 0x2ba   :  { %1386 = vadd.xlane.f32.xlu1 %v1385_v47 }
 0x2be   :  { %1392 = vadd.xlane.f32.xlu1 %v1391_v37 }
 0x2cf   :  { %3475 = vrot.lane.b32.xlu1 %v4115_v40, %s3824_s7 }
 0x2f6   :  { %v1303_v43 = vpop.xlane.xlu1 %1302  ;;  %v1306_v44 = vpop.xlane.xlu0 %1305 }
 0x2f7   :  { %v1341_v45 = vsub.f32 %v4087_v62, %v1303_v43  ;;  %v1342_v46 = vsub.f32 %v4089_v63, %v1306_v44 }
 0x2f9   :  { %v1361_v49 = vmul.f32 1.442695, %v1341_v45  ;;  %v1363_v50 = vmul.f32 1.442695, %v1342_v46 }
 0x2fb   :  { %3612 = vpow2.f32 %v1361_v49 }
 0x2fc   :  { %3614 = vpow2.f32 %v1363_v50 }
 0x2fe   :  { %v1309_v51 = vpop.xlane.xlu1 %1308  ;;  %v1312_v52 = vpop.xlane.xlu0 %1311 }
 0x2ff   :  { %v1343_v53 = vsub.f32 %v4095_v10, %v1309_v51  ;;  %v1344_v54 = vsub.f32 %v4097_v13, %v1312_v52 }
 0x301   :  { %v1365_v26 = vmul.f32 1.442695, %v1343_v53  ;;  %v1367_v48 = vmul.f32 1.442695, %v1344_v54 }
 0x302   :  { %v4189_v17 = vpop.permute.xlu1 %3465 }
 0x303   :  { %3616 = vpow2.f32 %v1365_v26  ;;  %v3468_v35 = vunpack.i.h.bf16 %v4189_v17 }
 0x304   :  { %3618 = vpow2.f32 %v1367_v48 }
 0x305   :  { %v1486_v43 = vpack.c.bf16 %v3468_v35, %v3468_v35 }
 0x306   :  { %v1318_v56 = vpop.xlane.xlu0 %1317 }
 0x307   :  { %v1346_v62 = vsub.f32 %v4105_v24, %v1318_v56 }
 0x308   :  { %v4168_v58 = vpop.eup %3612 }
 0x309   :  { %v4171_v63 = vpop.eup %3614  ;;  %v1397_v59 = vsel %vm1288_vm3, %v4168_v58, 0.0  ;;  %v1371_v60 = vmul.f32 1.442695, %v1346_v62 }
 0x30a   :  { %1398 = vadd.xlane.f32.xlu1 %v1397_v59  ;;  %v1400_v10 = vsel %vm1288_vm3, %v4171_v63, 0.0 }
 0x30b   :  { %1401 = vadd.xlane.f32.xlu0 %v1400_v10  ;;  %3620 = vpow2.f32 %v1371_v60 }
 0x30e   :  { %v1324_v2 = vpop.xlane.xlu0 %1323 }
 0x30f   :  { %v1348_v29 = vsub.f32 %v4111_v39, %v1324_v2 }
 0x310   :  { %v4177_v13 = vpop.eup %3616 }
 0x311   :  { %v4179_v61 = vpop.eup %3618  ;;  %v1403_v1 = vsel %vm1288_vm3, %v4177_v13, 0.0 }
 0x312   :  { %1404 = vadd.xlane.f32.xlu1 %v1403_v1  ;;  %v1406_v24 = vsel %vm1288_vm3, %v4179_v61, 0.0 }
 0x313   :  { %1407 = vadd.xlane.f32.xlu0 %v1406_v24  ;;  %v1483_v24 = vpack.c.bf16 %v3988_v11, %v3988_v11 }
 0x316   :  { %v1330_v57 = vpop.xlane.xlu0 %1329 }
 0x317   :  { %v1350_v39 = vsub.f32 %v4123_v27, %v1330_v57 }
 0x318   :  { %v4185_v3 = vpop.eup %3620 }
 0x319   :  { %v1412_v6 = vsel %vm1288_vm3, %v4185_v3, 0.0  ;;  %v1379_v46 = vmul.f32 1.442695, %v1350_v39 }
 0x31a   :  { %1413 = vadd.xlane.f32.xlu0 %v1412_v6 }
 0x31e   :  { %v1336_v8 = vpop.xlane.xlu0 %1335 }
 0x31f   :  { %v1352_v27 = vsub.f32 %v4130_v5, %v1336_v8 }
 0x321   :  { %v1383_v53 = vmul.f32 1.442695, %v1352_v27 }
 0x322   :  { %v1390_v15 = vpop.xlane.xlu0 %1389 }
 0x323   :  { %3622 = vrcp.f32 %v1390_v15  ;;  %v3467_v15 = vunpack.i.l.bf16 %v4189_v17 }
 0x325   :  { %v1485_v17 = vpack.c.bf16 %v3467_v15, %v3467_v15 }
 0x329   :  { %v1396_v16 = vpop.xlane.xlu0 %1395 }
 0x32a   :  { %3624 = vrcp.f32 %v1396_v16  ;;  %v1594_v16 = vsel %vm1500_vm2, %v1483_v24, 0 }
 0x330   :  { %v3623_v18 = vpop.eup %3622 }
 0x331   :  { %v1450_v21 = vmul.f32 %v3623_v18, %v4134_v7 }
 0x333   :  { %v1315_v19 = vpop.xlane.xlu1 %1314  ;;  %v1466_v28 = vpack.c.bf16 %v1450_v21, %v1450_v21 }
 0x334   :  { %v1345_v25 = vsub.f32 %v4103_v23, %v1315_v19  ;;  %v1375_v23 = vmul.f32 1.442695, %v1348_v29  ;;  %v1686_v19 = vsel %vm1500_vm2, %v1485_v17, 0  ;;  %v3471_v29 = vpop.permute.xlu0 %3470 }
 0x335   :  { %3280 = vmatmul.mubr.msk.bf16.vlgmr.msra.gmra.mxu0 %vm1288_vm3, %v1466_v28 }
 0x336   :  { %v1369_v31 = vmul.f32 1.442695, %v1345_v25  ;;  %3290 = vmatpush3.bf16.msra.mxu0 %v1640_v42  ;;  %3291 = vmatprep.mubr.msk.bf16.mxu0 %vm3829_vm0, %v3828_v30  ;;  %v3473_v42 = vunpack.i.h.bf16 %v3471_v29 }
 0x337   :  { %v3625_v32 = vpop.eup %3624  ;;  %v1321_v47 = vpop.xlane.xlu1 %1320  ;;  %3301 = vmatprep.subr.bf16.mxu0 %v3828_v30 }
 0x338   :  { %3626 = vpow2.f32 %v1369_v31  ;;  %v1347_v7 = vsub.f32 %v4109_v36, %v1321_v47  ;;  %v1452_v14 = vmul.f32 %v3625_v32, %v4138_v20  ;;  %v1732_v36 = vsel %vm1500_vm2, %v1486_v43, 0 }
 0x339   :  { %v1488_v39 = vpack.c.bf16 %v3473_v42, %v3473_v42 }
 0x33a   :  { %v1373_v37 = vmul.f32 1.442695, %v1347_v7  ;;  %v1468_v45 = vpack.c.bf16 %v1452_v14, %v1452_v14 }
 0x33b   :  { %v1327_v44 = vpop.xlane.xlu1 %1326 }
 0x33c   :  { %3628 = vpow2.f32 %v1373_v37  ;;  %v1349_v21 = vsub.f32 %v4121_v55, %v1327_v44 }
 0x33d   :  { %3630 = vpow2.f32 %v1375_v23  ;;  %3292 = vmatmul.mubr.msk.bf16.vlgmr.msra.gmra.mxu0 %vm1288_vm3, %v1468_v45 }
 0x33e   :  { %3302 = vmatpush3.bf16.msra.mxu0 %v1732_v36  ;;  %3303 = vmatprep.mubr.msk.bf16.mxu0 %vm3829_vm0, %v3828_v30  ;;  %3632 = vpow2.f32 %v1379_v46  ;;  %v1377_v22 = vmul.f32 1.442695, %v1349_v21 }
 0x33f   :  { %v1333_v49 = vpop.xlane.xlu1 %1332  ;;  %3313 = vmatprep.subr.bf16.mxu0 %v3828_v30 }
 0x340   :  { %v1351_v50 = vsub.f32 %v4128_v4, %v1333_v49  ;;  %v1824_v49 = vsel %vm1500_vm2, %v1488_v39, 0 }
 0x342   :  { %v1381_v20 = vmul.f32 1.442695, %v1351_v50 }
 0x343   :  { %v1387_v51 = vpop.xlane.xlu1 %1386 }
 0x344   :  { %3634 = vrcp.f32 %v1387_v51 }
 0x345   :  { %v4212_v52 = vpop.eup %3626  ;;  %3636 = vpow2.f32 %v1381_v20 }
 0x346   :  { %v1409_v54 = vsel %vm1288_vm3, %v4212_v52, 0.0 }
 0x347   :  { %1410 = vadd.xlane.f32.xlu1 %v1409_v54  ;;  %v1393_v4 = vpop.xlane.xlu1 %1392 }
 0x348   :  { %3638 = vrcp.f32 %v1393_v4 }
 0x349   :  { %v4216_v26 = vpop.eup %3628  ;;  %3640 = vpow2.f32 %v1383_v53 }
 0x34a   :  { %v1415_v48 = vsel %vm1288_vm3, %v4216_v26, 0.0  ;;  %v4220_v5 = vpop.eup %3630  ;;  %3642 = vpow2.f32 %v1377_v22 }
 0x34b   :  { %1416 = vadd.xlane.f32.xlu0 %v1415_v48  ;;  %v1418_v56 = vsel %vm1288_vm3, %v4220_v5, 0.0  ;;  %v4224_v62 = vpop.eup %3632  ;;  %v3476_v28 = vpop.permute.xlu1 %3475 }
 0x34c   :  { %v1424_v60 = vsel %vm1288_vm3, %v4224_v62, 0.0  ;;  %v3477_v45 = vunpack.i.l.bf16 %v3476_v28  ;;  %v3478_v36 = vunpack.i.h.bf16 %v3476_v28 }
 0x34e   :  { %v1489_v50 = vpack.c.bf16 %v3477_v45, %v3477_v45  ;;  %v1490_v20 = vpack.c.bf16 %v3478_v36, %v3478_v36 }
 0x34f   :  { %1419 = vadd.xlane.f32.xlu0 %v1418_v56 }
 0x350   :  { %v1870_v4 = vsel %vm1500_vm2, %v1489_v50, 0  ;;  %v1916_v48 = vsel %vm1500_vm2, %v1490_v20, 0 }
 0x351   :  { %v3635_v59 = vpop.eup %3634 }
 0x352   :  { %v4228_v10 = vpop.eup %3636  ;;  %v1449_v1 = vmul.f32 %v3635_v59, %v4152_v9 }
 0x353   :  { %1425 = vadd.xlane.f32.xlu0 %v1424_v60  ;;  %v1427_v57 = vsel %vm1288_vm3, %v4228_v10, 0.0 }
 0x354   :  { %v1465_v2 = vpack.c.bf16 %v1449_v1, %v1449_v1 }
 0x355   :  { %v3639_v6 = vpop.eup %3638 }
 0x356   :  { %v4235_v8 = vpop.eup %3640  ;;  %3274 = vmatmul.mubr.msk.bf16.vlgmr.msra.gmra.mxu1 %vm1288_vm3, %v1465_v2  ;;  %v1451_v11 = vmul.f32 %v3639_v6, %v4158_v12 }
 0x357   :  { %1428 = vadd.xlane.f32.xlu0 %v1427_v57  ;;  %3284 = vmatpush3.bf16.msra.mxu1 %v1594_v16  ;;  %v1430_v9 = vsel %vm1288_vm3, %v4235_v8, 0.0  ;;  %v4256_v12 = vpop.eup %3642 }
 0x358   :  { %3480 = vrot.lane.b32.xlu1 %v4072_v41, %s3824_s7  ;;  %3285 = vmatprep.mubr.msk.bf16.mxu1 %vm3829_vm0, %v3828_v30  ;;  %v1467_v18 = vpack.c.bf16 %v1451_v11, %v1451_v11  ;;  %v1421_v25 = vsel %vm1288_vm3, %v4256_v12, 0.0 }
 0x359   :  { %3295 = vmatprep.subr.bf16.mxu1 %v3828_v30 }
 0x35b   :  { %1431 = vadd.xlane.f32.xlu0 %v1430_v9 }
 0x35e   :  { %3286 = vmatmul.mubr.msk.bf16.vlgmr.msra.gmra.mxu1 %vm1288_vm3, %v1467_v18 }
 0x35f   :  { %3296 = vmatpush3.bf16.msra.mxu1 %v1686_v19  ;;  %3297 = vmatprep.mubr.msk.bf16.mxu1 %vm3829_vm0, %v3828_v30 }
 0x360   :  { %3307 = vmatprep.subr.bf16.mxu1 %v3828_v30 }
 0x371   :  { %3485 = vrot.lane.b32.xlu0 %v4115_v40, %s3831_s19  ;;  %v3472_v40 = vunpack.i.l.bf16 %v3471_v29 }
 0x373   :  { %v1487_v14 = vpack.c.bf16 %v3472_v40, %v3472_v40 }
 0x375   :  { %v1778_v46 = vsel %vm1500_vm2, %v1487_v14, 0 }
 0x37c   :  { %1422 = vadd.xlane.f32.xlu1 %v1421_v25 }
 0x38d   :  { %3490 = vrot.lane.b32.xlu1 %v4072_v41, %s3831_s19 }
 0x393   :  { %v1399_v31 = vpop.xlane.xlu1 %1398 }
 0x394   :  { %3644 = vrcp.f32 %v1399_v31  ;;  %v1402_v32 = vpop.xlane.xlu0 %1401 }
 0x395   :  { %3646 = vrcp.f32 %v1402_v32 }
 0x39b   :  { %v1405_v55 = vpop.xlane.xlu1 %1404 }
 0x39c   :  { %3648 = vrcp.f32 %v1405_v55  ;;  %v1408_v35 = vpop.xlane.xlu0 %1407 }
 0x39d   :  { %3650 = vrcp.f32 %v1408_v35 }
 0x3a1   :  { %v3645_v47 = vpop.eup %3644 }
 0x3a2   :  { %v3647_v7 = vpop.eup %3646  ;;  %v1453_v23 = vmul.f32 %v3645_v47, %v4168_v58 }
 0x3a3   :  { %v1454_v41 = vmul.f32 %v3647_v7, %v4171_v63  ;;  %v1414_v37 = vpop.xlane.xlu0 %1413 }
 0x3a4   :  { %v1469_v43 = vpack.c.bf16 %v1453_v23, %v1453_v23  ;;  %3652 = vrcp.f32 %v1414_v37 }
 0x3a5   :  { %v1470_v44 = vpack.c.bf16 %v1454_v41, %v1454_v41 }
 0x3a6   :  { %3298 = vmatmul.mubr.msk.bf16.vlgmr.msra.gmra.mxu1 %vm1288_vm3, %v1469_v43 }
 0x3a7   :  { %3304 = vmatmul.mubr.msk.bf16.vlgmr.msra.gmra.mxu0 %vm1288_vm3, %v1470_v44  ;;  %3308 = vmatpush3.bf16.msra.mxu1 %v1778_v46 }
 0x3a8   :  { %3314 = vmatpush3.bf16.msra.mxu0 %v1824_v49  ;;  %3309 = vmatprep.mubr.msk.bf16.mxu1 %vm3829_vm0, %v3828_v30 }
 0x3a9   :  { %v3649_v58 = vpop.eup %3648  ;;  %3315 = vmatprep.mubr.msk.bf16.mxu0 %vm3829_vm0, %v3828_v30  ;;  %3319 = vmatprep.subr.bf16.mxu1 %v3828_v30 }
 0x3aa   :  { %v3651_v63 = vpop.eup %3650  ;;  %3325 = vmatprep.subr.bf16.mxu0 %v3828_v30  ;;  %v1455_v27 = vmul.f32 %v3649_v58, %v4177_v13 }
 0x3ab   :  { %v1456_v51 = vmul.f32 %v3651_v63, %v4179_v61 }
 0x3ac   :  { %v1471_v53 = vpack.c.bf16 %v1455_v27, %v1455_v27 }
 0x3ad   :  { %v1472_v54 = vpack.c.bf16 %v1456_v51, %v1456_v51 }
 0x3ae   :  { %3310 = vmatmul.mubr.msk.bf16.vlgmr.msra.gmra.mxu1 %vm1288_vm3, %v1471_v53 }
 0x3af   :  { %3316 = vmatmul.mubr.msk.bf16.vlgmr.msra.gmra.mxu0 %vm1288_vm3, %v1472_v54  ;;  %3320 = vmatpush3.bf16.msra.mxu1 %v1870_v4 }
 0x3b0   :  { %3326 = vmatpush3.bf16.msra.mxu0 %v1916_v48  ;;  %3327 = vmatprep.mubr.msk.bf16.mxu0 %vm3829_vm0, %v3828_v30 }
 0x3b1   :  { %3337 = vmatprep.subr.bf16.mxu0 %v3828_v30  ;;  %3321 = vmatprep.mubr.msk.bf16.mxu1 %vm3829_vm0, %v3828_v30  ;;  %v3653_v13 = vpop.eup %3652 }
 0x3b2   :  { %3331 = vmatprep.subr.bf16.mxu1 %v3828_v30  ;;  %v1458_v61 = vmul.f32 %v3653_v13, %v4185_v3 }
 0x3b4   :  { %v1474_v56 = vpack.c.bf16 %v1458_v61, %v1458_v61 }
 0x3b7   :  { %3328 = vmatmul.mubr.msk.bf16.vlgmr.msra.gmra.mxu0 %vm1288_vm3, %v1474_v56 }
 0x3b8   :  { %3339 = vmatprep.mubr.msk.bf16.mxu0 %vm3829_vm0, %v3828_v30 }
 0x3d0   :  { %v1411_v59 = vpop.xlane.xlu1 %1410 }
 0x3d1   :  { %3654 = vrcp.f32 %v1411_v59 }
 0x3d4   :  { %v3481_v60 = vpop.permute.xlu1 %3480  ;;  %v1417_v1 = vpop.xlane.xlu0 %1416 }
 0x3d5   :  { %v3483_v24 = vunpack.i.h.bf16 %v3481_v60  ;;  %3656 = vrcp.f32 %v1417_v1  ;;  %v3482_v15 = vunpack.i.l.bf16 %v3481_v60 }
 0x3d7   :  { %v1492_v2 = vpack.c.bf16 %v3483_v24, %v3483_v24  ;;  %v1491_v11 = vpack.c.bf16 %v3482_v15, %v3482_v15 }
 0x3d8   :  { %v1420_v6 = vpop.xlane.xlu0 %1419 }
 0x3d9   :  { %3658 = vrcp.f32 %v1420_v6  ;;  %v2008_v57 = vsel %vm1500_vm2, %v1492_v2, 0  ;;  %v1962_v21 = vsel %vm1500_vm2, %v1491_v11, 0 }
 0x3da   :  { %3338 = vmatpush3.bf16.msra.mxu0 %v2008_v57 }
 0x3db   :  { %3349 = vmatprep.subr.bf16.mxu0 %v3828_v30 }
 0x3dc   :  { %v1426_v3 = vpop.xlane.xlu0 %1425 }
 0x3dd   :  { %3660 = vrcp.f32 %v1426_v3 }
 0x3de   :  { %v3655_v16 = vpop.eup %3654 }
 0x3df   :  { %v1457_v9 = vmul.f32 %v3655_v16, %v4212_v52 }
 0x3e0   :  { %v1429_v17 = vpop.xlane.xlu0 %1428 }
 0x3e1   :  { %v1473_v18 = vpack.c.bf16 %v1457_v9, %v1457_v9 }
 0x3e2   :  { %v3657_v19 = vpop.eup %3656 }
 0x3e3   :  { %3322 = vmatmul.mubr.msk.bf16.vlgmr.msra.gmra.mxu1 %vm1288_vm3, %v1473_v18  ;;  %v1459_v25 = vmul.f32 %v3657_v19, %v4216_v26 }
 0x3e4   :  { %3332 = vmatpush3.bf16.msra.mxu1 %v1962_v21  ;;  %v1432_v22 = vpop.xlane.xlu0 %1431  ;;  %3333 = vmatprep.mubr.msk.bf16.mxu1 %vm3829_vm0, %v3828_v30 }
 0x3e5   :  { %3343 = vmatprep.subr.bf16.mxu1 %v3828_v30  ;;  %v1475_v55 = vpack.c.bf16 %v1459_v25, %v1459_v25  ;;  %3662 = vrcp.f32 %v1432_v22 }
 0x3e6   :  { %v3659_v28 = vpop.eup %3658 }
 0x3e7   :  { %v1460_v29 = vmul.f32 %v3659_v28, %v4220_v5 }
 0x3e8   :  { %v3486_v52 = vpop.permute.xlu0 %3485 }
 0x3e9   :  { %v3488_v31 = vunpack.i.h.bf16 %v3486_v52  ;;  %v3487_v32 = vunpack.i.l.bf16 %v3486_v52  ;;  %v1476_v35 = vpack.c.bf16 %v1460_v29, %v1460_v29 }
 0x3ea   :  { %v3661_v40 = vpop.eup %3660 }
 0x3eb   :  { %v1494_v42 = vpack.c.bf16 %v3488_v31, %v3488_v31  ;;  %v1493_v47 = vpack.c.bf16 %v3487_v32, %v3487_v32  ;;  %3334 = vmatmul.mubr.msk.bf16.vlgmr.msra.gmra.mxu1 %vm1288_vm3, %v1475_v55  ;;  %3340 = vmatmul.mubr.msk.bf16.vlgmr.msra.gmra.mxu0 %vm1288_vm3, %v1476_v35  ;;  %v1462_v7 = vmul.f32 %v3661_v40, %v4224_v62 }
 0x3ec   :  { %3351 = vmatprep.mubr.msk.bf16.mxu0 %vm3829_vm0, %v3828_v30  ;;  %3345 = vmatprep.mubr.msk.bf16.mxu1 %vm3829_vm0, %v3828_v30 }
 0x3ed   :  { %v2054_v26 = vsel %vm1500_vm2, %v1493_v47, 0  ;;  %v2100_v5 = vsel %vm1500_vm2, %v1494_v42, 0  ;;  %v1478_v14 = vpack.c.bf16 %v1462_v7, %v1462_v7 }
 0x3ee   :  { %3344 = vmatpush3.bf16.msra.mxu1 %v2054_v26  ;;  %3350 = vmatpush3.bf16.msra.mxu0 %v2100_v5  ;;  %v3556_v26 = vld [vmem:[#allocation7 + $0x38] sm:$0xff]   ;;  %v3557_v5 = vld [vmem:[#allocation7 + $0x30] sm:$0xff]  }
 0x3ef   :  { %3361 = vmatprep.subr.bf16.mxu0 %v3828_v30  ;;  %3355 = vmatprep.subr.bf16.mxu1 %v3828_v30 }
 0x3f2   :  { %v3663_v36 = vpop.eup %3662 }
 0x3f3   :  { %3352 = vmatmul.mubr.msk.bf16.vlgmr.msra.gmra.mxu0 %vm1288_vm3, %v1478_v14  ;;  %v1464_v50 = vmul.f32 %v3663_v36, %v4235_v8 }
 0x3f4   :  { %3363 = vmatprep.mubr.msk.bf16.mxu0 %vm3829_vm0, %v3828_v30 }
 0x3f5   :  { %v4314_v23 = vpop.f32.mrf.mxu0  ;;  %v1480_v51 = vpack.c.bf16 %v1464_v50, %v1464_v50  ;;  %v3560_v50 = vld [vmem:[#allocation7 + $0x18] sm:$0xff]  }
 0x3f7   :  { %v3281_v39 = vpop.f32.mrf.mxu0 }
 0x3f9   :  { %v1587_v41 = vpop.f32.mrf.mxu0 }
 0x3fa   :  { %v3558_v41 = vld [vmem:[#allocation7 + $0x28] sm:$0xff]  }
 0x3fb   :  { %v3282_v37 = vpop.f32.mrf.mxu0 }
 0x3fd   :  { %v4316_v43 = vpop.f32.mrf.mxu0 }
 0x3ff   :  { %v3293_v62 = vpop.f32.mrf.mxu0 }
 0x401   :  { %v1679_v44 = vpop.f32.mrf.mxu0 }
 0x403   :  { %v3294_v45 = vpop.f32.mrf.mxu0 }
 0x404   :  { %v3559_v45 = vld [vmem:[#allocation7 + $0x20] sm:$0xff]  }
 0x405   :  { %v1423_v46 = vpop.xlane.xlu1 %1422 }
 0x406   :  { %3664 = vrcp.f32 %v1423_v46 }
 0x407   :  { %3666 = vrcp.f32 %v1429_v17 }
 0x409   :  { %v3491_v49 = vpop.permute.xlu1 %3490 }
 0x40a   :  { %v3493_v58 = vunpack.i.h.bf16 %v3491_v49  ;;  %v3492_v20 = vunpack.i.l.bf16 %v3491_v49 }
 0x40c   :  { %v1496_v63 = vpack.c.bf16 %v3493_v58, %v3493_v58  ;;  %v1495_v54 = vpack.c.bf16 %v3492_v20, %v3492_v20 }
 0x40e   :  { %v2192_v27 = vsel %vm1500_vm2, %v1496_v63, 0  ;;  %v2146_v8 = vsel %vm1500_vm2, %v1495_v54, 0 }
 0x40f   :  { %3362 = vmatpush3.bf16.msra.mxu0 %v2192_v27 }
 0x412   :  { %3364 = vmatmul.mubr.msk.bf16.vlgmr.msra.gmra.mxu0 %vm1288_vm3, %v1480_v51 }
 0x413   :  { %v3665_v53 = vpop.eup %3664  ;;  %2631 = vmatprep.mubr.bf16.mxu0 %v3827_v0 }
 0x414   :  { %v1461_v4 = vmul.f32 %v3665_v53, %v4256_v12  ;;  %v3667_v13 = vpop.eup %3666 }
 0x415   :  { %v1463_v59 = vmul.f32 %v3667_v13, %v4228_v10  ;;  %v3562_v13 = vld [vmem:[#allocation7 + $0x8] sm:$0xff]  }
 0x416   :  { %v1477_v48 = vpack.c.bf16 %v1461_v4, %v1461_v4  ;;  %v4323_v61 = vpop.f32.mrf.mxu1 }
 0x417   :  { %v1479_v24 = vpack.c.bf16 %v1463_v59, %v1463_v59 }
 0x418   :  { %3346 = vmatmul.mubr.msk.bf16.vlgmr.msra.gmra.mxu1 %vm1288_vm3, %v1477_v48  ;;  %v3275_v56 = vpop.f32.mrf.mxu1  ;;  %v3561_v48 = vld [vmem:[#allocation7 + $0x10] sm:$0xff]  }
 0x419   :  { %3356 = vmatpush3.bf16.msra.mxu1 %v2146_v8  ;;  %3357 = vmatprep.mubr.msk.bf16.mxu1 %vm3829_vm0, %v3828_v30 }
 0x41a   :  { %v1541_v60 = vpop.f32.mrf.mxu1  ;;  %3367 = vmatprep.subr.bf16.mxu1 %v3556_v26 }
 0x41c   :  { %v3276_v1 = vpop.f32.mrf.mxu1 }
 0x41e   :  { %v4330_v2 = vpop.f32.mrf.mxu1 }
 0x420   :  { %3358 = vmatmul.mubr.msk.bf16.vlgmr.msra.gmra.mxu1 %vm1288_vm3, %v1479_v24  ;;  %v3287_v12 = vpop.f32.mrf.mxu1  ;;  %v3563_v24 = vld [vmem:[#allocation7] sm:$0xff]  }
 0x421   :  { %3368 = vmatpush3.bf16.msra.mxu1 %v3556_v26 }
 0x422   :  { %v1633_v6 = vpop.f32.mrf.mxu1  ;;  %3369 = vmatprep.subr.bf16.mxu1 %v3557_v5 }
 0x424   :  { %v3288_v57 = vpop.f32.mrf.mxu1 }
 0x425   :  { %3370 = vmatpush3.bf16.msra.mxu1 %v3557_v5 }
 0x426   :  { %3371 = vmatprep.subr.bf16.mxu1 %v3558_v41 }
 0x429   :  { %3372 = vmatpush3.bf16.msra.mxu1 %v3558_v41 }
 0x42a   :  { %3373 = vmatprep.subr.bf16.mxu1 %v3559_v45 }
 0x42d   :  { %3374 = vmatpush3.bf16.msra.mxu1 %v3559_v45 }
 0x42e   :  { %3375 = vmatprep.subr.bf16.mxu1 %v3560_v50 }
 0x431   :  { %3376 = vmatpush3.bf16.msra.mxu1 %v3560_v50 }
 0x432   :  { %3377 = vmatprep.subr.bf16.mxu1 %v3561_v48 }
 0x435   :  { %3378 = vmatpush3.bf16.msra.mxu1 %v3561_v48  ;;  %v3685_v48 = vld [vmem:[#allocation2 + $0x8] sm:$0xff] }
 0x436   :  { %3379 = vmatprep.subr.bf16.mxu1 %v3562_v13 }
 0x439   :  { %3380 = vmatpush3.bf16.msra.mxu1 %v3562_v13 }
 0x43a   :  { %3381 = vmatprep.subr.bf16.mxu1 %v3563_v24 }
 0x43d   :  { %3382 = vmatpush3.bf16.msra.mxu1 %v3563_v24  ;;  %v3566_v24 = vld [vmem:[#allocation8 + $0x74] ss:$8 sps:$4 sm:$0xff]  }
 0x43e   :  { %2599 = vmatprep.subr.bf16.mxu0 %v3566_v24  ;;  %v3007_v24 = vld [vmem:[%s4429_s6] ss:$0 sm:$0xff] }
 0x466   :  { %v1722_v15 = vpop.f32.mrf.mxu1 }
 0x467   :  { %v1768_v3 = vpop.f32.mrf.mxu0 }
 0x468   :  { %v3494_v16 = vpack.i.bf16 %v1768_v3, %v1722_v15  ;;  %v3299_v11 = vpop.f32.mrf.mxu1 }
 0x469   :  { %v3305_v9 = vpop.f32.mrf.mxu0 }
 0x46a   :  { %3495 = vrot.lane.b32.xlu1 %v3494_v16, %s3831_s19  ;;  %v1725_v30 = vpop.f32.mrf.mxu1 }
 0x46b   :  { %v1771_v17 = vpop.f32.mrf.mxu0 }
 0x46c   :  { %v3300_v10 = vpop.f32.mrf.mxu1 }
 0x46d   :  { %v3306_v18 = vpop.f32.mrf.mxu0 }
 0x46e   :  { %v1814_v19 = vpop.f32.mrf.mxu1 }
 0x46f   :  { %v1860_v21 = vpop.f32.mrf.mxu0 }
 0x470   :  { %v3499_v22 = vpack.i.bf16 %v1860_v21, %v1814_v19  ;;  %v3311_v25 = vpop.f32.mrf.mxu1 }
 0x471   :  { %v3317_v28 = vpop.f32.mrf.mxu0 }
 0x472   :  { %3500 = vrot.lane.b32.xlu1 %v3499_v22, %s3831_s19  ;;  %v1817_v29 = vpop.f32.mrf.mxu1 }
 0x473   :  { %v1863_v52 = vpop.f32.mrf.mxu0 }
 0x474   :  { %v3312_v31 = vpop.f32.mrf.mxu1 }
 0x475   :  { %v3318_v32 = vpop.f32.mrf.mxu0 }
 0x477   :  { %v1952_v55 = vpop.f32.mrf.mxu0 }
 0x479   :  { %v3329_v35 = vpop.f32.mrf.mxu0 }
 0x47b   :  { %v1955_v40 = vpop.f32.mrf.mxu0 }
 0x47d   :  { %v3330_v42 = vpop.f32.mrf.mxu0 }
 0x4a3   :  { %v1906_v47 = vpop.f32.mrf.mxu1 }
 0x4a4   :  { %v3504_v7 = vpack.i.bf16 %v1952_v55, %v1906_v47 }
 0x4a5   :  { %v3323_v14 = vpop.f32.mrf.mxu1 }
 0x4a6   :  { %3505 = vrot.lane.b32.xlu1 %v3504_v7, %s3824_s7 }
 0x4a7   :  { %v1909_v39 = vpop.f32.mrf.mxu1 }
 0x4a9   :  { %v3324_v37 = vpop.f32.mrf.mxu1 }
 0x4ab   :  { %v1998_v62 = vpop.f32.mrf.mxu1  ;;  %v2044_v44 = vpop.f32.mrf.mxu0 }
 0x4ac   :  { %v3509_v46 = vpack.i.bf16 %v2044_v44, %v1998_v62 }
 0x4ad   :  { %v3335_v36 = vpop.f32.mrf.mxu1  ;;  %v3341_v49 = vpop.f32.mrf.mxu0 }
 0x4ae   :  { %3510 = vrot.lane.b32.xlu1 %v3509_v46, %s3824_s7 }
 0x4af   :  { %v2001_v58 = vpop.f32.mrf.mxu1  ;;  %v2047_v63 = vpop.f32.mrf.mxu0 }
 0x4b1   :  { %v3336_v27 = vpop.f32.mrf.mxu1  ;;  %v3342_v20 = vpop.f32.mrf.mxu0 }
 0x4b2   :  { %v3684_v20 = vld [vmem:[#allocation2] sm:$0xff] }
 0x4b3   :  { %v2136_v51 = vpop.f32.mrf.mxu0 }
 0x4b5   :  { %v3353_v53 = vpop.f32.mrf.mxu0 }
 0x4b7   :  { %v2139_v54 = vpop.f32.mrf.mxu0 }
 0x4b9   :  { %v3354_v4 = vpop.f32.mrf.mxu0 }
 0x4d2   :  { %v2228_v8 = vpop.f32.mrf.mxu0 }
 0x4d4   :  { %v3365_v56 = vpop.f32.mrf.mxu0 }
 0x4d6   :  { %v2231_v59 = vpop.f32.mrf.mxu0 }
 0x4d7   :  { %v3687_v59 = vld [vmem:[#allocation2 + $0x18] sm:$0xff] }
 0x4d8   :  { %v2090_v60 = vpop.f32.mrf.mxu1  ;;  %v3366_v1 = vpop.f32.mrf.mxu0 }
 0x4d9   :  { %v3514_v12 = vpack.i.bf16 %v2136_v51, %v2090_v60  ;;  %v3564_v1 = vld [vmem:[#allocation8 + $0x70] ss:$8 sps:$4 sm:$0xff]  }
 0x4da   :  { %v3347_v6 = vpop.f32.mrf.mxu1  ;;  %2600 = vmatpush1.bf16.msra.mxu0 %v3564_v1 }
 0x4db   :  { %3515 = vrot.lane.b32.xlu0 %v3514_v12, %s3830_s2 }
 0x4dc   :  { %v2093_v57 = vpop.f32.mrf.mxu1  ;;  %v3496_v17 = vpop.permute.xlu1 %3495 }
 0x4dd   :  { %v3498_v19 = vunpack.i.h.bf16 %v3496_v17  ;;  %v3497_v21 = vunpack.i.l.bf16 %v3496_v17 }
 0x4de   :  { %v3348_v15 = vpop.f32.mrf.mxu1 }
 0x4df   :  { %v2283_v29 = vsel %vm551_vm1, %v4314_v23, %v3498_v19  ;;  %v2282_v52 = vsel %vm551_vm1, %v4323_v61, %v3497_v21 }
 0x4e0   :  { %v2182_v3 = vpop.f32.mrf.mxu1 }
 0x4e1   :  { %v3519_v16 = vpack.i.bf16 %v2228_v8, %v2182_v3  ;;  %v3686_v8 = vld [vmem:[#allocation2 + $0x10] sm:$0xff] }
 0x4e2   :  { %v3359_v11 = vpop.f32.mrf.mxu1 }
 0x4e3   :  { %3520 = vrot.lane.b32.xlu1 %v3519_v16, %s3830_s2 }
 0x4e4   :  { %v2185_v9 = vpop.f32.mrf.mxu1  ;;  %v3501_v10 = vpop.permute.xlu1 %3500 }
 0x4e5   :  { %v3503_v5 = vunpack.i.h.bf16 %v3501_v10  ;;  %v3502_v7 = vunpack.i.l.bf16 %v3501_v10 }
 0x4e6   :  { %v3360_v30 = vpop.f32.mrf.mxu1 }
 0x4e7   :  { %v2285_v61 = vsel %vm551_vm1, %v4316_v43, %v3503_v5  ;;  %v2284_v41 = vsel %vm551_vm1, %v4330_v2, %v3502_v7  ;;  %v2997_v43 = vld [vmem:[%s4427_s4] ss:$0 sm:$0xff]  ;;  %v3582_v5 = vld [vmem:[#allocation8 + $0x10] ss:$8 sps:$4 sm:$0xff]   ;;  %v3587_v7 = vld [vmem:[#allocation8 + $0x4] ss:$8 sps:$4 sm:$0xff]  }
 0x518   :  { %v3506_v18 = vpop.permute.xlu1 %3505 }
 0x519   :  { %v3508_v22 = vunpack.i.h.bf16 %v3506_v18  ;;  %v3507_v25 = vunpack.i.l.bf16 %v3506_v18 }
 0x51b   :  { %v2288_v55 = vsel %vm2286_vm4, %v2283_v29, %v3508_v22  ;;  %v2287_v35 = vsel %vm2286_vm4, %v2282_v52, %v3507_v25  ;;  %v3567_v29 = vld [vmem:[#allocation8 + $0x60] ss:$8 sps:$4 sm:$0xff]   ;;  %v3572_v52 = vld [vmem:[#allocation8 + $0x54] ss:$8 sps:$4 sm:$0xff]  }
 0x520   :  { %v3511_v40 = vpop.permute.xlu1 %3510 }
 0x521   :  { %v3513_v14 = vunpack.i.h.bf16 %v3511_v40  ;;  %v3512_v39 = vunpack.i.l.bf16 %v3511_v40  ;;  %v3576_v40 = vld [vmem:[#allocation8 + $0x30] ss:$8 sps:$4 sm:$0xff]  }
 0x523   :  { %v2290_v44 = vsel %vm2286_vm4, %v2285_v61, %v3513_v14  ;;  %v2289_v45 = vsel %vm2286_vm4, %v2284_v41, %v3512_v39  ;;  %v3585_v14 = vld [vmem:[#allocation8] ss:$8 sps:$4 sm:$0xff]   ;;  %v3588_v39 = vld [vmem:[#allocation10 + $0x78] sm:$0xff]   ;;  %v3590_v61 = vld [vmem:[#allocation10 + $0x70] sm:$0xff]  }
 0x524   :  { %3127 = vmatprep.subr.bf16.mxu1 %v3588_v39  ;;  %v3591_v41 = vld [vmem:[#allocation10 + $0x30] sm:$0xff]  }
 0x54d   :  { %v3516_v28 = vpop.permute.xlu0 %3515 }
 0x54e   :  { %v3518_v31 = vunpack.i.h.bf16 %v3516_v28  ;;  %v3517_v32 = vunpack.i.l.bf16 %v3516_v28  ;;  %v3569_v28 = vld [vmem:[#allocation8 + $0x64] ss:$8 sps:$4 sm:$0xff]  }
 0x54f   :  { %2601 = vmatprep.subr.bf16.mxu0 %v3569_v28  ;;  %v3602_v28 = vld [vmem:[#allocation10 + $0x40] sm:$0xff]  }
 0x550   :  { %v2292_v42 = vsel %vm2291_vm5, %v2287_v35, %v3517_v32  ;;  %v2293_v47 = vsel %vm2291_vm5, %v2288_v55, %v3518_v31  ;;  %2602 = vmatpush1.bf16.msra.mxu0 %v3567_v29  ;;  %v3570_v31 = vld [vmem:[#allocation8 + $0x50] ss:$8 sps:$4 sm:$0xff]   ;;  %v3575_v32 = vld [vmem:[#allocation8 + $0x44] ss:$8 sps:$4 sm:$0xff]   ;;  %v3573_v55 = vld [vmem:[#allocation8 + $0x40] ss:$8 sps:$4 sm:$0xff]  }
 0x551   :  { %v2296_v26 = vpack.c.bf16 %v2293_v47, %v2292_v42  ;;  %2603 = vmatprep.subr.bf16.mxu0 %v3572_v52  ;;  %v3578_v35 = vld [vmem:[#allocation8 + $0x34] ss:$8 sps:$4 sm:$0xff]   ;;  %v3581_v42 = vld [vmem:[#allocation8 + $0x24] ss:$8 sps:$4 sm:$0xff]   ;;  %v3579_v47 = vld [vmem:[#allocation8 + $0x20] ss:$8 sps:$4 sm:$0xff]  }
 0x552   :  { %v3603_v29 = vld [vmem:[#allocation10] sm:$0xff]  }
 0x553   :  { %3383 = vmatprep.mubr.bf16.mxu1 %v2296_v26  ;;  %v3584_v26 = vld [vmem:[#allocation8 + $0x14] ss:$8 sps:$4 sm:$0xff]  }
 0x554   :  { %2604 = vmatpush1.bf16.msra.mxu0 %v3570_v31 }
 0x555   :  { %v3521_v23 = vpop.permute.xlu1 %3520  ;;  %2605 = vmatprep.subr.bf16.mxu0 %v3575_v32 }
 0x556   :  { %v3523_v37 = vunpack.i.h.bf16 %v3521_v23  ;;  %v3522_v62 = vunpack.i.l.bf16 %v3521_v23  ;;  %v3589_v23 = vld [vmem:[#allocation10 + $0x38] sm:$0xff]  }
 0x558   :  { %v2295_v46 = vsel %vm2291_vm5, %v2290_v44, %v3523_v37  ;;  %v2294_v36 = vsel %vm2291_vm5, %v2289_v45, %v3522_v62  ;;  %2606 = vmatpush1.bf16.msra.mxu0 %v3573_v55  ;;  %v3592_v37 = vld [vmem:[#allocation10 + $0x68] sm:$0xff]   ;;  %v3594_v44 = vld [vmem:[#allocation10 + $0x60] sm:$0xff]  }
 0x559   :  { %v2297_v49 = vpack.c.bf16 %v2295_v46, %v2294_v36  ;;  %2607 = vmatprep.subr.bf16.mxu0 %v3578_v35  ;;  %v3593_v62 = vld [vmem:[#allocation10 + $0x28] sm:$0xff]   ;;  %v3595_v45 = vld [vmem:[#allocation10 + $0x20] sm:$0xff]   ;;  %v3596_v46 = vld [vmem:[#allocation10 + $0x58] sm:$0xff]  }
 0x55a   :  { %v3597_v36 = vld [vmem:[#allocation10 + $0x18] sm:$0xff]  }
 0x55b   :  { %3384 = vmatmul.mubr.bf16.vlgmr.msra.gmra.mxu1 %v2297_v49 }
 0x55c   :  { %2608 = vmatpush1.bf16.msra.mxu0 %v3576_v40  ;;  %3128 = vmatpush3.bf16.msra.mxu1 %v3589_v23 }
 0x55d   :  { %2609 = vmatprep.subr.bf16.mxu0 %v3581_v42  ;;  %3129 = vmatprep.subr.bf16.mxu1 %v3590_v61 }
 0x560   :  { %2610 = vmatpush1.bf16.msra.mxu0 %v3579_v47  ;;  %3130 = vmatpush3.bf16.msra.mxu1 %v3591_v41 }
 0x561   :  { %2611 = vmatprep.subr.bf16.mxu0 %v3584_v26  ;;  %3131 = vmatprep.subr.bf16.mxu1 %v3592_v37 }
 0x564   :  { %2612 = vmatpush1.bf16.msra.mxu0 %v3582_v5  ;;  %3132 = vmatpush3.bf16.msra.mxu1 %v3593_v62 }
 0x565   :  { %2613 = vmatprep.subr.bf16.mxu0 %v3587_v7  ;;  %3133 = vmatprep.subr.bf16.mxu1 %v3594_v44 }
 0x568   :  { %2614 = vmatpush1.bf16.msra.mxu0 %v3585_v14  ;;  %3134 = vmatpush3.bf16.msra.mxu1 %v3595_v45 }
 0x569   :  { %3135 = vmatprep.subr.bf16.mxu1 %v3596_v46 }
 0x56c   :  { %3136 = vmatpush3.bf16.msra.mxu1 %v3597_v36 }
 0x61b   :  { %v3385_v58 = vpop.f32.mrf.mxu1 }
 0x61c   :  { %v2412_v27 = vadd.f32 %v3385_v58, %v2997_v43 }
 0x61d   :  { %v2403_v63 = vpop.f32.mrf.mxu1 }
 0x61e   :  { %v2404_v50 = vadd.f32 %v2997_v43, %v2403_v63  ;;  %v2420_v56 = vadd.f32 %v3686_v8, %v2412_v27  ;;  %v3006_v8 = vld [vmem:[%s4428_s5] ss:$0 sm:$0xff] }
 0x61f   :  { %v3386_v2 = vpop.f32.mrf.mxu1 }
 0x620   :  { %v2418_v51 = vadd.f32 %v3684_v20, %v2404_v50  ;;  %v2415_v4 = vadd.f32 %v3386_v2, %v2997_v43 }
 0x621   :  { %v2406_v53 = vpop.f32.mrf.mxu1 }
 0x622   :  { %v2407_v54 = vadd.f32 %v2997_v43, %v2406_v53  ;;  %2424 = vadd.xlane.f32.xlu0 %v2418_v51  ;;  %v2421_v60 = vadd.f32 %v3687_v59, %v2415_v4 }
 0x624   :  { %v2419_v13 = vadd.f32 %v3685_v48, %v2407_v54 }
 0x626   :  { %2426 = vadd.xlane.f32.xlu1 %v2419_v13  ;;  %2428 = vadd.xlane.f32.xlu0 %v2420_v56 }
 0x62a   :  { %2430 = vadd.xlane.f32.xlu0 %v2421_v60 }
 0x6ab   :  { %v2425_v12 = vpop.xlane.xlu0 %2424 }
 0x6ac   :  { %v2433_v6 = vmul.f32 0.0078125, %v2425_v12 }
 0x6ae   :  { %v4358_v57 = vsub.f32 %v2418_v51, %v2433_v6 }
 0x6af   :  { %v2427_v15 = vpop.xlane.xlu1 %2426  ;;  %v2429_v3 = vpop.xlane.xlu0 %2428 }
 0x6b0   :  { %v2434_v16 = vmul.f32 0.0078125, %v2427_v15  ;;  %v2435_v11 = vmul.f32 0.0078125, %v2429_v3  ;;  %v2441_v9 = vmul.f32 %v4358_v57, %v4358_v57 }
 0x6b2   :  { %v4362_v30 = vsub.f32 %v2419_v13, %v2434_v16  ;;  %v4364_v17 = vsub.f32 %v2420_v56, %v2435_v11  ;;  %2445 = vadd.xlane.f32.xlu1 %v2441_v9 }
 0x6b3   :  { %v2431_v10 = vpop.xlane.xlu0 %2430 }
 0x6b4   :  { %v2436_v18 = vmul.f32 0.0078125, %v2431_v10  ;;  %v2442_v19 = vmul.f32 %v4362_v30, %v4362_v30  ;;  %v2443_v21 = vmul.f32 %v4364_v17, %v4364_v17 }
 0x6b6   :  { %v4370_v22 = vsub.f32 %v2421_v60, %v2436_v18  ;;  %2447 = vadd.xlane.f32.xlu0 %v2442_v19  ;;  %2449 = vadd.xlane.f32.xlu1 %v2443_v21  ;;  %v3598_v21 = vld [vmem:[#allocation10 + $0x50] sm:$0xff]  }
 0x6b7   :  { %3137 = vmatprep.subr.bf16.mxu1 %v3598_v21 }
 0x6b8   :  { %v2444_v25 = vmul.f32 %v4370_v22, %v4370_v22 }
 0x6ba   :  { %2451 = vadd.xlane.f32.xlu0 %v2444_v25  ;;  %v3601_v25 = vld [vmem:[#allocation10 + $0x8] sm:$0xff]  }
 0x73b   :  { %v2446_v49 = vpop.xlane.xlu1 %2445 }
 0x73c   :  { %v2453_v58 = vmul.f32 0.0078125, %v2446_v49 }
 0x73e   :  { %v2457_v43 = vadd.f32 1e-05, %v2453_v58 }
 0x73f   :  { %v2450_v63 = vpop.xlane.xlu1 %2449  ;;  %v2448_v50 = vpop.xlane.xlu0 %2447 }
 0x740   :  { %3668 = vrsqrt.f32 %v2457_v43  ;;  %v2455_v2 = vmul.f32 0.0078125, %v2450_v63  ;;  %v2454_v27 = vmul.f32 0.0078125, %v2448_v50 }
 0x742   :  { %v2458_v20 = vadd.f32 1e-05, %v2454_v27  ;;  %v2459_v51 = vadd.f32 1e-05, %v2455_v2  ;;  %v3024_v27 = vld [vmem:[%s4433_s10] ss:$0 sm:$0xff] }
 0x743   :  { %v2452_v53 = vpop.xlane.xlu0 %2451 }
 0x744   :  { %v2456_v54 = vmul.f32 0.0078125, %v2452_v53  ;;  %3670 = vrsqrt.f32 %v2458_v20 }
 0x745   :  { %3672 = vrsqrt.f32 %v2459_v51 }
 0x746   :  { %v2460_v4 = vadd.f32 1e-05, %v2456_v54 }
 0x748   :  { %3674 = vrsqrt.f32 %v2460_v4 }
 0x74d   :  { %v3669_v48 = vpop.eup %3668 }
 0x74e   :  { %v2465_v13 = vmul.f32 %v3669_v48, %v4358_v57 }
 0x750   :  { %v2475_v60 = vmul.f32 %v3006_v8, %v2465_v13 }
 0x751   :  { %v3671_v56 = vpop.eup %3670 }
 0x752   :  { %v2466_v59 = vmul.f32 %v3671_v56, %v4362_v30  ;;  %v3673_v1 = vpop.eup %3672  ;;  %v4383_v3 = vadd.f32 %v3007_v24, %v2475_v60 }
 0x753   :  { %v2467_v16 = vmul.f32 %v3673_v1, %v4364_v17  ;;  %v3600_v17 = vld [vmem:[#allocation10 + $0x48] sm:$0xff]  }
 0x754   :  { %v2476_v6 = vmul.f32 %v3006_v8, %v2466_v59 }
 0x755   :  { %v3675_v12 = vpop.eup %3674  ;;  %v2477_v30 = vmul.f32 %v3006_v8, %v2467_v16 }
 0x756   :  { %v2468_v15 = vmul.f32 %v3675_v12, %v4370_v22  ;;  %v4385_v57 = vadd.f32 %v3007_v24, %v2476_v6  ;;  %v3599_v22 = vld [vmem:[#allocation10 + $0x10] sm:$0xff]  }
 0x757   :  { %v4393_v18 = vadd.f32 %v3007_v24, %v2477_v30  ;;  %3138 = vmatpush3.bf16.msra.mxu1 %v3599_v22 }
 0x758   :  { %v2489_v11 = vpack.c.bf16 %v4385_v57, %v4383_v3  ;;  %v2478_v9 = vmul.f32 %v3006_v8, %v2468_v15  ;;  %3139 = vmatprep.subr.bf16.mxu1 %v3600_v17 }
 0x75a   :  { %2632 = vmatmul.mubr.bf16.vlgmr.msra.gmra.mxu0 %v2489_v11  ;;  %v4391_v10 = vadd.f32 %v3007_v24, %v2478_v9 }
 0x75b   :  { %2641 = vmatprep.mubr.bf16.mxu0 %v3827_v0  ;;  %3140 = vmatpush3.bf16.msra.mxu1 %v3601_v25  ;;  %v2507_v0 = vld [vmem:[%s4431_s8] sm:$0x3] }
 0x75c   :  { %v2490_v19 = vpack.c.bf16 %v4391_v10, %v4393_v18  ;;  %3141 = vmatprep.subr.bf16.mxu1 %v3602_v28  ;;  %v2516_v31 = vrot.slane %v2507_v0, %v160_v34  ;;  %v2512_v32 = vrot.slane %v2507_v0, %v156_v38 }
 0x75f   :  { %3142 = vmatpush3.bf16.msra.mxu1 %v3603_v29 }
 0x762   :  { %2642 = vmatmul.mubr.bf16.gmra.mxu0 %v2490_v19 }
 0x81a   :  { %v2633_v52 = vpop.f32.mrf.mxu0 }
 0x81b   :  { %v2634_v47 = vadd.f32 %v2633_v52, %v2512_v32 }
 0x81c   :  { %v2635_v55 = vpop.f32.mrf.mxu0 }
 0x81d   :  { %v2636_v40 = vadd.f32 %v2635_v55, %v2516_v31  ;;  %v2652_v61 = vmax.f32 %v2634_v47, 0.0 }
 0x81e   :  { %v2637_v35 = vpop.f32.mrf.mxu0 }
 0x81f   :  { %v2638_v42 = vadd.f32 %v2637_v35, %v2512_v32  ;;  %v2653_v39 = vmax.f32 %v2636_v40, 0.0 }
 0x820   :  { %v2639_v26 = vpop.f32.mrf.mxu0 }
 0x821   :  { %v2640_v5 = vadd.f32 %v2639_v26, %v2516_v31  ;;  %v2654_v7 = vmax.f32 %v2638_v42, 0.0 }
 0x822   :  { %v2643_v14 = vpop.f32.mrf.mxu0 }
 0x823   :  { %v2655_v23 = vmax.f32 %v2640_v5, 0.0  ;;  %v2660_v62 = vpack.c.bf16 %v2654_v7, %v2652_v61  ;;  %v2644_v33 = vadd.f32 %v2643_v14, %v2512_v32 }
 0x824   :  { %v2645_v41 = vpop.f32.mrf.mxu0 }
 0x825   :  { %v2661_v37 = vpack.c.bf16 %v2655_v23, %v2653_v39  ;;  %v2646_v34 = vadd.f32 %v2645_v41, %v2516_v31  ;;  %v2656_v43 = vmax.f32 %v2644_v33, 0.0 }
 0x826   :  { %v2647_v44 = vpop.f32.mrf.mxu0 }
 0x827   :  { %v2648_v45 = vadd.f32 %v2647_v44, %v2512_v32  ;;  %2831 = vmatprep.mubr.bf16.mxu1 %v2661_v37  ;;  %v2657_v49 = vmax.f32 %v2646_v34, 0.0  ;;  %v3041_v37 = vld [vmem:[%s4434_s11] ss:$0 sm:$0xff]  ;;  %s3832_s11 = smov [#allocation11]  }
 0x828   :  { %v2649_v38 = vpop.f32.mrf.mxu0  ;;  %2832 = vmatmul.mubr.bf16.vlgmr.msra.gmra.mxu1 %v2660_v62  ;;  %v3042_v44 = vld [vmem:[%s4435_s12] ss:$0 sm:$0xff]  ;;  %s2927_s29 = sshll.u32 %s3832_s11, 4  ;;  %s2928_s29 = int_to_ptr.vmem [resolvable:$true] %s2927_s29 }
 0x829   :  { %v2650_v46 = vadd.f32 %v2649_v38, %v2516_v31  ;;  %v2658_v36 = vmax.f32 %v2648_v45, 0.0  ;;  %s3788_s12 = scalar_lea.vmem %s2928_s29, 512  ;;  %p3793_p12 = scmp.lt.s32.totalorder %s2928_s29, %s2928_s29 }
 0x82a   :  { %p3789_p11 = scmp.ne.s32.totalorder %s2928_s29, %s3788_s12  ;;  %p3794_p13 = scmp.lt.s32.totalorder %s3788_s12, %s3788_s12 }
 0x82b   :  { %v2659_v58 = vmax.f32 %v2650_v46, 0.0  ;;  %v2662_v50 = vpack.c.bf16 %v2658_v36, %v2656_v43 }
 0x82c   :  { %p3795_p0 = por %p3794_p13, %p3793_p12 }
 0x82d   :  { %v2663_v63 = vpack.c.bf16 %v2659_v58, %v2657_v49 }
 0x82e   :  { %p3796_p1 = pnand %p3795_p0, %p3789_p11 }
 0x82f   :  { %2839 = vmatprep.mubr.bf16.mxu1 %v2663_v63 }
 0x830   :  { %2840 = vmatmul.mubr.bf16.gmra.mxu1 %v2662_v50 }
 0x8e8   :  { %v3143_v2 = vpop.f32.mrf.mxu1 }
 0x8ea   :  { %v3144_v20 = vpop.f32.mrf.mxu1 }
 0x8eb   :  { %v3145_v51 = vadd.f32 %v3144_v20, %v3143_v2 }
 0x8ec   :  { %v3146_v53 = vpop.f32.mrf.mxu1 }
 0x8ed   :  { %v2834_v54 = vadd.f32 %v3145_v51, %v3024_v27 }
 0x8ee   :  { %v3147_v4 = vpop.f32.mrf.mxu1 }
 0x8ef   :  { %v3148_v48 = vadd.f32 %v3147_v4, %v3146_v53  ;;  %v2848_v13 = vadd.f32 %v2834_v54, %v4383_v3 }
 0x8f0   :  { %v3149_v8 = vpop.f32.mrf.mxu1 }
 0x8f1   :  { %v2837_v56 = vadd.f32 %v3148_v48, %v3024_v27  ;;  %2854 = vadd.xlane.f32.xlu1 %v2848_v13 }
 0x8f2   :  { %v3150_v59 = vpop.f32.mrf.mxu1 }
 0x8f3   :  { %v3151_v60 = vadd.f32 %v3150_v59, %v3149_v8  ;;  %v2849_v1 = vadd.f32 %v2837_v56, %v4385_v57 }
 0x8f4   :  { %v3152_v24 = vpop.f32.mrf.mxu1 }
 0x8f5   :  { %v2842_v12 = vadd.f32 %v3151_v60, %v3024_v27  ;;  %2856 = vadd.xlane.f32.xlu0 %v2849_v1 }
 0x8f6   :  { %v3153_v6 = vpop.f32.mrf.mxu1 }
 0x8f7   :  { %v3154_v15 = vadd.f32 %v3153_v6, %v3152_v24  ;;  %v2850_v16 = vadd.f32 %v2842_v12, %v4393_v18 }
 0x8f9   :  { %v2845_v11 = vadd.f32 %v3154_v15, %v3024_v27  ;;  %2858 = vadd.xlane.f32.xlu1 %v2850_v16 }
 0x8fb   :  { %v2851_v9 = vadd.f32 %v2845_v11, %v4391_v10 }
 0x8fd   :  { %2860 = vadd.xlane.f32.xlu0 %v2851_v9 }
 0x97a   :  { %v2855_v3 = vpop.xlane.xlu1 %2854 }
 0x97b   :  { %v2862_v30 = vmul.f32 0.0078125, %v2855_v3 }
 0x97d   :  { %v2866_v19 = vsub.f32 %v2848_v13, %v2862_v30 }
 0x97e   :  { %v2857_v21 = vpop.xlane.xlu0 %2856 }
 0x97f   :  { %v2863_v22 = vmul.f32 0.0078125, %v2857_v21  ;;  %v2870_v17 = vmul.f32 %v2866_v19, %v2866_v19 }
 0x981   :  { %v2867_v25 = vsub.f32 %v2849_v1, %v2863_v22  ;;  %2874 = vadd.xlane.f32.xlu1 %v2870_v17 }
 0x982   :  { %v2859_v57 = vpop.xlane.xlu1 %2858 }
 0x983   :  { %v2864_v28 = vmul.f32 0.0078125, %v2859_v57  ;;  %v2871_v29 = vmul.f32 %v2867_v25, %v2867_v25 }
 0x985   :  { %v2868_v0 = vsub.f32 %v2850_v16, %v2864_v28  ;;  %2876 = vadd.xlane.f32.xlu0 %v2871_v29 }
 0x986   :  { %v2861_v52 = vpop.xlane.xlu0 %2860 }
 0x987   :  { %v2865_v18 = vmul.f32 0.0078125, %v2861_v52  ;;  %v2872_v31 = vmul.f32 %v2868_v0, %v2868_v0 }
 0x989   :  { %v2869_v32 = vsub.f32 %v2851_v9, %v2865_v18  ;;  %2878 = vadd.xlane.f32.xlu1 %v2872_v31 }
 0x98b   :  { %v2873_v10 = vmul.f32 %v2869_v32, %v2869_v32 }
 0x98d   :  { %2880 = vadd.xlane.f32.xlu0 %v2873_v10 }
 0xa0a   :  { %v2875_v55 = vpop.xlane.xlu1 %2874 }
 0xa0b   :  { %v2882_v35 = vmul.f32 0.0078125, %v2875_v55 }
 0xa0d   :  { %v2886_v40 = vadd.f32 1e-05, %v2882_v35 }
 0xa0e   :  { %v2877_v42 = vpop.xlane.xlu0 %2876 }
 0xa0f   :  { %3676 = vrsqrt.f32 %v2886_v40  ;;  %v2883_v47 = vmul.f32 0.0078125, %v2877_v42 }
 0xa11   :  { %v2887_v26 = vadd.f32 1e-05, %v2883_v47 }
 0xa12   :  { %v2879_v5 = vpop.xlane.xlu1 %2878 }
 0xa13   :  { %3678 = vrsqrt.f32 %v2887_v26  ;;  %v2884_v7 = vmul.f32 0.0078125, %v2879_v5 }
 0xa15   :  { %v2888_v14 = vadd.f32 1e-05, %v2884_v7 }
 0xa16   :  { %v2881_v39 = vpop.xlane.xlu0 %2880 }
 0xa17   :  { %3680 = vrsqrt.f32 %v2888_v14  ;;  %v2885_v23 = vmul.f32 0.0078125, %v2881_v39 }
 0xa19   :  { %v2889_v61 = vadd.f32 1e-05, %v2885_v23 }
 0xa1b   :  { %3682 = vrsqrt.f32 %v2889_v61 }
 0xa1c   :  { %v3677_v41 = vpop.eup %3676 }
 0xa1d   :  { %v2894_v62 = vmul.f32 %v3677_v41, %v2866_v19 }
 0xa1f   :  { %v2904_v34 = vmul.f32 %v3041_v37, %v2894_v62 }
 0xa20   :  { %v3679_v45 = vpop.eup %3678 }
 0xa21   :  { %v2895_v33 = vmul.f32 %v3679_v45, %v2867_v25  ;;  %v2914_v38 = vadd.f32 %v3042_v44, %v2904_v34 }
 0xa23   :  { %v2905_v46 = vmul.f32 %v3041_v37, %v2895_v33  ;;  %2918 = vst [vmem:[#allocation11] sm:$0xff] %v2914_v38 }
 0xa24   :  { %v3681_v36 = vpop.eup %3680 }
 0xa25   :  { %v2896_v49 = vmul.f32 %v3681_v36, %v2868_v0  ;;  %v2915_v58 = vadd.f32 %v3042_v44, %v2905_v46 }
 0xa27   :  { %v2906_v43 = vmul.f32 %v3041_v37, %v2896_v49  ;;  %2919 = vst [vmem:[#allocation11 + $0x8] sm:$0xff] %v2915_v58 }
 0xa28   :  { %v3683_v63 = vpop.eup %3682 }
 0xa29   :  { %v2897_v50 = vmul.f32 %v3683_v63, %v2869_v32  ;;  %v2916_v2 = vadd.f32 %v3042_v44, %v2906_v43 }
 0xa2b   :  { %v2907_v27 = vmul.f32 %v3041_v37, %v2897_v50  ;;  %2920 = vst [vmem:[#allocation11 + $0x10] sm:$0xff] %v2916_v2 }
 0xa2d   :  { %v2917_v20 = vadd.f32 %v3042_v44, %v2907_v27 }
 0xa2f   :  { %2921 = vst [vmem:[#allocation11 + $0x18] sm:$0xff] %v2917_v20 }
 0xa30   :  { %3799 = shalt.err (!%p3796_p1)
}
 0xa31   :  { %2933 = dma.vmem_to_hbm [thread:$0]  %s2928_s29, 512, %s4436_s13, [#allocation4], %s3821_s20, %s3821_s20, %s3822_s21  }
 0xa32   :  { %3814 = dma.done.wait [#allocation4], 512  }
 0xa33   :  { %3815 = vsyncadd [#allocation4], 4294966784 }
 0xa34   :  { %2937 = vsyncpa [#allocation3], 1 }
 0xa35   :  { %2938 = vsyncpa [#allocation6], 1 }
 0xa36   :  { %2939 = vsyncpa [#allocation9], 1 }
 0xa37   :  { %2940 = vsyncpa [#allocation4], 1 }

// kernel: tpu_custom_call.1
= control target key start
LH: loop header
LB: loop body
LE: loop exit
PB: predicated region body
PF: predicated region fallthrough
CT: control target
= control target key end

     0   :  { %18 = vsyncpa [#allocation3], 0  ;;  %s4423_s0 = inlined_call_operand.hbm [shape: f32[4,8,128], index: 0, kind: input, shape index: {}]   ;;  %s4424_s1 = inlined_call_operand.hbm [shape: bf16[128,384], index: 1, kind: input, shape index: {}]   ;;  %s4425_s2 = inlined_call_operand.vmem [shape: f32[1,384], index: 2, kind: input, shape index: {}]   ;;  %s4426_s3 = inlined_call_operand.hbm [shape: bf16[128,128], index: 3, kind: input, shape index: {}]   ;;  %s4427_s4 = inlined_call_operand.vmem [shape: f32[1,128], index: 4, kind: input, shape index: {}]   ;;  %s4428_s5 = inlined_call_operand.vmem [shape: f32[1,128], index: 5, kind: input, shape index: {}]   ;;  %s4429_s6 = inlined_call_operand.vmem [shape: f32[1,128], index: 6, kind: input, shape index: {}]   ;;  %s4430_s7 = inlined_call_operand.hbm [shape: bf16[128,256], index: 7, kind: input, shape index: {}]   ;;  %s4431_s8 = inlined_call_operand.vmem [shape: f32[1,256], index: 8, kind: input, shape index: {}]   ;;  %s4432_s9 = inlined_call_operand.hbm [shape: bf16[256,128], index: 9, kind: input, shape index: {}]   ;;  %s4433_s10 = inlined_call_operand.vmem [shape: f32[1,128], index: 10, kind: input, shape index: {}]   ;;  %s4434_s11 = inlined_call_operand.vmem [shape: f32[1,128], index: 11, kind: input, shape index: {}]   ;;  %s4435_s12 = inlined_call_operand.vmem [shape: f32[1,128], index: 12, kind: input, shape index: {}]   ;;  %s4436_s13 = inlined_call_operand.hbm [shape: f32[4,8,128], index: 13, kind: output, shape index: {}]  }
   0x1   :  { %19 = vsyncpa [#allocation6], 0 }
   0x2   :  { %20 = vsyncpa [#allocation9], 0 }
   0x3   :  { %21 = vsyncpa [#allocation4], 0  ;;  %s3816_s25 = smov [#allocation5]  }
   0x4   :  { %s39_s26 = sshll.u32 %s3816_s25, 4  ;;  %s40_s26 = int_to_ptr.vmem [resolvable:$true] %s39_s26 }
   0x5   :  { %s3696_s27 = scalar_lea.vmem %s40_s26, 3072  ;;  %p3701_p1 = scmp.lt.s32.totalorder %s40_s26, %s40_s26 }
   0x6   :  { %p3697_p0 = scmp.ne.s32.totalorder %s40_s26, %s3696_s27  ;;  %p3702_p2 = scmp.lt.s32.totalorder %s3696_s27, %s3696_s27 }
   0x8   :  { %p3703_p3 = por %p3702_p2, %p3701_p1 }
   0xa   :  { %p3704_p4 = pnand %p3703_p3, %p3697_p0 }
   0xc   :  { %3707 = shalt.err (!%p3704_p4)
}
   0xd   :  { %s3817_s28 = smov 192   ;;  %s3818_s29 = smov 12  }
   0xe   :  { %45 = dma.hbm_to_vmem [thread:$0]  %s4424_s1, 3072, %s40_s26, [#allocation6], %s3817_s28, %s3817_s28, %s3818_s29  }
   0xf   :  { %s3819_s15 = smov [#allocation8]   ;;  %s3820_s17 = smov [#allocation2]  }
  0x10   :  { %s71_s16 = sshll.u32 %s3819_s15, 4  ;;  %s27_s18 = sshll.u32 %s3820_s17, 4  ;;  %s72_s16 = int_to_ptr.vmem [resolvable:$true] %s71_s16  ;;  %s28_s18 = int_to_ptr.vmem [resolvable:$true] %s27_s18 }
  0x11   :  { %s3716_s19 = scalar_lea.vmem %s72_s16, 2048  ;;  %p3721_p6 = scmp.lt.s32.totalorder %s72_s16, %s72_s16 }
  0x12   :  { %p3717_p5 = scmp.ne.s32.totalorder %s72_s16, %s3716_s19  ;;  %p3722_p7 = scmp.lt.s32.totalorder %s3716_s19, %s3716_s19 }
  0x14   :  { %p3723_p8 = por %p3722_p7, %p3721_p6 }
  0x16   :  { %p3724_p9 = pnand %p3723_p8, %p3717_p5 }
  0x18   :  { %3727 = shalt.err (!%p3724_p9)
}
  0x19   :  { %s3821_s20 = smov 128   ;;  %s3822_s21 = smov 8  }
  0x1a   :  { %77 = dma.hbm_to_vmem [thread:$0]  %s4430_s7, 2048, %s72_s16, [#allocation9], %s3821_s20, %s3821_s20, %s3822_s21  }
  0x1b   :  { %s3736_s1 = scalar_lea.vmem %s28_s18, 512  ;;  %p3741_p11 = scmp.lt.s32.totalorder %s28_s18, %s28_s18 }
  0x1c   :  { %p3737_p10 = scmp.ne.s32.totalorder %s28_s18, %s3736_s1  ;;  %p3742_p12 = scmp.lt.s32.totalorder %s3736_s1, %s3736_s1 }
  0x1e   :  { %p3743_p13 = por %p3742_p12, %p3741_p11 }
  0x20   :  { %p3744_p0 = pnand %p3743_p13, %p3737_p10 }
  0x22   :  { %3747 = shalt.err (!%p3744_p0)
}
  0x23   :  { %33 = dma.hbm_to_vmem [thread:$0]  %s4423_s0, 512, %s28_s18, [#allocation3], %s3821_s20, %s3821_s20, %s3822_s21  }
  0x24   :  { %s3823_s26 = smov [#allocation7]  }
  0x25   :  { %s53_s27 = sshll.u32 %s3823_s26, 4  ;;  %s54_s27 = int_to_ptr.vmem [resolvable:$true] %s53_s27 }
  0x26   :  { %s3756_s28 = scalar_lea.vmem %s54_s27, 1024  ;;  %p3761_p2 = scmp.lt.s32.totalorder %s54_s27, %s54_s27 }
  0x27   :  { %p3757_p1 = scmp.ne.s32.totalorder %s54_s27, %s3756_s28  ;;  %p3762_p3 = scmp.lt.s32.totalorder %s3756_s28, %s3756_s28 }
  0x29   :  { %p3763_p4 = por %p3762_p3, %p3761_p2 }
  0x2b   :  { %p3764_p5 = pnand %p3763_p4, %p3757_p1 }
  0x2d   :  { %3767 = shalt.err (!%p3764_p5)
}
  0x2e   :  { %s3824_s7 = smov 64   ;;  %s3825_s29 = smov 4  }
  0x2f   :  { %59 = dma.hbm_to_vmem [thread:$0]  %s4426_s3, 1024, %s54_s27, [#allocation6], %s3824_s7, %s3824_s7, %s3825_s29  }
  0x30   :  { %s3826_s15 = smov [#allocation10]  }
  0x31   :  { %s85_s0 = sshll.u32 %s3826_s15, 4  ;;  %s86_s0 = int_to_ptr.vmem [resolvable:$true] %s85_s0 }
  0x32   :  { %s3776_s16 = scalar_lea.vmem %s86_s0, 2048  ;;  %p3781_p7 = scmp.lt.s32.totalorder %s86_s0, %s86_s0 }
  0x33   :  { %p3777_p6 = scmp.ne.s32.totalorder %s86_s0, %s3776_s16  ;;  %p3782_p8 = scmp.lt.s32.totalorder %s3776_s16, %s3776_s16 }
  0x35   :  { %p3783_p9 = por %p3782_p8, %p3781_p7 }
  0x37   :  { %p3784_p10 = pnand %p3783_p9, %p3777_p6 }
  0x39   :  { %3787 = shalt.err (!%p3784_p10)
}
  0x3a   :  { %91 = dma.hbm_to_vmem [thread:$0]  %s4432_s9, 2048, %s86_s0, [#allocation9], %s3824_s7, %s3824_s7, %s3825_s29  }
  0x3b   :  { %3808 = dma.done.wait [#allocation3], 512  }
  0x3c   :  { %3809 = vsyncadd [#allocation3], 4294966784 }
  0x3d   :  { %3810 = dma.done.wait [#allocation6], 4096  }
  0x3e   :  { %3811 = vsyncadd [#allocation6], 4294963200 }
  0x3f   :  { %3812 = dma.done.wait [#allocation9], 4096  }
  0x40   :  { %3813 = vsyncadd [#allocation9], 4294963200  ;;  %v3827_v0 = vmov 0   ;;  %v3524_v1 = vld [vmem:[#allocation5 + $0xac] ss:$12 sps:$4 sm:$0xff]   ;;  %v114_v8 = vld [vmem:[#allocation2] sm:$0xff]  ;;  %v154_v32 = vlaneseq }
  0x41   :  { %329 = vmatprep.mubr.bf16.mxu0 %v3827_v0  ;;  %v3526_v2 = vld [vmem:[#allocation5 + $0xa8] ss:$12 sps:$4 sm:$0xff]   ;;  %297 = vmatprep.subr.bf16.mxu0 %v3524_v1  ;;  %v3529_v4 = vld [vmem:[#allocation5 + $0x90] ss:$12 sps:$4 sm:$0xff]   ;;  %v3532_v6 = vld [vmem:[#allocation5 + $0x78] ss:$12 sps:$4 sm:$0xff]  }
  0x42   :  { %v3527_v3 = vld [vmem:[#allocation5 + $0x94] ss:$12 sps:$4 sm:$0xff]   ;;  %298 = vmatpush1.bf16.msra.mxu0 %v3526_v2  ;;  %v3530_v5 = vld [vmem:[#allocation5 + $0x7c] ss:$12 sps:$4 sm:$0xff]   ;;  %v3533_v7 = vld [vmem:[#allocation5 + $0x64] ss:$12 sps:$4 sm:$0xff]  }
  0x43   :  { %299 = vmatprep.subr.bf16.mxu0 %v3527_v3  ;;  %v3535_v9 = vld [vmem:[#allocation5 + $0x60] ss:$12 sps:$4 sm:$0xff]   ;;  %v3548_v13 = vld [vmem:[#allocation5 + $0xb0] ss:$12 sps:$4 sm:$0xff]   ;;  %v3549_v14 = vld [vmem:[#allocation5 + $0x98] ss:$12 sps:$4 sm:$0xff]  }
  0x44   :  { %v3536_v10 = vld [vmem:[#allocation5 + $0x4c] ss:$12 sps:$4 sm:$0xff]   ;;  %v3538_v15 = vld [vmem:[#allocation5 + $0x48] ss:$12 sps:$4 sm:$0xff]   ;;  %3155 = vmatprep.subr.bf16.mxu1 %v3548_v13  ;;  %v3541_v18 = vld [vmem:[#allocation5 + $0x30] ss:$12 sps:$4 sm:$0xff]  }
  0x45   :  { %v115_v11 = vld [vmem:[#allocation2 + $0x8] sm:$0xff]  ;;  %v3539_v16 = vld [vmem:[#allocation5 + $0x34] ss:$12 sps:$4 sm:$0xff]   ;;  %3156 = vmatpush3.bf16.msra.mxu1 %v3548_v13  ;;  %v3544_v21 = vld [vmem:[#allocation5 + $0x18] ss:$12 sps:$4 sm:$0xff]   ;;  %v3828_v30 = vmov 0.0  }
  0x46   :  { %300 = vmatpush1.bf16.msra.mxu0 %v3529_v4  ;;  %v118_v12 = vpack.c.bf16 %v115_v11, %v114_v8  ;;  %3157 = vmatprep.subr.bf16.mxu1 %v3549_v14  ;;  %v3550_v17 = vld [vmem:[#allocation5 + $0x80] ss:$12 sps:$4 sm:$0xff]   ;;  %v3542_v19 = vld [vmem:[#allocation5 + $0x1c] ss:$12 sps:$4 sm:$0xff]   ;;  %v3545_v22 = vld [vmem:[#allocation5 + $0x4] ss:$12 sps:$4 sm:$0xff]  }
  0x47   :  { %301 = vmatprep.subr.bf16.mxu0 %v3530_v5  ;;  %v3551_v20 = vld [vmem:[#allocation5 + $0x68] ss:$12 sps:$4 sm:$0xff]   ;;  %v3552_v23 = vld [vmem:[#allocation5 + $0x50] ss:$12 sps:$4 sm:$0xff]   ;;  %v3547_v24 = vld [vmem:[#allocation5] ss:$12 sps:$4 sm:$0xff]  }
  0x48   :  { %3171 = vmatprep.mubr.bf16.mxu1 %v118_v12  ;;  %v116_v25 = vld [vmem:[#allocation2 + $0x10] sm:$0xff]  ;;  %v117_v26 = vld [vmem:[#allocation2 + $0x18] sm:$0xff]  ;;  %v3554_v29 = vld [vmem:[#allocation5 + $0x20] ss:$12 sps:$4 sm:$0xff]   ;;  %vm3829_vm0 = vmmov 0   ;;  %v3936_v33 = vshrl.u32 %v154_v32, 7 }
  0x49   :  { %3158 = vmatpush3.bf16.msra.mxu1 %v3549_v14  ;;  %v119_v27 = vpack.c.bf16 %v117_v26, %v116_v25  ;;  %v3553_v28 = vld [vmem:[#allocation5 + $0x38] ss:$12 sps:$4 sm:$0xff]   ;;  %v3555_v31 = vld [vmem:[#allocation5 + $0x8] ss:$12 sps:$4 sm:$0xff]   ;;  %v3942_v35 = vld [vmem:[%s4425_s2] sm:$0x7] }
  0x4a   :  { %302 = vmatpush1.bf16.msra.mxu0 %v3532_v6  ;;  %3159 = vmatprep.subr.bf16.mxu1 %v3550_v17  ;;  %v160_v34 = vsub.s32 1, %v3936_v33  ;;  %v156_v38 = vsub.s32 0, %v3936_v33  ;;  %vm551_vm1 = vcmask 261120   ;;  %s3830_s2 = smov 96   ;;  %s3831_s19 = smov 32   ;;  %v164_v8 = vsub.s32 2, %v3936_v33 }
  0x4b   :  { %303 = vmatprep.subr.bf16.mxu0 %v3533_v7  ;;  %vm1500_vm2 = vcmask 1043456   ;;  %vm1288_vm3 = vcmask 64512   ;;  %vm2286_vm4 = vcmask 523264   ;;  %vm2291_vm5 = vcmask 785408  }
  0x4c   :  { %v161_v36 = vrot.slane %v3942_v35, %v160_v34  ;;  %v157_v42 = vrot.slane %v3942_v35, %v156_v38 }
  0x4d   :  { %3160 = vmatpush3.bf16.msra.mxu1 %v3550_v17 }
  0x4e   :  { %304 = vmatpush1.bf16.msra.mxu0 %v3535_v9  ;;  %3161 = vmatprep.subr.bf16.mxu1 %v3551_v20  ;;  %v3985_v9 = vrot.slane %v3942_v35, %v164_v8 }
  0x4f   :  { %305 = vmatprep.subr.bf16.mxu0 %v3536_v10 }
  0x51   :  { %3162 = vmatpush3.bf16.msra.mxu1 %v3551_v20 }
  0x52   :  { %306 = vmatpush1.bf16.msra.mxu0 %v3538_v15  ;;  %3163 = vmatprep.subr.bf16.mxu1 %v3552_v23 }
  0x53   :  { %307 = vmatprep.subr.bf16.mxu0 %v3539_v16 }
  0x55   :  { %3164 = vmatpush3.bf16.msra.mxu1 %v3552_v23 }
  0x56   :  { %308 = vmatpush1.bf16.msra.mxu0 %v3541_v18  ;;  %3165 = vmatprep.subr.bf16.mxu1 %v3553_v28 }
  0x57   :  { %309 = vmatprep.subr.bf16.mxu0 %v3542_v19 }
  0x59   :  { %3166 = vmatpush3.bf16.msra.mxu1 %v3553_v28 }
  0x5a   :  { %310 = vmatpush1.bf16.msra.mxu0 %v3544_v21  ;;  %3167 = vmatprep.subr.bf16.mxu1 %v3554_v29 }
  0x5b   :  { %311 = vmatprep.subr.bf16.mxu0 %v3545_v22 }
  0x5d   :  { %3168 = vmatpush3.bf16.msra.mxu1 %v3554_v29 }
  0x5e   :  { %312 = vmatpush1.bf16.msra.mxu0 %v3547_v24  ;;  %3169 = vmatprep.subr.bf16.mxu1 %v3555_v31 }
  0x5f   :  { %3175 = vmatprep.subr.bf16.mxu0 %v3828_v30 }
  0x61   :  { %330 = vmatmul.mubr.bf16.vlgmr.msra.gmra.mxu0 %v118_v12  ;;  %3170 = vmatpush3.bf16.msra.mxu1 %v3555_v31 }
  0x62   :  { %339 = vmatprep.mubr.bf16.mxu0 %v3827_v0  ;;  %3187 = vmatprep.subr.bf16.mxu1 %v3828_v30 }
  0x64   :  { %3172 = vmatmul.mubr.bf16.vlgmr.msra.gmra.mxu1 %v119_v27 }
  0x65   :  { %3189 = vmatprep.mubr.msk.bf16.mxu1 %vm3829_vm0, %v3828_v30 }
  0x69   :  { %340 = vmatmul.mubr.bf16.gmra.mxu0 %v119_v27 }
  0x6a   :  { %3177 = vmatprep.mubr.msk.bf16.mxu0 %vm3829_vm0, %v3828_v30 }
 0x121   :  { %v331_v37 = vpop.f32.mrf.mxu0 }
 0x122   :  { %v332_v48 = vadd.f32 %v331_v37, %v157_v42 }
 0x123   :  { %v333_v39 = vpop.f32.mrf.mxu0 }
 0x124   :  { %v334_v40 = vadd.f32 %v333_v39, %v161_v36  ;;  %v519_v55 = vpack.c.bf16 %v332_v48, %v332_v48  ;;  %v3173_v10 = vpop.f32.mrf.mxu1 }
 0x125   :  { %v335_v41 = vpop.f32.mrf.mxu0  ;;  %v3988_v11 = vadd.f32 %v3173_v10, %v3985_v9 }
 0x126   :  { %v535_v43 = vpack.c.bf16 %v334_v40, %v334_v40  ;;  %v336_v49 = vadd.f32 %v335_v41, %v157_v42  ;;  %v3990_v12 = vpop.f32.mrf.mxu1 }
 0x127   :  { %v337_v44 = vpop.f32.mrf.mxu0 }
 0x128   :  { %v338_v45 = vadd.f32 %v337_v44, %v161_v36  ;;  %v556_v46 = vsel %vm551_vm1, %v535_v43, 0  ;;  %v3409_v56 = vpack.i.bf16 %v336_v49, %v332_v48  ;;  %v520_v5 = vpack.c.bf16 %v336_v49, %v336_v49  ;;  %v3174_v13 = vpop.f32.mrf.mxu1 }
 0x129   :  { %v341_v47 = vpop.f32.mrf.mxu0  ;;  %3176 = vmatpush3.bf16.xpose.msra.mxu0 %v556_v46  ;;  %v3993_v14 = vadd.f32 %v3174_v13, %v3985_v9 }
 0x12a   :  { %v3404_v50 = vpack.i.bf16 %v338_v45, %v334_v40  ;;  %3181 = vmatprep.subr.bf16.mxu0 %v3828_v30  ;;  %v536_v53 = vpack.c.bf16 %v338_v45, %v338_v45  ;;  %v342_v62 = vadd.f32 %v341_v47, %v157_v42 }
 0x12b   :  { %v343_v51 = vpop.f32.mrf.mxu0 }
 0x12c   :  { %v344_v52 = vadd.f32 %v343_v51, %v161_v36  ;;  %3405 = vrot.lane.b32.xlu0 %v3404_v50, %s3830_s2  ;;  %v602_v60 = vsel %vm551_vm1, %v536_v53, 0  ;;  %v521_v3 = vpack.c.bf16 %v342_v62, %v342_v62 }
 0x12d   :  { %v345_v54 = vpop.f32.mrf.mxu0 }
 0x12e   :  { %v537_v57 = vpack.c.bf16 %v344_v52, %v344_v52  ;;  %v346_v63 = vadd.f32 %v345_v54, %v157_v42 }
 0x12f   :  { %v347_v58 = vpop.f32.mrf.mxu0 }
 0x130   :  { %v348_v59 = vadd.f32 %v347_v58, %v161_v36  ;;  %3410 = vrot.lane.b32.xlu0 %v3409_v56, %s3830_s2  ;;  %3178 = vmatmul.mubr.msk.bf16.vlgmr.msra.gmra.mxu0 %vm551_vm1, %v519_v55  ;;  %v648_v61 = vsel %vm551_vm1, %v537_v57, 0  ;;  %v3419_v4 = vpack.i.bf16 %v346_v63, %v342_v62  ;;  %v522_v7 = vpack.c.bf16 %v346_v63, %v346_v63 }
 0x131   :  { %3182 = vmatpush3.bf16.xpose.msra.mxu0 %v602_v60  ;;  %3188 = vmatpush3.bf16.xpose.msra.mxu1 %v648_v61 }
 0x132   :  { %v3414_v1 = vpack.i.bf16 %v348_v59, %v344_v52  ;;  %3183 = vmatprep.mubr.msk.bf16.mxu0 %vm3829_vm0, %v3828_v30  ;;  %3193 = vmatprep.subr.bf16.mxu0 %v3828_v30  ;;  %v538_v2 = vpack.c.bf16 %v348_v59, %v348_v59 }
 0x133   :  { %3199 = vmatprep.subr.bf16.mxu1 %v3828_v30 }
 0x134   :  { %3415 = vrot.lane.b32.xlu1 %v3414_v1, %s3830_s2  ;;  %3425 = vrot.lane.b32.xlu0 %v3404_v50, %s3824_s7  ;;  %v694_v6 = vsel %vm551_vm1, %v538_v2, 0 }
 0x138   :  { %3420 = vrot.lane.b32.xlu1 %v3419_v4, %s3830_s2  ;;  %3190 = vmatmul.mubr.msk.bf16.vlgmr.msra.gmra.mxu1 %vm551_vm1, %v521_v3 }
 0x139   :  { %3435 = vrot.lane.b32.xlu0 %v3414_v1, %s3824_s7  ;;  %3184 = vmatmul.mubr.msk.bf16.vlgmr.msra.gmra.mxu0 %vm551_vm1, %v520_v5 }
 0x13a   :  { %3194 = vmatpush3.bf16.xpose.msra.mxu0 %v694_v6  ;;  %3195 = vmatprep.mubr.msk.bf16.mxu0 %vm3829_vm0, %v3828_v30 }
 0x13b   :  { %3205 = vmatprep.subr.bf16.mxu0 %v3828_v30  ;;  %3201 = vmatprep.mubr.msk.bf16.mxu1 %vm3829_vm0, %v3828_v30 }
 0x13c   :  { %3430 = vrot.lane.b32.xlu1 %v3409_v56, %s3824_s7 }
 0x13d   :  { %3445 = vrot.lane.b32.xlu0 %v3404_v50, %s3831_s19 }
 0x140   :  { %3440 = vrot.lane.b32.xlu1 %v3419_v4, %s3824_s7 }
 0x141   :  { %3455 = vrot.lane.b32.xlu0 %v3414_v1, %s3831_s19  ;;  %3196 = vmatmul.mubr.msk.bf16.vlgmr.msra.gmra.mxu0 %vm551_vm1, %v522_v7 }
 0x142   :  { %3207 = vmatprep.mubr.msk.bf16.mxu0 %vm3829_vm0, %v3828_v30 }
 0x144   :  { %3450 = vrot.lane.b32.xlu1 %v3409_v56, %s3831_s19 }
 0x148   :  { %3460 = vrot.lane.b32.xlu1 %v3419_v4, %s3831_s19 }
 0x19e   :  { %v3406_v15 = vpop.permute.xlu0 %3405 }
 0x19f   :  { %v3408_v16 = vunpack.i.h.bf16 %v3406_v15  ;;  %v3407_v17 = vunpack.i.l.bf16 %v3406_v15 }
 0x1a1   :  { %v540_v18 = vpack.c.bf16 %v3408_v16, %v3408_v16  ;;  %v539_v19 = vpack.c.bf16 %v3407_v17, %v3407_v17 }
 0x1a2   :  { %v3411_v20 = vpop.permute.xlu0 %3410 }
 0x1a3   :  { %v740_v21 = vsel %vm551_vm1, %v539_v19, 0  ;;  %v786_v22 = vsel %vm551_vm1, %v540_v18, 0  ;;  %v3413_v23 = vunpack.i.h.bf16 %v3411_v20  ;;  %v3412_v24 = vunpack.i.l.bf16 %v3411_v20 }
 0x1a4   :  { %3200 = vmatpush3.bf16.xpose.msra.mxu1 %v740_v21  ;;  %3206 = vmatpush3.bf16.xpose.msra.mxu0 %v786_v22 }
 0x1a5   :  { %3211 = vmatprep.subr.bf16.mxu1 %v3828_v30  ;;  %3217 = vmatprep.subr.bf16.mxu0 %v3828_v30  ;;  %v524_v29 = vpack.c.bf16 %v3413_v23, %v3413_v23  ;;  %v523_v31 = vpack.c.bf16 %v3412_v24, %v3412_v24  ;;  %v387_v23 = vpop.f32.mrf.mxu1 }
 0x1a6   :  { %v3416_v25 = vpop.permute.xlu1 %3415  ;;  %v3426_v28 = vpop.permute.xlu0 %3425 }
 0x1a7   :  { %v3418_v26 = vunpack.i.h.bf16 %v3416_v25  ;;  %v3417_v27 = vunpack.i.l.bf16 %v3416_v25  ;;  %v3428_v37 = vunpack.i.h.bf16 %v3426_v28  ;;  %v3427_v39 = vunpack.i.l.bf16 %v3426_v28 }
 0x1a9   :  { %v542_v32 = vpack.c.bf16 %v3418_v26, %v3418_v26  ;;  %v541_v35 = vpack.c.bf16 %v3417_v27, %v3417_v27  ;;  %v544_v44 = vpack.c.bf16 %v3428_v37, %v3428_v37  ;;  %v543_v45 = vpack.c.bf16 %v3427_v39, %v3427_v39 }
 0x1aa   :  { %v3421_v36 = vpop.permute.xlu1 %3420  ;;  %v4041_v26 = vadd.f32 %v3990_v12, %v3985_v9  ;;  %v4044_v27 = vadd.f32 %v387_v23, %v3985_v9 }
 0x1ab   :  { %3202 = vmatmul.mubr.msk.bf16.vlgmr.msra.gmra.mxu1 %vm551_vm1, %v523_v31  ;;  %3208 = vmatmul.mubr.msk.bf16.vlgmr.msra.gmra.mxu0 %vm551_vm1, %v524_v29  ;;  %v832_v40 = vsel %vm551_vm1, %v541_v35, 0  ;;  %v878_v41 = vsel %vm551_vm1, %v542_v32, 0  ;;  %v3423_v42 = vunpack.i.h.bf16 %v3421_v36  ;;  %v3422_v43 = vunpack.i.l.bf16 %v3421_v36  ;;  %v3436_v46 = vpop.permute.xlu0 %3435 }
 0x1ac   :  { %3212 = vmatpush3.bf16.xpose.msra.mxu1 %v832_v40  ;;  %3218 = vmatpush3.bf16.xpose.msra.mxu0 %v878_v41  ;;  %v3438_v50 = vunpack.i.h.bf16 %v3436_v46  ;;  %v3437_v51 = vunpack.i.l.bf16 %v3436_v46  ;;  %v924_v52 = vsel %vm551_vm1, %v543_v45, 0  ;;  %v970_v53 = vsel %vm551_vm1, %v544_v44, 0 }
 0x1ad   :  { %3213 = vmatprep.mubr.msk.bf16.mxu1 %vm3829_vm0, %v3828_v30  ;;  %3219 = vmatprep.mubr.msk.bf16.mxu0 %vm3829_vm0, %v3828_v30  ;;  %v526_v47 = vpack.c.bf16 %v3423_v42, %v3423_v42  ;;  %v525_v48 = vpack.c.bf16 %v3422_v43, %v3422_v43  ;;  %v1481_v9 = vpack.c.bf16 %v4041_v26, %v4041_v26 }
 0x1ae   :  { %3223 = vmatprep.subr.bf16.mxu1 %v3828_v30  ;;  %3229 = vmatprep.subr.bf16.mxu0 %v3828_v30  ;;  %v3431_v49 = vpop.permute.xlu1 %3430  ;;  %v546_v56 = vpack.c.bf16 %v3438_v50, %v3438_v50  ;;  %v545_v57 = vpack.c.bf16 %v3437_v51, %v3437_v51  ;;  %v1482_v12 = vpack.c.bf16 %v4044_v27, %v4044_v27 }
 0x1af   :  { %v3433_v54 = vunpack.i.h.bf16 %v3431_v49  ;;  %v3432_v55 = vunpack.i.l.bf16 %v3431_v49  ;;  %v3446_v58 = vpop.permute.xlu0 %3445  ;;  %v1502_v39 = vsel %vm1500_vm2, %v1481_v9, 0  ;;  %v4072_v41 = vpack.i.bf16 %v3993_v14, %v3988_v11 }
 0x1b0   :  { %v3448_v62 = vunpack.i.h.bf16 %v3446_v58  ;;  %v3447_v63 = vunpack.i.l.bf16 %v3446_v58  ;;  %v1016_v1 = vsel %vm551_vm1, %v545_v57, 0  ;;  %v1062_v2 = vsel %vm551_vm1, %v546_v56, 0 }
 0x1b1   :  { %v528_v59 = vpack.c.bf16 %v3433_v54, %v3433_v54  ;;  %v527_v60 = vpack.c.bf16 %v3432_v55, %v3432_v55  ;;  %v1548_v40 = vsel %vm1500_vm2, %v1482_v12, 0 }
 0x1b2   :  { %v3441_v61 = vpop.permute.xlu1 %3440  ;;  %v548_v5 = vpack.c.bf16 %v3448_v62, %v3448_v62  ;;  %v547_v6 = vpack.c.bf16 %v3447_v63, %v3447_v63 }
 0x1b3   :  { %3214 = vmatmul.mubr.msk.bf16.vlgmr.msra.gmra.mxu1 %vm551_vm1, %v525_v48  ;;  %3220 = vmatmul.mubr.msk.bf16.vlgmr.msra.gmra.mxu0 %vm551_vm1, %v526_v47  ;;  %v3443_v3 = vunpack.i.h.bf16 %v3441_v61  ;;  %v3442_v4 = vunpack.i.l.bf16 %v3441_v61  ;;  %v3456_v7 = vpop.permute.xlu0 %3455 }
 0x1b4   :  { %3224 = vmatpush3.bf16.xpose.msra.mxu1 %v924_v52  ;;  %3230 = vmatpush3.bf16.xpose.msra.mxu0 %v970_v53  ;;  %v3458_v15 = vunpack.i.h.bf16 %v3456_v7  ;;  %v3457_v16 = vunpack.i.l.bf16 %v3456_v7  ;;  %v1108_v17 = vsel %vm551_vm1, %v547_v6, 0  ;;  %v1154_v18 = vsel %vm551_vm1, %v548_v5, 0 }
 0x1b5   :  { %3225 = vmatprep.mubr.msk.bf16.mxu1 %vm3829_vm0, %v3828_v30  ;;  %3231 = vmatprep.mubr.msk.bf16.mxu0 %vm3829_vm0, %v3828_v30  ;;  %v530_v8 = vpack.c.bf16 %v3443_v3, %v3443_v3  ;;  %v529_v10 = vpack.c.bf16 %v3442_v4, %v3442_v4 }
 0x1b6   :  { %3235 = vmatprep.subr.bf16.mxu1 %v3828_v30  ;;  %3241 = vmatprep.subr.bf16.mxu0 %v3828_v30  ;;  %v3451_v13 = vpop.permute.xlu1 %3450  ;;  %v550_v21 = vpack.c.bf16 %v3458_v15, %v3458_v15  ;;  %v549_v22 = vpack.c.bf16 %v3457_v16, %v3457_v16 }
 0x1b7   :  { %v3453_v19 = vunpack.i.h.bf16 %v3451_v13  ;;  %v3452_v20 = vunpack.i.l.bf16 %v3451_v13 }
 0x1b8   :  { %v1200_v29 = vsel %vm551_vm1, %v549_v22, 0  ;;  %v1246_v31 = vsel %vm551_vm1, %v550_v21, 0 }
 0x1b9   :  { %v532_v24 = vpack.c.bf16 %v3453_v19, %v3453_v19  ;;  %v531_v25 = vpack.c.bf16 %v3452_v20, %v3452_v20 }
 0x1ba   :  { %v3461_v28 = vpop.permute.xlu1 %3460 }
 0x1bb   :  { %3226 = vmatmul.mubr.msk.bf16.vlgmr.msra.gmra.mxu1 %vm551_vm1, %v527_v60  ;;  %3232 = vmatmul.mubr.msk.bf16.vlgmr.msra.gmra.mxu0 %vm551_vm1, %v528_v59  ;;  %v3463_v32 = vunpack.i.h.bf16 %v3461_v28  ;;  %v3462_v35 = vunpack.i.l.bf16 %v3461_v28 }
 0x1bc   :  { %3236 = vmatpush3.bf16.xpose.msra.mxu1 %v1016_v1  ;;  %3242 = vmatpush3.bf16.xpose.msra.mxu0 %v1062_v2 }
 0x1bd   :  { %3237 = vmatprep.mubr.msk.bf16.mxu1 %vm3829_vm0, %v3828_v30  ;;  %3243 = vmatprep.mubr.msk.bf16.mxu0 %vm3829_vm0, %v3828_v30  ;;  %v534_v36 = vpack.c.bf16 %v3463_v32, %v3463_v32  ;;  %v533_v37 = vpack.c.bf16 %v3462_v35, %v3462_v35 }
 0x1be   :  { %3247 = vmatprep.subr.bf16.mxu1 %v3828_v30  ;;  %3253 = vmatprep.subr.bf16.mxu0 %v3828_v30 }
 0x1c3   :  { %3238 = vmatmul.mubr.msk.bf16.vlgmr.msra.gmra.mxu1 %vm551_vm1, %v529_v10  ;;  %3244 = vmatmul.mubr.msk.bf16.vlgmr.msra.gmra.mxu0 %vm551_vm1, %v530_v8 }
 0x1c4   :  { %3248 = vmatpush3.bf16.xpose.msra.mxu1 %v1108_v17  ;;  %3254 = vmatpush3.bf16.xpose.msra.mxu0 %v1154_v18 }
 0x1c5   :  { %3249 = vmatprep.mubr.msk.bf16.mxu1 %vm3829_vm0, %v3828_v30  ;;  %3255 = vmatprep.mubr.msk.bf16.mxu0 %vm3829_vm0, %v3828_v30 }
 0x1c6   :  { %3259 = vmatprep.subr.bf16.mxu1 %v3828_v30  ;;  %3265 = vmatprep.subr.bf16.mxu0 %v3828_v30 }
 0x1cb   :  { %3250 = vmatmul.mubr.msk.bf16.vlgmr.msra.gmra.mxu1 %vm551_vm1, %v531_v25  ;;  %3256 = vmatmul.mubr.msk.bf16.vlgmr.msra.gmra.mxu0 %vm551_vm1, %v532_v24 }
 0x1cc   :  { %3260 = vmatpush3.bf16.xpose.msra.mxu1 %v1200_v29  ;;  %3266 = vmatpush3.bf16.xpose.msra.mxu0 %v1246_v31 }
 0x1cd   :  { %3261 = vmatprep.mubr.msk.bf16.mxu1 %vm3829_vm0, %v3828_v30  ;;  %3267 = vmatprep.mubr.msk.bf16.mxu0 %vm3829_vm0, %v3828_v30 }
 0x1ce   :  { %3271 = vmatprep.subr.bf16.mxu1 %v3828_v30  ;;  %3277 = vmatprep.subr.bf16.mxu0 %v3828_v30 }
 0x1d3   :  { %3262 = vmatmul.mubr.msk.bf16.vlgmr.msra.gmra.mxu1 %vm551_vm1, %v533_v37  ;;  %3268 = vmatmul.mubr.msk.bf16.vlgmr.msra.gmra.mxu0 %vm551_vm1, %v534_v36 }
 0x1d4   :  { %3272 = vmatpush3.bf16.msra.mxu1 %v1502_v39  ;;  %3278 = vmatpush3.bf16.msra.mxu0 %v1548_v40  ;;  %v4115_v40 = vpack.i.bf16 %v4044_v27, %v4041_v26 }
 0x1d5   :  { %3279 = vmatprep.mubr.msk.bf16.mxu0 %vm3829_vm0, %v3828_v30  ;;  %3289 = vmatprep.subr.bf16.mxu0 %v3828_v30 }
 0x1d6   :  { %3273 = vmatprep.mubr.msk.bf16.mxu1 %vm3829_vm0, %v3828_v30  ;;  %3283 = vmatprep.subr.bf16.mxu1 %v3828_v30 }
 0x1f0   :  { %v4074_v42 = vpop.f32.mrf.mxu0 }
 0x1f1   :  { %v1289_v43 = vsel %vm1288_vm3, %v4074_v42, -inf }
 0x1f2   :  { %1290 = vmax.xlane.f32.xlu0 %v1289_v43  ;;  %v3179_v44 = vpop.f32.mrf.mxu0 }
 0x1f4   :  { %v595_v45 = vpop.f32.mrf.mxu0 }
 0x1f6   :  { %v3180_v46 = vpop.f32.mrf.mxu0 }
 0x1f8   :  { %v4078_v47 = vpop.f32.mrf.mxu1 }
 0x1f9   :  { %v638_v48 = vpop.f32.mrf.mxu0  ;;  %v1295_v49 = vsel %vm1288_vm3, %v4078_v47, -inf }
 0x1fa   :  { %v3191_v50 = vpop.f32.mrf.mxu1  ;;  %1296 = vmax.xlane.f32.xlu0 %v1295_v49  ;;  %v1292_v51 = vsel %vm1288_vm3, %v638_v48, -inf }
 0x1fb   :  { %1293 = vmax.xlane.f32.xlu1 %v1292_v51  ;;  %v3185_v52 = vpop.f32.mrf.mxu0 }
 0x1fc   :  { %v687_v53 = vpop.f32.mrf.mxu1 }
 0x1fd   :  { %v641_v54 = vpop.f32.mrf.mxu0 }
 0x1fe   :  { %v3192_v55 = vpop.f32.mrf.mxu1 }
 0x1ff   :  { %v3186_v56 = vpop.f32.mrf.mxu0 }
 0x201   :  { %v4083_v57 = vpop.f32.mrf.mxu0 }
 0x202   :  { %v1298_v58 = vsel %vm1288_vm3, %v4083_v57, -inf }
 0x203   :  { %1299 = vmax.xlane.f32.xlu0 %v1298_v58  ;;  %v3197_v59 = vpop.f32.mrf.mxu0 }
 0x205   :  { %v733_v60 = vpop.f32.mrf.mxu0 }
 0x207   :  { %v3198_v61 = vpop.f32.mrf.mxu0 }
 0x26b   :  { %v4087_v62 = vpop.f32.mrf.mxu1  ;;  %v4089_v63 = vpop.f32.mrf.mxu0 }
 0x26c   :  { %v1301_v1 = vsel %vm1288_vm3, %v4087_v62, -inf  ;;  %v1304_v2 = vsel %vm1288_vm3, %v4089_v63, -inf }
 0x26d   :  { %v3203_v3 = vpop.f32.mrf.mxu1  ;;  %1302 = vmax.xlane.f32.xlu1 %v1301_v1  ;;  %1305 = vmax.xlane.f32.xlu0 %v1304_v2  ;;  %v3209_v4 = vpop.f32.mrf.mxu0 }
 0x26f   :  { %v779_v5 = vpop.f32.mrf.mxu1  ;;  %v825_v6 = vpop.f32.mrf.mxu0 }
 0x271   :  { %v3204_v7 = vpop.f32.mrf.mxu1  ;;  %v3210_v8 = vpop.f32.mrf.mxu0 }
 0x273   :  { %v4095_v10 = vpop.f32.mrf.mxu1  ;;  %v4097_v13 = vpop.f32.mrf.mxu0 }
 0x274   :  { %v1307_v15 = vsel %vm1288_vm3, %v4095_v10, -inf  ;;  %v1310_v16 = vsel %vm1288_vm3, %v4097_v13, -inf }
 0x275   :  { %v3215_v17 = vpop.f32.mrf.mxu1  ;;  %1308 = vmax.xlane.f32.xlu1 %v1307_v15  ;;  %1311 = vmax.xlane.f32.xlu0 %v1310_v16  ;;  %v3221_v18 = vpop.f32.mrf.mxu0 }
 0x277   :  { %v871_v19 = vpop.f32.mrf.mxu1  ;;  %v917_v20 = vpop.f32.mrf.mxu0 }
 0x279   :  { %v3216_v21 = vpop.f32.mrf.mxu1  ;;  %v3222_v22 = vpop.f32.mrf.mxu0 }
 0x27b   :  { %v4103_v23 = vpop.f32.mrf.mxu1  ;;  %v4105_v24 = vpop.f32.mrf.mxu0 }
 0x27c   :  { %v1316_v28 = vsel %vm1288_vm3, %v4105_v24, -inf  ;;  %v1291_v12 = vpop.xlane.xlu0 %1290 }
 0x27d   :  { %v3227_v25 = vpop.f32.mrf.mxu1  ;;  %1317 = vmax.xlane.f32.xlu0 %v1316_v28  ;;  %v3233_v29 = vpop.f32.mrf.mxu0  ;;  %v1337_v22 = vsub.f32 %v4074_v42, %v1291_v12 }
 0x27f   :  { %v963_v31 = vpop.f32.mrf.mxu1  ;;  %v1009_v32 = vpop.f32.mrf.mxu0  ;;  %v1353_v25 = vmul.f32 1.442695, %v1337_v22  ;;  %v1484_v22 = vpack.c.bf16 %v3993_v14, %v3993_v14 }
 0x280   :  { %v1313_v31 = vsel %vm1288_vm3, %v4103_v23, -inf }
 0x281   :  { %v3228_v35 = vpop.f32.mrf.mxu1  ;;  %v3234_v9 = vpop.f32.mrf.mxu0 }
 0x283   :  { %v4109_v36 = vpop.f32.mrf.mxu1  ;;  %v4111_v39 = vpop.f32.mrf.mxu0 }
 0x284   :  { %v1294_v37 = vpop.xlane.xlu1 %1293  ;;  %v1322_v45 = vsel %vm1288_vm3, %v4111_v39, -inf  ;;  %v1297_v51 = vpop.xlane.xlu0 %1296  ;;  %v1319_v32 = vsel %vm1288_vm3, %v4109_v36, -inf }
 0x285   :  { %v1338_v43 = vsub.f32 %v638_v48, %v1294_v37  ;;  %v3239_v44 = vpop.f32.mrf.mxu1  ;;  %1323 = vmax.xlane.f32.xlu0 %v1322_v45  ;;  %v3245_v46 = vpop.f32.mrf.mxu0  ;;  %v1339_v28 = vsub.f32 %v4078_v47, %v1297_v51 }
 0x286   :  { %3465 = vrot.lane.b32.xlu1 %v4115_v40, %s3830_s2 }
 0x287   :  { %v1355_v49 = vmul.f32 1.442695, %v1338_v43  ;;  %v1055_v50 = vpop.f32.mrf.mxu1  ;;  %v1101_v52 = vpop.f32.mrf.mxu0  ;;  %v1357_v29 = vmul.f32 1.442695, %v1339_v28 }
 0x289   :  { %3604 = vpow2.f32 %v1355_v49  ;;  %v3240_v53 = vpop.f32.mrf.mxu1  ;;  %v3246_v54 = vpop.f32.mrf.mxu0 }
 0x28b   :  { %v4121_v55 = vpop.f32.mrf.mxu1  ;;  %v4123_v27 = vpop.f32.mrf.mxu0 }
 0x28c   :  { %v1300_v26 = vpop.xlane.xlu0 %1299  ;;  %v1328_v58 = vsel %vm1288_vm3, %v4123_v27, -inf  ;;  %v1325_v35 = vsel %vm1288_vm3, %v4121_v55, -inf }
 0x28d   :  { %v1340_v48 = vsub.f32 %v4083_v57, %v1300_v26  ;;  %v3251_v56 = vpop.f32.mrf.mxu1  ;;  %1329 = vmax.xlane.f32.xlu0 %v1328_v58  ;;  %v3257_v59 = vpop.f32.mrf.mxu0 }
 0x28f   :  { %v1359_v60 = vmul.f32 1.442695, %v1340_v48  ;;  %v1147_v61 = vpop.f32.mrf.mxu1  ;;  %v1193_v1 = vpop.f32.mrf.mxu0 }
 0x291   :  { %3606 = vpow2.f32 %v1359_v60  ;;  %v3252_v2 = vpop.f32.mrf.mxu1  ;;  %v3258_v3 = vpop.f32.mrf.mxu0 }
 0x292   :  { %3608 = vpow2.f32 %v1353_v25 }
 0x293   :  { %v4128_v4 = vpop.f32.mrf.mxu1  ;;  %v4130_v5 = vpop.f32.mrf.mxu0  ;;  %3610 = vpow2.f32 %v1357_v29 }
 0x294   :  { %v1334_v57 = vsel %vm1288_vm3, %v4130_v5, -inf  ;;  %v1331_v42 = vsel %vm1288_vm3, %v4128_v4, -inf }
 0x295   :  { %v3263_v6 = vpop.f32.mrf.mxu1  ;;  %1335 = vmax.xlane.f32.xlu0 %v1334_v57  ;;  %v3269_v8 = vpop.f32.mrf.mxu0 }
 0x296   :  { %v4134_v7 = vpop.eup %3604 }
 0x297   :  { %v1239_v15 = vpop.f32.mrf.mxu1  ;;  %v1285_v16 = vpop.f32.mrf.mxu0  ;;  %v1388_v18 = vsel %vm1288_vm3, %v4134_v7, 0.0 }
 0x299   :  { %v3264_v17 = vpop.f32.mrf.mxu1  ;;  %1389 = vadd.xlane.f32.xlu0 %v1388_v18  ;;  %v3270_v19 = vpop.f32.mrf.mxu0 }
 0x29e   :  { %v4138_v20 = vpop.eup %3606 }
 0x29f   :  { %v1394_v21 = vsel %vm1288_vm3, %v4138_v20, 0.0  ;;  %v4152_v9 = vpop.eup %3608 }
 0x2a0   :  { %1395 = vadd.xlane.f32.xlu0 %v1394_v21  ;;  %v1385_v47 = vsel %vm1288_vm3, %v4152_v9, 0.0  ;;  %v4158_v12 = vpop.eup %3610 }
 0x2a1   :  { %v1391_v37 = vsel %vm1288_vm3, %v4158_v12, 0.0 }
 0x2aa   :  { %1314 = vmax.xlane.f32.xlu1 %v1313_v31 }
 0x2ae   :  { %1320 = vmax.xlane.f32.xlu1 %v1319_v32 }
 0x2b2   :  { %1326 = vmax.xlane.f32.xlu1 %v1325_v35 }
 0x2b6   :  { %3470 = vrot.lane.b32.xlu0 %v4072_v41, %s3830_s2  ;;  %1332 = vmax.xlane.f32.xlu1 %v1331_v42  ;;  %v1640_v42 = vsel %vm1500_vm2, %v1484_v22, 0 }
 0x2ba   :  { %1386 = vadd.xlane.f32.xlu1 %v1385_v47 }
 0x2be   :  { %1392 = vadd.xlane.f32.xlu1 %v1391_v37 }
 0x2cf   :  { %3475 = vrot.lane.b32.xlu1 %v4115_v40, %s3824_s7 }
 0x2f6   :  { %v1303_v43 = vpop.xlane.xlu1 %1302  ;;  %v1306_v44 = vpop.xlane.xlu0 %1305 }
 0x2f7   :  { %v1341_v45 = vsub.f32 %v4087_v62, %v1303_v43  ;;  %v1342_v46 = vsub.f32 %v4089_v63, %v1306_v44 }
 0x2f9   :  { %v1361_v49 = vmul.f32 1.442695, %v1341_v45  ;;  %v1363_v50 = vmul.f32 1.442695, %v1342_v46 }
 0x2fb   :  { %3612 = vpow2.f32 %v1361_v49 }
 0x2fc   :  { %3614 = vpow2.f32 %v1363_v50 }
 0x2fe   :  { %v1309_v51 = vpop.xlane.xlu1 %1308  ;;  %v1312_v52 = vpop.xlane.xlu0 %1311 }
 0x2ff   :  { %v1343_v53 = vsub.f32 %v4095_v10, %v1309_v51  ;;  %v1344_v54 = vsub.f32 %v4097_v13, %v1312_v52 }
 0x301   :  { %v1365_v26 = vmul.f32 1.442695, %v1343_v53  ;;  %v1367_v48 = vmul.f32 1.442695, %v1344_v54 }
 0x302   :  { %v4189_v17 = vpop.permute.xlu1 %3465 }
 0x303   :  { %3616 = vpow2.f32 %v1365_v26  ;;  %v3468_v35 = vunpack.i.h.bf16 %v4189_v17 }
 0x304   :  { %3618 = vpow2.f32 %v1367_v48 }
 0x305   :  { %v1486_v43 = vpack.c.bf16 %v3468_v35, %v3468_v35 }
 0x306   :  { %v1318_v56 = vpop.xlane.xlu0 %1317 }
 0x307   :  { %v1346_v62 = vsub.f32 %v4105_v24, %v1318_v56 }
 0x308   :  { %v4168_v58 = vpop.eup %3612 }
 0x309   :  { %v4171_v63 = vpop.eup %3614  ;;  %v1397_v59 = vsel %vm1288_vm3, %v4168_v58, 0.0  ;;  %v1371_v60 = vmul.f32 1.442695, %v1346_v62 }
 0x30a   :  { %1398 = vadd.xlane.f32.xlu1 %v1397_v59  ;;  %v1400_v10 = vsel %vm1288_vm3, %v4171_v63, 0.0 }
 0x30b   :  { %1401 = vadd.xlane.f32.xlu0 %v1400_v10  ;;  %3620 = vpow2.f32 %v1371_v60 }
 0x30e   :  { %v1324_v2 = vpop.xlane.xlu0 %1323 }
 0x30f   :  { %v1348_v29 = vsub.f32 %v4111_v39, %v1324_v2 }
 0x310   :  { %v4177_v13 = vpop.eup %3616 }
 0x311   :  { %v4179_v61 = vpop.eup %3618  ;;  %v1403_v1 = vsel %vm1288_vm3, %v4177_v13, 0.0 }
 0x312   :  { %1404 = vadd.xlane.f32.xlu1 %v1403_v1  ;;  %v1406_v24 = vsel %vm1288_vm3, %v4179_v61, 0.0 }
 0x313   :  { %1407 = vadd.xlane.f32.xlu0 %v1406_v24  ;;  %v1483_v24 = vpack.c.bf16 %v3988_v11, %v3988_v11 }
 0x316   :  { %v1330_v57 = vpop.xlane.xlu0 %1329 }
 0x317   :  { %v1350_v39 = vsub.f32 %v4123_v27, %v1330_v57 }
 0x318   :  { %v4185_v3 = vpop.eup %3620 }
 0x319   :  { %v1412_v6 = vsel %vm1288_vm3, %v4185_v3, 0.0  ;;  %v1379_v46 = vmul.f32 1.442695, %v1350_v39 }
 0x31a   :  { %1413 = vadd.xlane.f32.xlu0 %v1412_v6 }
 0x31e   :  { %v1336_v8 = vpop.xlane.xlu0 %1335 }
 0x31f   :  { %v1352_v27 = vsub.f32 %v4130_v5, %v1336_v8 }
 0x321   :  { %v1383_v53 = vmul.f32 1.442695, %v1352_v27 }
 0x322   :  { %v1390_v15 = vpop.xlane.xlu0 %1389 }
 0x323   :  { %3622 = vrcp.f32 %v1390_v15  ;;  %v3467_v15 = vunpack.i.l.bf16 %v4189_v17 }
 0x325   :  { %v1485_v17 = vpack.c.bf16 %v3467_v15, %v3467_v15 }
 0x329   :  { %v1396_v16 = vpop.xlane.xlu0 %1395 }
 0x32a   :  { %3624 = vrcp.f32 %v1396_v16  ;;  %v1594_v16 = vsel %vm1500_vm2, %v1483_v24, 0 }
 0x330   :  { %v3623_v18 = vpop.eup %3622 }
 0x331   :  { %v1450_v21 = vmul.f32 %v3623_v18, %v4134_v7 }
 0x333   :  { %v1315_v19 = vpop.xlane.xlu1 %1314  ;;  %v1466_v28 = vpack.c.bf16 %v1450_v21, %v1450_v21 }
 0x334   :  { %v1345_v25 = vsub.f32 %v4103_v23, %v1315_v19  ;;  %v1375_v23 = vmul.f32 1.442695, %v1348_v29  ;;  %v1686_v19 = vsel %vm1500_vm2, %v1485_v17, 0  ;;  %v3471_v29 = vpop.permute.xlu0 %3470 }
 0x335   :  { %3280 = vmatmul.mubr.msk.bf16.vlgmr.msra.gmra.mxu0 %vm1288_vm3, %v1466_v28 }
 0x336   :  { %v1369_v31 = vmul.f32 1.442695, %v1345_v25  ;;  %3290 = vmatpush3.bf16.msra.mxu0 %v1640_v42  ;;  %3291 = vmatprep.mubr.msk.bf16.mxu0 %vm3829_vm0, %v3828_v30  ;;  %v3473_v42 = vunpack.i.h.bf16 %v3471_v29 }
 0x337   :  { %v3625_v32 = vpop.eup %3624  ;;  %v1321_v47 = vpop.xlane.xlu1 %1320  ;;  %3301 = vmatprep.subr.bf16.mxu0 %v3828_v30 }
 0x338   :  { %3626 = vpow2.f32 %v1369_v31  ;;  %v1347_v7 = vsub.f32 %v4109_v36, %v1321_v47  ;;  %v1452_v14 = vmul.f32 %v3625_v32, %v4138_v20  ;;  %v1732_v36 = vsel %vm1500_vm2, %v1486_v43, 0 }
 0x339   :  { %v1488_v39 = vpack.c.bf16 %v3473_v42, %v3473_v42 }
 0x33a   :  { %v1373_v37 = vmul.f32 1.442695, %v1347_v7  ;;  %v1468_v45 = vpack.c.bf16 %v1452_v14, %v1452_v14 }
 0x33b   :  { %v1327_v44 = vpop.xlane.xlu1 %1326 }
 0x33c   :  { %3628 = vpow2.f32 %v1373_v37  ;;  %v1349_v21 = vsub.f32 %v4121_v55, %v1327_v44 }
 0x33d   :  { %3630 = vpow2.f32 %v1375_v23  ;;  %3292 = vmatmul.mubr.msk.bf16.vlgmr.msra.gmra.mxu0 %vm1288_vm3, %v1468_v45 }
 0x33e   :  { %3302 = vmatpush3.bf16.msra.mxu0 %v1732_v36  ;;  %3303 = vmatprep.mubr.msk.bf16.mxu0 %vm3829_vm0, %v3828_v30  ;;  %3632 = vpow2.f32 %v1379_v46  ;;  %v1377_v22 = vmul.f32 1.442695, %v1349_v21 }
 0x33f   :  { %v1333_v49 = vpop.xlane.xlu1 %1332  ;;  %3313 = vmatprep.subr.bf16.mxu0 %v3828_v30 }
 0x340   :  { %v1351_v50 = vsub.f32 %v4128_v4, %v1333_v49  ;;  %v1824_v49 = vsel %vm1500_vm2, %v1488_v39, 0 }
 0x342   :  { %v1381_v20 = vmul.f32 1.442695, %v1351_v50 }
 0x343   :  { %v1387_v51 = vpop.xlane.xlu1 %1386 }
 0x344   :  { %3634 = vrcp.f32 %v1387_v51 }
 0x345   :  { %v4212_v52 = vpop.eup %3626  ;;  %3636 = vpow2.f32 %v1381_v20 }
 0x346   :  { %v1409_v54 = vsel %vm1288_vm3, %v4212_v52, 0.0 }
 0x347   :  { %1410 = vadd.xlane.f32.xlu1 %v1409_v54  ;;  %v1393_v4 = vpop.xlane.xlu1 %1392 }
 0x348   :  { %3638 = vrcp.f32 %v1393_v4 }
 0x349   :  { %v4216_v26 = vpop.eup %3628  ;;  %3640 = vpow2.f32 %v1383_v53 }
 0x34a   :  { %v1415_v48 = vsel %vm1288_vm3, %v4216_v26, 0.0  ;;  %v4220_v5 = vpop.eup %3630  ;;  %3642 = vpow2.f32 %v1377_v22 }
 0x34b   :  { %1416 = vadd.xlane.f32.xlu0 %v1415_v48  ;;  %v1418_v56 = vsel %vm1288_vm3, %v4220_v5, 0.0  ;;  %v4224_v62 = vpop.eup %3632  ;;  %v3476_v28 = vpop.permute.xlu1 %3475 }
 0x34c   :  { %v1424_v60 = vsel %vm1288_vm3, %v4224_v62, 0.0  ;;  %v3477_v45 = vunpack.i.l.bf16 %v3476_v28  ;;  %v3478_v36 = vunpack.i.h.bf16 %v3476_v28 }
 0x34e   :  { %v1489_v50 = vpack.c.bf16 %v3477_v45, %v3477_v45  ;;  %v1490_v20 = vpack.c.bf16 %v3478_v36, %v3478_v36 }
 0x34f   :  { %1419 = vadd.xlane.f32.xlu0 %v1418_v56 }
 0x350   :  { %v1870_v4 = vsel %vm1500_vm2, %v1489_v50, 0  ;;  %v1916_v48 = vsel %vm1500_vm2, %v1490_v20, 0 }
 0x351   :  { %v3635_v59 = vpop.eup %3634 }
 0x352   :  { %v4228_v10 = vpop.eup %3636  ;;  %v1449_v1 = vmul.f32 %v3635_v59, %v4152_v9 }
 0x353   :  { %1425 = vadd.xlane.f32.xlu0 %v1424_v60  ;;  %v1427_v57 = vsel %vm1288_vm3, %v4228_v10, 0.0 }
 0x354   :  { %v1465_v2 = vpack.c.bf16 %v1449_v1, %v1449_v1 }
 0x355   :  { %v3639_v6 = vpop.eup %3638 }
 0x356   :  { %v4235_v8 = vpop.eup %3640  ;;  %3274 = vmatmul.mubr.msk.bf16.vlgmr.msra.gmra.mxu1 %vm1288_vm3, %v1465_v2  ;;  %v1451_v11 = vmul.f32 %v3639_v6, %v4158_v12 }
 0x357   :  { %1428 = vadd.xlane.f32.xlu0 %v1427_v57  ;;  %3284 = vmatpush3.bf16.msra.mxu1 %v1594_v16  ;;  %v1430_v9 = vsel %vm1288_vm3, %v4235_v8, 0.0  ;;  %v4256_v12 = vpop.eup %3642 }
 0x358   :  { %3480 = vrot.lane.b32.xlu1 %v4072_v41, %s3824_s7  ;;  %3285 = vmatprep.mubr.msk.bf16.mxu1 %vm3829_vm0, %v3828_v30  ;;  %v1467_v18 = vpack.c.bf16 %v1451_v11, %v1451_v11  ;;  %v1421_v25 = vsel %vm1288_vm3, %v4256_v12, 0.0 }
 0x359   :  { %3295 = vmatprep.subr.bf16.mxu1 %v3828_v30 }
 0x35b   :  { %1431 = vadd.xlane.f32.xlu0 %v1430_v9 }
 0x35e   :  { %3286 = vmatmul.mubr.msk.bf16.vlgmr.msra.gmra.mxu1 %vm1288_vm3, %v1467_v18 }
 0x35f   :  { %3296 = vmatpush3.bf16.msra.mxu1 %v1686_v19  ;;  %3297 = vmatprep.mubr.msk.bf16.mxu1 %vm3829_vm0, %v3828_v30 }
 0x360   :  { %3307 = vmatprep.subr.bf16.mxu1 %v3828_v30 }
 0x371   :  { %3485 = vrot.lane.b32.xlu0 %v4115_v40, %s3831_s19  ;;  %v3472_v40 = vunpack.i.l.bf16 %v3471_v29 }
 0x373   :  { %v1487_v14 = vpack.c.bf16 %v3472_v40, %v3472_v40 }
 0x375   :  { %v1778_v46 = vsel %vm1500_vm2, %v1487_v14, 0 }
 0x37c   :  { %1422 = vadd.xlane.f32.xlu1 %v1421_v25 }
 0x38d   :  { %3490 = vrot.lane.b32.xlu1 %v4072_v41, %s3831_s19 }
 0x393   :  { %v1399_v31 = vpop.xlane.xlu1 %1398 }
 0x394   :  { %3644 = vrcp.f32 %v1399_v31  ;;  %v1402_v32 = vpop.xlane.xlu0 %1401 }
 0x395   :  { %3646 = vrcp.f32 %v1402_v32 }
 0x39b   :  { %v1405_v55 = vpop.xlane.xlu1 %1404 }
 0x39c   :  { %3648 = vrcp.f32 %v1405_v55  ;;  %v1408_v35 = vpop.xlane.xlu0 %1407 }
 0x39d   :  { %3650 = vrcp.f32 %v1408_v35 }
 0x3a1   :  { %v3645_v47 = vpop.eup %3644 }
 0x3a2   :  { %v3647_v7 = vpop.eup %3646  ;;  %v1453_v23 = vmul.f32 %v3645_v47, %v4168_v58 }
 0x3a3   :  { %v1454_v41 = vmul.f32 %v3647_v7, %v4171_v63  ;;  %v1414_v37 = vpop.xlane.xlu0 %1413 }
 0x3a4   :  { %v1469_v43 = vpack.c.bf16 %v1453_v23, %v1453_v23  ;;  %3652 = vrcp.f32 %v1414_v37 }
 0x3a5   :  { %v1470_v44 = vpack.c.bf16 %v1454_v41, %v1454_v41 }
 0x3a6   :  { %3298 = vmatmul.mubr.msk.bf16.vlgmr.msra.gmra.mxu1 %vm1288_vm3, %v1469_v43 }
 0x3a7   :  { %3304 = vmatmul.mubr.msk.bf16.vlgmr.msra.gmra.mxu0 %vm1288_vm3, %v1470_v44  ;;  %3308 = vmatpush3.bf16.msra.mxu1 %v1778_v46 }
 0x3a8   :  { %3314 = vmatpush3.bf16.msra.mxu0 %v1824_v49  ;;  %3309 = vmatprep.mubr.msk.bf16.mxu1 %vm3829_vm0, %v3828_v30 }
 0x3a9   :  { %v3649_v58 = vpop.eup %3648  ;;  %3315 = vmatprep.mubr.msk.bf16.mxu0 %vm3829_vm0, %v3828_v30  ;;  %3319 = vmatprep.subr.bf16.mxu1 %v3828_v30 }
 0x3aa   :  { %v3651_v63 = vpop.eup %3650  ;;  %3325 = vmatprep.subr.bf16.mxu0 %v3828_v30  ;;  %v1455_v27 = vmul.f32 %v3649_v58, %v4177_v13 }
 0x3ab   :  { %v1456_v51 = vmul.f32 %v3651_v63, %v4179_v61 }
 0x3ac   :  { %v1471_v53 = vpack.c.bf16 %v1455_v27, %v1455_v27 }
 0x3ad   :  { %v1472_v54 = vpack.c.bf16 %v1456_v51, %v1456_v51 }
 0x3ae   :  { %3310 = vmatmul.mubr.msk.bf16.vlgmr.msra.gmra.mxu1 %vm1288_vm3, %v1471_v53 }
 0x3af   :  { %3316 = vmatmul.mubr.msk.bf16.vlgmr.msra.gmra.mxu0 %vm1288_vm3, %v1472_v54  ;;  %3320 = vmatpush3.bf16.msra.mxu1 %v1870_v4 }
 0x3b0   :  { %3326 = vmatpush3.bf16.msra.mxu0 %v1916_v48  ;;  %3327 = vmatprep.mubr.msk.bf16.mxu0 %vm3829_vm0, %v3828_v30 }
 0x3b1   :  { %3337 = vmatprep.subr.bf16.mxu0 %v3828_v30  ;;  %3321 = vmatprep.mubr.msk.bf16.mxu1 %vm3829_vm0, %v3828_v30  ;;  %v3653_v13 = vpop.eup %3652 }
 0x3b2   :  { %3331 = vmatprep.subr.bf16.mxu1 %v3828_v30  ;;  %v1458_v61 = vmul.f32 %v3653_v13, %v4185_v3 }
 0x3b4   :  { %v1474_v56 = vpack.c.bf16 %v1458_v61, %v1458_v61 }
 0x3b7   :  { %3328 = vmatmul.mubr.msk.bf16.vlgmr.msra.gmra.mxu0 %vm1288_vm3, %v1474_v56 }
 0x3b8   :  { %3339 = vmatprep.mubr.msk.bf16.mxu0 %vm3829_vm0, %v3828_v30 }
 0x3d0   :  { %v1411_v59 = vpop.xlane.xlu1 %1410 }
 0x3d1   :  { %3654 = vrcp.f32 %v1411_v59 }
 0x3d4   :  { %v3481_v60 = vpop.permute.xlu1 %3480  ;;  %v1417_v1 = vpop.xlane.xlu0 %1416 }
 0x3d5   :  { %v3483_v24 = vunpack.i.h.bf16 %v3481_v60  ;;  %3656 = vrcp.f32 %v1417_v1  ;;  %v3482_v15 = vunpack.i.l.bf16 %v3481_v60 }
 0x3d7   :  { %v1492_v2 = vpack.c.bf16 %v3483_v24, %v3483_v24  ;;  %v1491_v11 = vpack.c.bf16 %v3482_v15, %v3482_v15 }
 0x3d8   :  { %v1420_v6 = vpop.xlane.xlu0 %1419 }
 0x3d9   :  { %3658 = vrcp.f32 %v1420_v6  ;;  %v2008_v57 = vsel %vm1500_vm2, %v1492_v2, 0  ;;  %v1962_v21 = vsel %vm1500_vm2, %v1491_v11, 0 }
 0x3da   :  { %3338 = vmatpush3.bf16.msra.mxu0 %v2008_v57 }
 0x3db   :  { %3349 = vmatprep.subr.bf16.mxu0 %v3828_v30 }
 0x3dc   :  { %v1426_v3 = vpop.xlane.xlu0 %1425 }
 0x3dd   :  { %3660 = vrcp.f32 %v1426_v3 }
 0x3de   :  { %v3655_v16 = vpop.eup %3654 }
 0x3df   :  { %v1457_v9 = vmul.f32 %v3655_v16, %v4212_v52 }
 0x3e0   :  { %v1429_v17 = vpop.xlane.xlu0 %1428 }
 0x3e1   :  { %v1473_v18 = vpack.c.bf16 %v1457_v9, %v1457_v9 }
 0x3e2   :  { %v3657_v19 = vpop.eup %3656 }
 0x3e3   :  { %3322 = vmatmul.mubr.msk.bf16.vlgmr.msra.gmra.mxu1 %vm1288_vm3, %v1473_v18  ;;  %v1459_v25 = vmul.f32 %v3657_v19, %v4216_v26 }
 0x3e4   :  { %3332 = vmatpush3.bf16.msra.mxu1 %v1962_v21  ;;  %v1432_v22 = vpop.xlane.xlu0 %1431  ;;  %3333 = vmatprep.mubr.msk.bf16.mxu1 %vm3829_vm0, %v3828_v30 }
 0x3e5   :  { %3343 = vmatprep.subr.bf16.mxu1 %v3828_v30  ;;  %v1475_v55 = vpack.c.bf16 %v1459_v25, %v1459_v25  ;;  %3662 = vrcp.f32 %v1432_v22 }
 0x3e6   :  { %v3659_v28 = vpop.eup %3658 }
 0x3e7   :  { %v1460_v29 = vmul.f32 %v3659_v28, %v4220_v5 }
 0x3e8   :  { %v3486_v52 = vpop.permute.xlu0 %3485 }
 0x3e9   :  { %v3488_v31 = vunpack.i.h.bf16 %v3486_v52  ;;  %v3487_v32 = vunpack.i.l.bf16 %v3486_v52  ;;  %v1476_v35 = vpack.c.bf16 %v1460_v29, %v1460_v29 }
 0x3ea   :  { %v3661_v40 = vpop.eup %3660 }
 0x3eb   :  { %v1494_v42 = vpack.c.bf16 %v3488_v31, %v3488_v31  ;;  %v1493_v47 = vpack.c.bf16 %v3487_v32, %v3487_v32  ;;  %3334 = vmatmul.mubr.msk.bf16.vlgmr.msra.gmra.mxu1 %vm1288_vm3, %v1475_v55  ;;  %3340 = vmatmul.mubr.msk.bf16.vlgmr.msra.gmra.mxu0 %vm1288_vm3, %v1476_v35  ;;  %v1462_v7 = vmul.f32 %v3661_v40, %v4224_v62 }
 0x3ec   :  { %3351 = vmatprep.mubr.msk.bf16.mxu0 %vm3829_vm0, %v3828_v30  ;;  %3345 = vmatprep.mubr.msk.bf16.mxu1 %vm3829_vm0, %v3828_v30 }
 0x3ed   :  { %v2054_v26 = vsel %vm1500_vm2, %v1493_v47, 0  ;;  %v2100_v5 = vsel %vm1500_vm2, %v1494_v42, 0  ;;  %v1478_v14 = vpack.c.bf16 %v1462_v7, %v1462_v7 }
 0x3ee   :  { %3344 = vmatpush3.bf16.msra.mxu1 %v2054_v26  ;;  %3350 = vmatpush3.bf16.msra.mxu0 %v2100_v5  ;;  %v3556_v26 = vld [vmem:[#allocation7 + $0x38] sm:$0xff]   ;;  %v3557_v5 = vld [vmem:[#allocation7 + $0x30] sm:$0xff]  }
 0x3ef   :  { %3361 = vmatprep.subr.bf16.mxu0 %v3828_v30  ;;  %3355 = vmatprep.subr.bf16.mxu1 %v3828_v30 }
 0x3f2   :  { %v3663_v36 = vpop.eup %3662 }
 0x3f3   :  { %3352 = vmatmul.mubr.msk.bf16.vlgmr.msra.gmra.mxu0 %vm1288_vm3, %v1478_v14  ;;  %v1464_v50 = vmul.f32 %v3663_v36, %v4235_v8 }
 0x3f4   :  { %3363 = vmatprep.mubr.msk.bf16.mxu0 %vm3829_vm0, %v3828_v30 }
 0x3f5   :  { %v4314_v23 = vpop.f32.mrf.mxu0  ;;  %v1480_v51 = vpack.c.bf16 %v1464_v50, %v1464_v50  ;;  %v3560_v50 = vld [vmem:[#allocation7 + $0x18] sm:$0xff]  }
 0x3f7   :  { %v3281_v39 = vpop.f32.mrf.mxu0 }
 0x3f9   :  { %v1587_v41 = vpop.f32.mrf.mxu0 }
 0x3fa   :  { %v3558_v41 = vld [vmem:[#allocation7 + $0x28] sm:$0xff]  }
 0x3fb   :  { %v3282_v37 = vpop.f32.mrf.mxu0 }
 0x3fd   :  { %v4316_v43 = vpop.f32.mrf.mxu0 }
 0x3ff   :  { %v3293_v62 = vpop.f32.mrf.mxu0 }
 0x401   :  { %v1679_v44 = vpop.f32.mrf.mxu0 }
 0x403   :  { %v3294_v45 = vpop.f32.mrf.mxu0 }
 0x404   :  { %v3559_v45 = vld [vmem:[#allocation7 + $0x20] sm:$0xff]  }
 0x405   :  { %v1423_v46 = vpop.xlane.xlu1 %1422 }
 0x406   :  { %3664 = vrcp.f32 %v1423_v46 }
 0x407   :  { %3666 = vrcp.f32 %v1429_v17 }
 0x409   :  { %v3491_v49 = vpop.permute.xlu1 %3490 }
 0x40a   :  { %v3493_v58 = vunpack.i.h.bf16 %v3491_v49  ;;  %v3492_v20 = vunpack.i.l.bf16 %v3491_v49 }
 0x40c   :  { %v1496_v63 = vpack.c.bf16 %v3493_v58, %v3493_v58  ;;  %v1495_v54 = vpack.c.bf16 %v3492_v20, %v3492_v20 }
 0x40e   :  { %v2192_v27 = vsel %vm1500_vm2, %v1496_v63, 0  ;;  %v2146_v8 = vsel %vm1500_vm2, %v1495_v54, 0 }
 0x40f   :  { %3362 = vmatpush3.bf16.msra.mxu0 %v2192_v27 }
 0x412   :  { %3364 = vmatmul.mubr.msk.bf16.vlgmr.msra.gmra.mxu0 %vm1288_vm3, %v1480_v51 }
 0x413   :  { %v3665_v53 = vpop.eup %3664  ;;  %2631 = vmatprep.mubr.bf16.mxu0 %v3827_v0 }
 0x414   :  { %v1461_v4 = vmul.f32 %v3665_v53, %v4256_v12  ;;  %v3667_v13 = vpop.eup %3666 }
 0x415   :  { %v1463_v59 = vmul.f32 %v3667_v13, %v4228_v10  ;;  %v3562_v13 = vld [vmem:[#allocation7 + $0x8] sm:$0xff]  }
 0x416   :  { %v1477_v48 = vpack.c.bf16 %v1461_v4, %v1461_v4  ;;  %v4323_v61 = vpop.f32.mrf.mxu1 }
 0x417   :  { %v1479_v24 = vpack.c.bf16 %v1463_v59, %v1463_v59 }
 0x418   :  { %3346 = vmatmul.mubr.msk.bf16.vlgmr.msra.gmra.mxu1 %vm1288_vm3, %v1477_v48  ;;  %v3275_v56 = vpop.f32.mrf.mxu1  ;;  %v3561_v48 = vld [vmem:[#allocation7 + $0x10] sm:$0xff]  }
 0x419   :  { %3356 = vmatpush3.bf16.msra.mxu1 %v2146_v8  ;;  %3357 = vmatprep.mubr.msk.bf16.mxu1 %vm3829_vm0, %v3828_v30 }
 0x41a   :  { %v1541_v60 = vpop.f32.mrf.mxu1  ;;  %3367 = vmatprep.subr.bf16.mxu1 %v3556_v26 }
 0x41c   :  { %v3276_v1 = vpop.f32.mrf.mxu1 }
 0x41e   :  { %v4330_v2 = vpop.f32.mrf.mxu1 }
 0x420   :  { %3358 = vmatmul.mubr.msk.bf16.vlgmr.msra.gmra.mxu1 %vm1288_vm3, %v1479_v24  ;;  %v3287_v12 = vpop.f32.mrf.mxu1  ;;  %v3563_v24 = vld [vmem:[#allocation7] sm:$0xff]  }
 0x421   :  { %3368 = vmatpush3.bf16.msra.mxu1 %v3556_v26 }
 0x422   :  { %v1633_v6 = vpop.f32.mrf.mxu1  ;;  %3369 = vmatprep.subr.bf16.mxu1 %v3557_v5 }
 0x424   :  { %v3288_v57 = vpop.f32.mrf.mxu1 }
 0x425   :  { %3370 = vmatpush3.bf16.msra.mxu1 %v3557_v5 }
 0x426   :  { %3371 = vmatprep.subr.bf16.mxu1 %v3558_v41 }
 0x429   :  { %3372 = vmatpush3.bf16.msra.mxu1 %v3558_v41 }
 0x42a   :  { %3373 = vmatprep.subr.bf16.mxu1 %v3559_v45 }
 0x42d   :  { %3374 = vmatpush3.bf16.msra.mxu1 %v3559_v45 }
 0x42e   :  { %3375 = vmatprep.subr.bf16.mxu1 %v3560_v50 }
 0x431   :  { %3376 = vmatpush3.bf16.msra.mxu1 %v3560_v50 }
 0x432   :  { %3377 = vmatprep.subr.bf16.mxu1 %v3561_v48 }
 0x435   :  { %3378 = vmatpush3.bf16.msra.mxu1 %v3561_v48  ;;  %v3685_v48 = vld [vmem:[#allocation2 + $0x8] sm:$0xff] }
 0x436   :  { %3379 = vmatprep.subr.bf16.mxu1 %v3562_v13 }
 0x439   :  { %3380 = vmatpush3.bf16.msra.mxu1 %v3562_v13 }
 0x43a   :  { %3381 = vmatprep.subr.bf16.mxu1 %v3563_v24 }
 0x43d   :  { %3382 = vmatpush3.bf16.msra.mxu1 %v3563_v24  ;;  %v3566_v24 = vld [vmem:[#allocation8 + $0x74] ss:$8 sps:$4 sm:$0xff]  }
 0x43e   :  { %2599 = vmatprep.subr.bf16.mxu0 %v3566_v24  ;;  %v3007_v24 = vld [vmem:[%s4429_s6] ss:$0 sm:$0xff] }
 0x466   :  { %v1722_v15 = vpop.f32.mrf.mxu1 }
 0x467   :  { %v1768_v3 = vpop.f32.mrf.mxu0 }
 0x468   :  { %v3494_v16 = vpack.i.bf16 %v1768_v3, %v1722_v15  ;;  %v3299_v11 = vpop.f32.mrf.mxu1 }
 0x469   :  { %v3305_v9 = vpop.f32.mrf.mxu0 }
 0x46a   :  { %3495 = vrot.lane.b32.xlu1 %v3494_v16, %s3831_s19  ;;  %v1725_v30 = vpop.f32.mrf.mxu1 }
 0x46b   :  { %v1771_v17 = vpop.f32.mrf.mxu0 }
 0x46c   :  { %v3300_v10 = vpop.f32.mrf.mxu1 }
 0x46d   :  { %v3306_v18 = vpop.f32.mrf.mxu0 }
 0x46e   :  { %v1814_v19 = vpop.f32.mrf.mxu1 }
 0x46f   :  { %v1860_v21 = vpop.f32.mrf.mxu0 }
 0x470   :  { %v3499_v22 = vpack.i.bf16 %v1860_v21, %v1814_v19  ;;  %v3311_v25 = vpop.f32.mrf.mxu1 }
 0x471   :  { %v3317_v28 = vpop.f32.mrf.mxu0 }
 0x472   :  { %3500 = vrot.lane.b32.xlu1 %v3499_v22, %s3831_s19  ;;  %v1817_v29 = vpop.f32.mrf.mxu1 }
 0x473   :  { %v1863_v52 = vpop.f32.mrf.mxu0 }
 0x474   :  { %v3312_v31 = vpop.f32.mrf.mxu1 }
 0x475   :  { %v3318_v32 = vpop.f32.mrf.mxu0 }
 0x477   :  { %v1952_v55 = vpop.f32.mrf.mxu0 }
 0x479   :  { %v3329_v35 = vpop.f32.mrf.mxu0 }
 0x47b   :  { %v1955_v40 = vpop.f32.mrf.mxu0 }
 0x47d   :  { %v3330_v42 = vpop.f32.mrf.mxu0 }
 0x4a3   :  { %v1906_v47 = vpop.f32.mrf.mxu1 }
 0x4a4   :  { %v3504_v7 = vpack.i.bf16 %v1952_v55, %v1906_v47 }
 0x4a5   :  { %v3323_v14 = vpop.f32.mrf.mxu1 }
 0x4a6   :  { %3505 = vrot.lane.b32.xlu1 %v3504_v7, %s3824_s7 }
 0x4a7   :  { %v1909_v39 = vpop.f32.mrf.mxu1 }
 0x4a9   :  { %v3324_v37 = vpop.f32.mrf.mxu1 }
 0x4ab   :  { %v1998_v62 = vpop.f32.mrf.mxu1  ;;  %v2044_v44 = vpop.f32.mrf.mxu0 }
 0x4ac   :  { %v3509_v46 = vpack.i.bf16 %v2044_v44, %v1998_v62 }
 0x4ad   :  { %v3335_v36 = vpop.f32.mrf.mxu1  ;;  %v3341_v49 = vpop.f32.mrf.mxu0 }
 0x4ae   :  { %3510 = vrot.lane.b32.xlu1 %v3509_v46, %s3824_s7 }
 0x4af   :  { %v2001_v58 = vpop.f32.mrf.mxu1  ;;  %v2047_v63 = vpop.f32.mrf.mxu0 }
 0x4b1   :  { %v3336_v27 = vpop.f32.mrf.mxu1  ;;  %v3342_v20 = vpop.f32.mrf.mxu0 }
 0x4b2   :  { %v3684_v20 = vld [vmem:[#allocation2] sm:$0xff] }
 0x4b3   :  { %v2136_v51 = vpop.f32.mrf.mxu0 }
 0x4b5   :  { %v3353_v53 = vpop.f32.mrf.mxu0 }
 0x4b7   :  { %v2139_v54 = vpop.f32.mrf.mxu0 }
 0x4b9   :  { %v3354_v4 = vpop.f32.mrf.mxu0 }
 0x4d2   :  { %v2228_v8 = vpop.f32.mrf.mxu0 }
 0x4d4   :  { %v3365_v56 = vpop.f32.mrf.mxu0 }
 0x4d6   :  { %v2231_v59 = vpop.f32.mrf.mxu0 }
 0x4d7   :  { %v3687_v59 = vld [vmem:[#allocation2 + $0x18] sm:$0xff] }
 0x4d8   :  { %v2090_v60 = vpop.f32.mrf.mxu1  ;;  %v3366_v1 = vpop.f32.mrf.mxu0 }
 0x4d9   :  { %v3514_v12 = vpack.i.bf16 %v2136_v51, %v2090_v60  ;;  %v3564_v1 = vld [vmem:[#allocation8 + $0x70] ss:$8 sps:$4 sm:$0xff]  }
 0x4da   :  { %v3347_v6 = vpop.f32.mrf.mxu1  ;;  %2600 = vmatpush1.bf16.msra.mxu0 %v3564_v1 }
 0x4db   :  { %3515 = vrot.lane.b32.xlu0 %v3514_v12, %s3830_s2 }
 0x4dc   :  { %v2093_v57 = vpop.f32.mrf.mxu1  ;;  %v3496_v17 = vpop.permute.xlu1 %3495 }
 0x4dd   :  { %v3498_v19 = vunpack.i.h.bf16 %v3496_v17  ;;  %v3497_v21 = vunpack.i.l.bf16 %v3496_v17 }
 0x4de   :  { %v3348_v15 = vpop.f32.mrf.mxu1 }
 0x4df   :  { %v2283_v29 = vsel %vm551_vm1, %v4314_v23, %v3498_v19  ;;  %v2282_v52 = vsel %vm551_vm1, %v4323_v61, %v3497_v21 }
 0x4e0   :  { %v2182_v3 = vpop.f32.mrf.mxu1 }
 0x4e1   :  { %v3519_v16 = vpack.i.bf16 %v2228_v8, %v2182_v3  ;;  %v3686_v8 = vld [vmem:[#allocation2 + $0x10] sm:$0xff] }
 0x4e2   :  { %v3359_v11 = vpop.f32.mrf.mxu1 }
 0x4e3   :  { %3520 = vrot.lane.b32.xlu1 %v3519_v16, %s3830_s2 }
 0x4e4   :  { %v2185_v9 = vpop.f32.mrf.mxu1  ;;  %v3501_v10 = vpop.permute.xlu1 %3500 }
 0x4e5   :  { %v3503_v5 = vunpack.i.h.bf16 %v3501_v10  ;;  %v3502_v7 = vunpack.i.l.bf16 %v3501_v10 }
 0x4e6   :  { %v3360_v30 = vpop.f32.mrf.mxu1 }
 0x4e7   :  { %v2285_v61 = vsel %vm551_vm1, %v4316_v43, %v3503_v5  ;;  %v2284_v41 = vsel %vm551_vm1, %v4330_v2, %v3502_v7  ;;  %v2997_v43 = vld [vmem:[%s4427_s4] ss:$0 sm:$0xff]  ;;  %v3582_v5 = vld [vmem:[#allocation8 + $0x10] ss:$8 sps:$4 sm:$0xff]   ;;  %v3587_v7 = vld [vmem:[#allocation8 + $0x4] ss:$8 sps:$4 sm:$0xff]  }
 0x518   :  { %v3506_v18 = vpop.permute.xlu1 %3505 }
 0x519   :  { %v3508_v22 = vunpack.i.h.bf16 %v3506_v18  ;;  %v3507_v25 = vunpack.i.l.bf16 %v3506_v18 }
 0x51b   :  { %v2288_v55 = vsel %vm2286_vm4, %v2283_v29, %v3508_v22  ;;  %v2287_v35 = vsel %vm2286_vm4, %v2282_v52, %v3507_v25  ;;  %v3567_v29 = vld [vmem:[#allocation8 + $0x60] ss:$8 sps:$4 sm:$0xff]   ;;  %v3572_v52 = vld [vmem:[#allocation8 + $0x54] ss:$8 sps:$4 sm:$0xff]  }
 0x520   :  { %v3511_v40 = vpop.permute.xlu1 %3510 }
 0x521   :  { %v3513_v14 = vunpack.i.h.bf16 %v3511_v40  ;;  %v3512_v39 = vunpack.i.l.bf16 %v3511_v40  ;;  %v3576_v40 = vld [vmem:[#allocation8 + $0x30] ss:$8 sps:$4 sm:$0xff]  }
 0x523   :  { %v2290_v44 = vsel %vm2286_vm4, %v2285_v61, %v3513_v14  ;;  %v2289_v45 = vsel %vm2286_vm4, %v2284_v41, %v3512_v39  ;;  %v3585_v14 = vld [vmem:[#allocation8] ss:$8 sps:$4 sm:$0xff]   ;;  %v3588_v39 = vld [vmem:[#allocation10 + $0x78] sm:$0xff]   ;;  %v3590_v61 = vld [vmem:[#allocation10 + $0x70] sm:$0xff]  }
 0x524   :  { %3127 = vmatprep.subr.bf16.mxu1 %v3588_v39  ;;  %v3591_v41 = vld [vmem:[#allocation10 + $0x30] sm:$0xff]  }
 0x54d   :  { %v3516_v28 = vpop.permute.xlu0 %3515 }
 0x54e   :  { %v3518_v31 = vunpack.i.h.bf16 %v3516_v28  ;;  %v3517_v32 = vunpack.i.l.bf16 %v3516_v28  ;;  %v3569_v28 = vld [vmem:[#allocation8 + $0x64] ss:$8 sps:$4 sm:$0xff]  }
 0x54f   :  { %2601 = vmatprep.subr.bf16.mxu0 %v3569_v28  ;;  %v3602_v28 = vld [vmem:[#allocation10 + $0x40] sm:$0xff]  }
 0x550   :  { %v2292_v42 = vsel %vm2291_vm5, %v2287_v35, %v3517_v32  ;;  %v2293_v47 = vsel %vm2291_vm5, %v2288_v55, %v3518_v31  ;;  %2602 = vmatpush1.bf16.msra.mxu0 %v3567_v29  ;;  %v3570_v31 = vld [vmem:[#allocation8 + $0x50] ss:$8 sps:$4 sm:$0xff]   ;;  %v3575_v32 = vld [vmem:[#allocation8 + $0x44] ss:$8 sps:$4 sm:$0xff]   ;;  %v3573_v55 = vld [vmem:[#allocation8 + $0x40] ss:$8 sps:$4 sm:$0xff]  }
 0x551   :  { %v2296_v26 = vpack.c.bf16 %v2293_v47, %v2292_v42  ;;  %2603 = vmatprep.subr.bf16.mxu0 %v3572_v52  ;;  %v3578_v35 = vld [vmem:[#allocation8 + $0x34] ss:$8 sps:$4 sm:$0xff]   ;;  %v3581_v42 = vld [vmem:[#allocation8 + $0x24] ss:$8 sps:$4 sm:$0xff]   ;;  %v3579_v47 = vld [vmem:[#allocation8 + $0x20] ss:$8 sps:$4 sm:$0xff]  }
 0x552   :  { %v3603_v29 = vld [vmem:[#allocation10] sm:$0xff]  }
 0x553   :  { %3383 = vmatprep.mubr.bf16.mxu1 %v2296_v26  ;;  %v3584_v26 = vld [vmem:[#allocation8 + $0x14] ss:$8 sps:$4 sm:$0xff]  }
 0x554   :  { %2604 = vmatpush1.bf16.msra.mxu0 %v3570_v31 }
 0x555   :  { %v3521_v23 = vpop.permute.xlu1 %3520  ;;  %2605 = vmatprep.subr.bf16.mxu0 %v3575_v32 }
 0x556   :  { %v3523_v37 = vunpack.i.h.bf16 %v3521_v23  ;;  %v3522_v62 = vunpack.i.l.bf16 %v3521_v23  ;;  %v3589_v23 = vld [vmem:[#allocation10 + $0x38] sm:$0xff]  }
 0x558   :  { %v2295_v46 = vsel %vm2291_vm5, %v2290_v44, %v3523_v37  ;;  %v2294_v36 = vsel %vm2291_vm5, %v2289_v45, %v3522_v62  ;;  %2606 = vmatpush1.bf16.msra.mxu0 %v3573_v55  ;;  %v3592_v37 = vld [vmem:[#allocation10 + $0x68] sm:$0xff]   ;;  %v3594_v44 = vld [vmem:[#allocation10 + $0x60] sm:$0xff]  }
 0x559   :  { %v2297_v49 = vpack.c.bf16 %v2295_v46, %v2294_v36  ;;  %2607 = vmatprep.subr.bf16.mxu0 %v3578_v35  ;;  %v3593_v62 = vld [vmem:[#allocation10 + $0x28] sm:$0xff]   ;;  %v3595_v45 = vld [vmem:[#allocation10 + $0x20] sm:$0xff]   ;;  %v3596_v46 = vld [vmem:[#allocation10 + $0x58] sm:$0xff]  }
 0x55a   :  { %v3597_v36 = vld [vmem:[#allocation10 + $0x18] sm:$0xff]  }
 0x55b   :  { %3384 = vmatmul.mubr.bf16.vlgmr.msra.gmra.mxu1 %v2297_v49 }
 0x55c   :  { %2608 = vmatpush1.bf16.msra.mxu0 %v3576_v40  ;;  %3128 = vmatpush3.bf16.msra.mxu1 %v3589_v23 }
 0x55d   :  { %2609 = vmatprep.subr.bf16.mxu0 %v3581_v42  ;;  %3129 = vmatprep.subr.bf16.mxu1 %v3590_v61 }
 0x560   :  { %2610 = vmatpush1.bf16.msra.mxu0 %v3579_v47  ;;  %3130 = vmatpush3.bf16.msra.mxu1 %v3591_v41 }
 0x561   :  { %2611 = vmatprep.subr.bf16.mxu0 %v3584_v26  ;;  %3131 = vmatprep.subr.bf16.mxu1 %v3592_v37 }
 0x564   :  { %2612 = vmatpush1.bf16.msra.mxu0 %v3582_v5  ;;  %3132 = vmatpush3.bf16.msra.mxu1 %v3593_v62 }
 0x565   :  { %2613 = vmatprep.subr.bf16.mxu0 %v3587_v7  ;;  %3133 = vmatprep.subr.bf16.mxu1 %v3594_v44 }
 0x568   :  { %2614 = vmatpush1.bf16.msra.mxu0 %v3585_v14  ;;  %3134 = vmatpush3.bf16.msra.mxu1 %v3595_v45 }
 0x569   :  { %3135 = vmatprep.subr.bf16.mxu1 %v3596_v46 }
 0x56c   :  { %3136 = vmatpush3.bf16.msra.mxu1 %v3597_v36 }
 0x61b   :  { %v3385_v58 = vpop.f32.mrf.mxu1 }
 0x61c   :  { %v2412_v27 = vadd.f32 %v3385_v58, %v2997_v43 }
 0x61d   :  { %v2403_v63 = vpop.f32.mrf.mxu1 }
 0x61e   :  { %v2404_v50 = vadd.f32 %v2997_v43, %v2403_v63  ;;  %v2420_v56 = vadd.f32 %v3686_v8, %v2412_v27  ;;  %v3006_v8 = vld [vmem:[%s4428_s5] ss:$0 sm:$0xff] }
 0x61f   :  { %v3386_v2 = vpop.f32.mrf.mxu1 }
 0x620   :  { %v2418_v51 = vadd.f32 %v3684_v20, %v2404_v50  ;;  %v2415_v4 = vadd.f32 %v3386_v2, %v2997_v43 }
 0x621   :  { %v2406_v53 = vpop.f32.mrf.mxu1 }
 0x622   :  { %v2407_v54 = vadd.f32 %v2997_v43, %v2406_v53  ;;  %2424 = vadd.xlane.f32.xlu0 %v2418_v51  ;;  %v2421_v60 = vadd.f32 %v3687_v59, %v2415_v4 }
 0x624   :  { %v2419_v13 = vadd.f32 %v3685_v48, %v2407_v54 }
 0x626   :  { %2426 = vadd.xlane.f32.xlu1 %v2419_v13  ;;  %2428 = vadd.xlane.f32.xlu0 %v2420_v56 }
 0x62a   :  { %2430 = vadd.xlane.f32.xlu0 %v2421_v60 }
 0x6ab   :  { %v2425_v12 = vpop.xlane.xlu0 %2424 }
 0x6ac   :  { %v2433_v6 = vmul.f32 0.0078125, %v2425_v12 }
 0x6ae   :  { %v4358_v57 = vsub.f32 %v2418_v51, %v2433_v6 }
 0x6af   :  { %v2427_v15 = vpop.xlane.xlu1 %2426  ;;  %v2429_v3 = vpop.xlane.xlu0 %2428 }
 0x6b0   :  { %v2434_v16 = vmul.f32 0.0078125, %v2427_v15  ;;  %v2435_v11 = vmul.f32 0.0078125, %v2429_v3  ;;  %v2441_v9 = vmul.f32 %v4358_v57, %v4358_v57 }
 0x6b2   :  { %v4362_v30 = vsub.f32 %v2419_v13, %v2434_v16  ;;  %v4364_v17 = vsub.f32 %v2420_v56, %v2435_v11  ;;  %2445 = vadd.xlane.f32.xlu1 %v2441_v9 }
 0x6b3   :  { %v2431_v10 = vpop.xlane.xlu0 %2430 }
 0x6b4   :  { %v2436_v18 = vmul.f32 0.0078125, %v2431_v10  ;;  %v2442_v19 = vmul.f32 %v4362_v30, %v4362_v30  ;;  %v2443_v21 = vmul.f32 %v4364_v17, %v4364_v17 }
 0x6b6   :  { %v4370_v22 = vsub.f32 %v2421_v60, %v2436_v18  ;;  %2447 = vadd.xlane.f32.xlu0 %v2442_v19  ;;  %2449 = vadd.xlane.f32.xlu1 %v2443_v21  ;;  %v3598_v21 = vld [vmem:[#allocation10 + $0x50] sm:$0xff]  }
 0x6b7   :  { %3137 = vmatprep.subr.bf16.mxu1 %v3598_v21 }
 0x6b8   :  { %v2444_v25 = vmul.f32 %v4370_v22, %v4370_v22 }
 0x6ba   :  { %2451 = vadd.xlane.f32.xlu0 %v2444_v25  ;;  %v3601_v25 = vld [vmem:[#allocation10 + $0x8] sm:$0xff]  }
 0x73b   :  { %v2446_v49 = vpop.xlane.xlu1 %2445 }
 0x73c   :  { %v2453_v58 = vmul.f32 0.0078125, %v2446_v49 }
 0x73e   :  { %v2457_v43 = vadd.f32 1e-05, %v2453_v58 }
 0x73f   :  { %v2450_v63 = vpop.xlane.xlu1 %2449  ;;  %v2448_v50 = vpop.xlane.xlu0 %2447 }
 0x740   :  { %3668 = vrsqrt.f32 %v2457_v43  ;;  %v2455_v2 = vmul.f32 0.0078125, %v2450_v63  ;;  %v2454_v27 = vmul.f32 0.0078125, %v2448_v50 }
 0x742   :  { %v2458_v20 = vadd.f32 1e-05, %v2454_v27  ;;  %v2459_v51 = vadd.f32 1e-05, %v2455_v2  ;;  %v3024_v27 = vld [vmem:[%s4433_s10] ss:$0 sm:$0xff] }
 0x743   :  { %v2452_v53 = vpop.xlane.xlu0 %2451 }
 0x744   :  { %v2456_v54 = vmul.f32 0.0078125, %v2452_v53  ;;  %3670 = vrsqrt.f32 %v2458_v20 }
 0x745   :  { %3672 = vrsqrt.f32 %v2459_v51 }
 0x746   :  { %v2460_v4 = vadd.f32 1e-05, %v2456_v54 }
 0x748   :  { %3674 = vrsqrt.f32 %v2460_v4 }
 0x74d   :  { %v3669_v48 = vpop.eup %3668 }
 0x74e   :  { %v2465_v13 = vmul.f32 %v3669_v48, %v4358_v57 }
 0x750   :  { %v2475_v60 = vmul.f32 %v3006_v8, %v2465_v13 }
 0x751   :  { %v3671_v56 = vpop.eup %3670 }
 0x752   :  { %v2466_v59 = vmul.f32 %v3671_v56, %v4362_v30  ;;  %v3673_v1 = vpop.eup %3672  ;;  %v4383_v3 = vadd.f32 %v3007_v24, %v2475_v60 }
 0x753   :  { %v2467_v16 = vmul.f32 %v3673_v1, %v4364_v17  ;;  %v3600_v17 = vld [vmem:[#allocation10 + $0x48] sm:$0xff]  }
 0x754   :  { %v2476_v6 = vmul.f32 %v3006_v8, %v2466_v59 }
 0x755   :  { %v3675_v12 = vpop.eup %3674  ;;  %v2477_v30 = vmul.f32 %v3006_v8, %v2467_v16 }
 0x756   :  { %v2468_v15 = vmul.f32 %v3675_v12, %v4370_v22  ;;  %v4385_v57 = vadd.f32 %v3007_v24, %v2476_v6  ;;  %v3599_v22 = vld [vmem:[#allocation10 + $0x10] sm:$0xff]  }
 0x757   :  { %v4393_v18 = vadd.f32 %v3007_v24, %v2477_v30  ;;  %3138 = vmatpush3.bf16.msra.mxu1 %v3599_v22 }
 0x758   :  { %v2489_v11 = vpack.c.bf16 %v4385_v57, %v4383_v3  ;;  %v2478_v9 = vmul.f32 %v3006_v8, %v2468_v15  ;;  %3139 = vmatprep.subr.bf16.mxu1 %v3600_v17 }
 0x75a   :  { %2632 = vmatmul.mubr.bf16.vlgmr.msra.gmra.mxu0 %v2489_v11  ;;  %v4391_v10 = vadd.f32 %v3007_v24, %v2478_v9 }
 0x75b   :  { %2641 = vmatprep.mubr.bf16.mxu0 %v3827_v0  ;;  %3140 = vmatpush3.bf16.msra.mxu1 %v3601_v25  ;;  %v2507_v0 = vld [vmem:[%s4431_s8] sm:$0x3] }
 0x75c   :  { %v2490_v19 = vpack.c.bf16 %v4391_v10, %v4393_v18  ;;  %3141 = vmatprep.subr.bf16.mxu1 %v3602_v28  ;;  %v2516_v31 = vrot.slane %v2507_v0, %v160_v34  ;;  %v2512_v32 = vrot.slane %v2507_v0, %v156_v38 }
 0x75f   :  { %3142 = vmatpush3.bf16.msra.mxu1 %v3603_v29 }
 0x762   :  { %2642 = vmatmul.mubr.bf16.gmra.mxu0 %v2490_v19 }
 0x81a   :  { %v2633_v52 = vpop.f32.mrf.mxu0 }
 0x81b   :  { %v2634_v47 = vadd.f32 %v2633_v52, %v2512_v32 }
 0x81c   :  { %v2635_v55 = vpop.f32.mrf.mxu0 }
 0x81d   :  { %v2636_v40 = vadd.f32 %v2635_v55, %v2516_v31  ;;  %v2652_v61 = vmax.f32 %v2634_v47, 0.0 }
 0x81e   :  { %v2637_v35 = vpop.f32.mrf.mxu0 }
 0x81f   :  { %v2638_v42 = vadd.f32 %v2637_v35, %v2512_v32  ;;  %v2653_v39 = vmax.f32 %v2636_v40, 0.0 }
 0x820   :  { %v2639_v26 = vpop.f32.mrf.mxu0 }
 0x821   :  { %v2640_v5 = vadd.f32 %v2639_v26, %v2516_v31  ;;  %v2654_v7 = vmax.f32 %v2638_v42, 0.0 }
 0x822   :  { %v2643_v14 = vpop.f32.mrf.mxu0 }
 0x823   :  { %v2655_v23 = vmax.f32 %v2640_v5, 0.0  ;;  %v2660_v62 = vpack.c.bf16 %v2654_v7, %v2652_v61  ;;  %v2644_v33 = vadd.f32 %v2643_v14, %v2512_v32 }
 0x824   :  { %v2645_v41 = vpop.f32.mrf.mxu0 }
 0x825   :  { %v2661_v37 = vpack.c.bf16 %v2655_v23, %v2653_v39  ;;  %v2646_v34 = vadd.f32 %v2645_v41, %v2516_v31  ;;  %v2656_v43 = vmax.f32 %v2644_v33, 0.0 }
 0x826   :  { %v2647_v44 = vpop.f32.mrf.mxu0 }
 0x827   :  { %v2648_v45 = vadd.f32 %v2647_v44, %v2512_v32  ;;  %2831 = vmatprep.mubr.bf16.mxu1 %v2661_v37  ;;  %v2657_v49 = vmax.f32 %v2646_v34, 0.0  ;;  %v3041_v37 = vld [vmem:[%s4434_s11] ss:$0 sm:$0xff]  ;;  %s3832_s11 = smov [#allocation11]  }
 0x828   :  { %v2649_v38 = vpop.f32.mrf.mxu0  ;;  %2832 = vmatmul.mubr.bf16.vlgmr.msra.gmra.mxu1 %v2660_v62  ;;  %v3042_v44 = vld [vmem:[%s4435_s12] ss:$0 sm:$0xff]  ;;  %s2927_s29 = sshll.u32 %s3832_s11, 4  ;;  %s2928_s29 = int_to_ptr.vmem [resolvable:$true] %s2927_s29 }
 0x829   :  { %v2650_v46 = vadd.f32 %v2649_v38, %v2516_v31  ;;  %v2658_v36 = vmax.f32 %v2648_v45, 0.0  ;;  %s3788_s12 = scalar_lea.vmem %s2928_s29, 512  ;;  %p3793_p12 = scmp.lt.s32.totalorder %s2928_s29, %s2928_s29 }
 0x82a   :  { %p3789_p11 = scmp.ne.s32.totalorder %s2928_s29, %s3788_s12  ;;  %p3794_p13 = scmp.lt.s32.totalorder %s3788_s12, %s3788_s12 }
 0x82b   :  { %v2659_v58 = vmax.f32 %v2650_v46, 0.0  ;;  %v2662_v50 = vpack.c.bf16 %v2658_v36, %v2656_v43 }
 0x82c   :  { %p3795_p0 = por %p3794_p13, %p3793_p12 }
 0x82d   :  { %v2663_v63 = vpack.c.bf16 %v2659_v58, %v2657_v49 }
 0x82e   :  { %p3796_p1 = pnand %p3795_p0, %p3789_p11 }
 0x82f   :  { %2839 = vmatprep.mubr.bf16.mxu1 %v2663_v63 }
 0x830   :  { %2840 = vmatmul.mubr.bf16.gmra.mxu1 %v2662_v50 }
 0x8e8   :  { %v3143_v2 = vpop.f32.mrf.mxu1 }
 0x8ea   :  { %v3144_v20 = vpop.f32.mrf.mxu1 }
 0x8eb   :  { %v3145_v51 = vadd.f32 %v3144_v20, %v3143_v2 }
 0x8ec   :  { %v3146_v53 = vpop.f32.mrf.mxu1 }
 0x8ed   :  { %v2834_v54 = vadd.f32 %v3145_v51, %v3024_v27 }
 0x8ee   :  { %v3147_v4 = vpop.f32.mrf.mxu1 }
 0x8ef   :  { %v3148_v48 = vadd.f32 %v3147_v4, %v3146_v53  ;;  %v2848_v13 = vadd.f32 %v2834_v54, %v4383_v3 }
 0x8f0   :  { %v3149_v8 = vpop.f32.mrf.mxu1 }
 0x8f1   :  { %v2837_v56 = vadd.f32 %v3148_v48, %v3024_v27  ;;  %2854 = vadd.xlane.f32.xlu1 %v2848_v13 }
 0x8f2   :  { %v3150_v59 = vpop.f32.mrf.mxu1 }
 0x8f3   :  { %v3151_v60 = vadd.f32 %v3150_v59, %v3149_v8  ;;  %v2849_v1 = vadd.f32 %v2837_v56, %v4385_v57 }
 0x8f4   :  { %v3152_v24 = vpop.f32.mrf.mxu1 }
 0x8f5   :  { %v2842_v12 = vadd.f32 %v3151_v60, %v3024_v27  ;;  %2856 = vadd.xlane.f32.xlu0 %v2849_v1 }
 0x8f6   :  { %v3153_v6 = vpop.f32.mrf.mxu1 }
 0x8f7   :  { %v3154_v15 = vadd.f32 %v3153_v6, %v3152_v24  ;;  %v2850_v16 = vadd.f32 %v2842_v12, %v4393_v18 }
 0x8f9   :  { %v2845_v11 = vadd.f32 %v3154_v15, %v3024_v27  ;;  %2858 = vadd.xlane.f32.xlu1 %v2850_v16 }
 0x8fb   :  { %v2851_v9 = vadd.f32 %v2845_v11, %v4391_v10 }
 0x8fd   :  { %2860 = vadd.xlane.f32.xlu0 %v2851_v9 }
 0x97a   :  { %v2855_v3 = vpop.xlane.xlu1 %2854 }
 0x97b   :  { %v2862_v30 = vmul.f32 0.0078125, %v2855_v3 }
 0x97d   :  { %v2866_v19 = vsub.f32 %v2848_v13, %v2862_v30 }
 0x97e   :  { %v2857_v21 = vpop.xlane.xlu0 %2856 }
 0x97f   :  { %v2863_v22 = vmul.f32 0.0078125, %v2857_v21  ;;  %v2870_v17 = vmul.f32 %v2866_v19, %v2866_v19 }
 0x981   :  { %v2867_v25 = vsub.f32 %v2849_v1, %v2863_v22  ;;  %2874 = vadd.xlane.f32.xlu1 %v2870_v17 }
 0x982   :  { %v2859_v57 = vpop.xlane.xlu1 %2858 }
 0x983   :  { %v2864_v28 = vmul.f32 0.0078125, %v2859_v57  ;;  %v2871_v29 = vmul.f32 %v2867_v25, %v2867_v25 }
 0x985   :  { %v2868_v0 = vsub.f32 %v2850_v16, %v2864_v28  ;;  %2876 = vadd.xlane.f32.xlu0 %v2871_v29 }
 0x986   :  { %v2861_v52 = vpop.xlane.xlu0 %2860 }
 0x987   :  { %v2865_v18 = vmul.f32 0.0078125, %v2861_v52  ;;  %v2872_v31 = vmul.f32 %v2868_v0, %v2868_v0 }
 0x989   :  { %v2869_v32 = vsub.f32 %v2851_v9, %v2865_v18  ;;  %2878 = vadd.xlane.f32.xlu1 %v2872_v31 }
 0x98b   :  { %v2873_v10 = vmul.f32 %v2869_v32, %v2869_v32 }
 0x98d   :  { %2880 = vadd.xlane.f32.xlu0 %v2873_v10 }
 0xa0a   :  { %v2875_v55 = vpop.xlane.xlu1 %2874 }
 0xa0b   :  { %v2882_v35 = vmul.f32 0.0078125, %v2875_v55 }
 0xa0d   :  { %v2886_v40 = vadd.f32 1e-05, %v2882_v35 }
 0xa0e   :  { %v2877_v42 = vpop.xlane.xlu0 %2876 }
 0xa0f   :  { %3676 = vrsqrt.f32 %v2886_v40  ;;  %v2883_v47 = vmul.f32 0.0078125, %v2877_v42 }
 0xa11   :  { %v2887_v26 = vadd.f32 1e-05, %v2883_v47 }
 0xa12   :  { %v2879_v5 = vpop.xlane.xlu1 %2878 }
 0xa13   :  { %3678 = vrsqrt.f32 %v2887_v26  ;;  %v2884_v7 = vmul.f32 0.0078125, %v2879_v5 }
 0xa15   :  { %v2888_v14 = vadd.f32 1e-05, %v2884_v7 }
 0xa16   :  { %v2881_v39 = vpop.xlane.xlu0 %2880 }
 0xa17   :  { %3680 = vrsqrt.f32 %v2888_v14  ;;  %v2885_v23 = vmul.f32 0.0078125, %v2881_v39 }
 0xa19   :  { %v2889_v61 = vadd.f32 1e-05, %v2885_v23 }
 0xa1b   :  { %3682 = vrsqrt.f32 %v2889_v61 }
 0xa1c   :  { %v3677_v41 = vpop.eup %3676 }
 0xa1d   :  { %v2894_v62 = vmul.f32 %v3677_v41, %v2866_v19 }
 0xa1f   :  { %v2904_v34 = vmul.f32 %v3041_v37, %v2894_v62 }
 0xa20   :  { %v3679_v45 = vpop.eup %3678 }
 0xa21   :  { %v2895_v33 = vmul.f32 %v3679_v45, %v2867_v25  ;;  %v2914_v38 = vadd.f32 %v3042_v44, %v2904_v34 }
 0xa23   :  { %v2905_v46 = vmul.f32 %v3041_v37, %v2895_v33  ;;  %2918 = vst [vmem:[#allocation11] sm:$0xff] %v2914_v38 }
 0xa24   :  { %v3681_v36 = vpop.eup %3680 }
 0xa25   :  { %v2896_v49 = vmul.f32 %v3681_v36, %v2868_v0  ;;  %v2915_v58 = vadd.f32 %v3042_v44, %v2905_v46 }
 0xa27   :  { %v2906_v43 = vmul.f32 %v3041_v37, %v2896_v49  ;;  %2919 = vst [vmem:[#allocation11 + $0x8] sm:$0xff] %v2915_v58 }
 0xa28   :  { %v3683_v63 = vpop.eup %3682 }
 0xa29   :  { %v2897_v50 = vmul.f32 %v3683_v63, %v2869_v32  ;;  %v2916_v2 = vadd.f32 %v3042_v44, %v2906_v43 }
 0xa2b   :  { %v2907_v27 = vmul.f32 %v3041_v37, %v2897_v50  ;;  %2920 = vst [vmem:[#allocation11 + $0x10] sm:$0xff] %v2916_v2 }
 0xa2d   :  { %v2917_v20 = vadd.f32 %v3042_v44, %v2907_v27 }
 0xa2f   :  { %2921 = vst [vmem:[#allocation11 + $0x18] sm:$0xff] %v2917_v20 }
 0xa30   :  { %3799 = shalt.err (!%p3796_p1)
}
 0xa31   :  { %2933 = dma.vmem_to_hbm [thread:$0]  %s2928_s29, 512, %s4436_s13, [#allocation4], %s3821_s20, %s3821_s20, %s3822_s21  }
 0xa32   :  { %3814 = dma.done.wait [#allocation4], 512  }
 0xa33   :  { %3815 = vsyncadd [#allocation4], 4294966784 }
 0xa34   :  { %2937 = vsyncpa [#allocation3], 1 }
 0xa35   :  { %2938 = vsyncpa [#allocation6], 1 }
 0xa36   :  { %2939 = vsyncpa [#allocation9], 1 }
 0xa37   :  { %2940 = vsyncpa [#allocation4], 1 }

</bundles_post_ra>
